<compile_context>
chip_gen: v6e
topology: v6e:2x2x1
jax: 0.10.0
libtpu: 0.0.40
codegen_flags: <defaults>
</compile_context>

<pallas_src>
import functools

import jax
import jax.numpy as jnp
import numpy as np
from jax.experimental import pallas as pl
from jax.experimental.pallas import tpu as pltpu

_INV_SQRT2 = 0.7071067811865476


def _erf_approx(x):
    # Abramowitz & Stegun 7.1.26 rational approximation (|err| < 1.5e-7),
    # computed in f32; the divide is routed to the EUP via approx reciprocal.
    a1, a2, a3, a4, a5 = (0.254829592, -0.284496736, 1.421413741,
                          -1.453152027, 1.061405429)
    p = 0.3275911
    sgn = jnp.where(x >= 0.0, 1.0, -1.0)
    ax = jnp.abs(x)
    t = pl.reciprocal(1.0 + p * ax, approx=True)
    poly = ((((a5 * t + a4) * t + a3) * t + a2) * t + a1) * t
    return sgn * (1.0 - poly * jnp.exp(-ax * ax))


def _gelu_exact(x):
    # Matches PyTorch F.gelu default (erf-based); stays in float32.
    return 0.5 * x * (1.0 + _erf_approx(x * _INV_SQRT2))


def _fno1d_kernel(layers,
                  x_ref, op0_ref, ops_ref, biases_ref,
                  p1_ref, p1b_ref, p2_ref, p2b_ref, o_ref):
    f32 = jnp.float32
    bf16 = jnp.bfloat16

    # Layer 0: lift Linear folded into the fused (spectral + 1x1 conv) op.
    h = jnp.dot(x_ref[...].astype(bf16), op0_ref[...],
                preferred_element_type=f32)
    h = _gelu_exact(h + biases_ref[0:1, :])                        # (TB, S*W)

    # Remaining Fourier blocks: one fused bf16 matmul + bias + f32 GELU each.
    for l in range(1, layers):
        h = jnp.dot(h.astype(bf16), ops_ref[l - 1],
                    preferred_element_type=f32)
        h = _gelu_exact(h + biases_ref[l:l + 1, :])

    # Projection MLP (block-diagonal in the spatial index): Linear/GELU/Linear.
    z = jnp.dot(h.astype(bf16), p1_ref[...], preferred_element_type=f32)
    z = _gelu_exact(z + p1b_ref[...])
    o_ref[...] = (jnp.dot(z.astype(bf16), p2_ref[...],
                          preferred_element_type=f32) + p2b_ref[...])


def _pad_output_dim(S, Dout):
    """Smallest Dout_pad >= Dout with S*Dout_pad a multiple of 128 (lane-dense
    output stores).  Falls back to Dout (masked stores) if S doesn't allow it."""
    if (S * Dout) % 128 == 0:
        return Dout
    if 128 % S == 0:
        unit = 128 // S
        return -(-Dout // unit) * unit
    return Dout


# TODO(synk): there is no Pallas FFT primitive; the rFFT/irFFT of the spectral
# conv are folded on the host into dense DFT + mode-mixing operators (exact
# for the truncated-mode FNO block, fine at small S; use the factorized
# forward/inverse slabs for large S instead of composing them).
def _build_fused_operators(params, *, S, modes, layers):
    """Fold DFT / per-mode complex mixing / inverse DFT / 1x1 conv, the lift
    Linear (into layer 0) and the projection Linears into dense operators on
    flattened (spatial*channel) vectors.  Built in float64 on host, stored in
    bfloat16 (biases in float32)."""
    lift_w = np.asarray(params["lift_w"], np.float64)       # (Din, W)
    lift_b = np.asarray(params["lift_b"], np.float64)       # (W,)
    spec_wr = np.asarray(params["spec_wr"], np.float64)     # (L, W, W, modes)
    spec_wi = np.asarray(params["spec_wi"], np.float64)
    conv_w = np.asarray(params["conv_w"], np.float64)       # (L, W, W) [o, i]
    conv_b = np.asarray(params["conv_b"], np.float64)       # (L, W)
    p1_w = np.asarray(params["p1_w"], np.float64)           # (W, W2)
    p1_b = np.asarray(params["p1_b"], np.float64)
    p2_w = np.asarray(params["p2_w"], np.float64)           # (W2, Dout)
    p2_b = np.asarray(params["p2_b"], np.float64)

    Din, W = lift_w.shape
    W2 = p1_w.shape[1]
    Dout = p2_w.shape[1]
    Dout_pad = _pad_output_dim(S, Dout)

    # rFFT (first `modes` bins) / irFFT as dense real matrices.
    k = np.arange(modes, dtype=np.float64)[:, None]
    t = np.arange(S, dtype=np.float64)[None, :]
    ang = 2.0 * np.pi * k * t / S                            # (modes, S)
    Fc, Fs = np.cos(ang), np.sin(ang)                        # hf = (Fc - i Fs) h
    coef = np.full((modes,), 2.0)
    coef[0] = 1.0
    if S % 2 == 0 and modes > S // 2:
        coef[S // 2] = 1.0                                   # Nyquist bin
    Gc = (coef[:, None] * Fc).T / S                          # (S, modes)
    Gs = -(coef[:, None] * Fs).T / S

    # Compose DFT + per-mode complex weights + iDFT into one real operator.
    Cr = np.einsum("kt,sk->tsk", Fc, Gc) - np.einsum("kt,sk->tsk", Fs, Gs)
    Ci = np.einsum("kt,sk->tsk", Fc, Gs) + np.einsum("kt,sk->tsk", Fs, Gc)
    A = (np.einsum("tsk,liok->ltiso", Cr, spec_wr)
         + np.einsum("tsk,liok->ltiso", Ci, spec_wi))        # (L, S, W, S, W)
    eyeS = np.eye(S)
    A += np.einsum("ts,loi->ltiso", eyeS, conv_w)            # 1x1 conv (block diag)
    ops = A.reshape(layers, S * W, S * W)

    # Fold the lift Linear into layer 0 (removes the narrow K=Din lift GEMM).
    lift_op = np.einsum("ts,dc->tdsc", eyeS, lift_w).reshape(S * Din, S * W)
    op0 = lift_op @ ops[0]                                   # (S*Din, S*W)
    lift_b_t = np.tile(lift_b, S)
    biases = np.stack([lift_b_t @ ops[0] + np.tile(conv_b[0], S)]
                      + [np.tile(conv_b[l], S) for l in range(1, layers)])
    ops_rest = ops[1:] if layers > 1 else np.zeros((1, S * W, S * W))

    # Block-diagonal projection operators; Dout zero-padded for lane-dense
    # output stores (wrapper slices the padding off).
    p1_op = np.einsum("ts,cm->tcsm", eyeS, p1_w).reshape(S * W, S * W2)
    p2_pad = np.zeros((W2, Dout_pad)); p2_pad[:, :Dout] = p2_w
    p2b_pad = np.zeros((Dout_pad,));   p2b_pad[:Dout] = p2_b
    p2_op = np.einsum("ts,mo->tmso", eyeS, p2_pad).reshape(S * W2, S * Dout_pad)
    p1_bias = np.tile(p1_b, S)[None, :]
    p2_bias = np.tile(p2b_pad, S)[None, :]

    bf16, f32 = jnp.bfloat16, jnp.float32
    return dict(
        op0=jnp.asarray(op0, bf16),
        ops=jnp.asarray(ops_rest, bf16),
        biases=jnp.asarray(biases, f32),
        p1_op=jnp.asarray(p1_op, bf16), p1_b=jnp.asarray(p1_bias, f32),
        p2_op=jnp.asarray(p2_op, bf16), p2_b=jnp.asarray(p2_bias, f32),
        dims=(Din, W, W2, Dout, Dout_pad))


def fno1d_pallas(x, params, *, modes, layers):
    B, S, Din = x.shape
    slabs = _build_fused_operators(params, S=S, modes=modes, layers=layers)
    _, W, W2, Dout, Dout_pad = slabs["dims"]

    # Row tile: at least the f32 sublane height (8), up to 128 rows per matmul
    # for large batches; padding rows are sliced off below.
    TB = min(128, -(-B // 8) * 8)
    B_pad = -(-B // TB) * TB
    x_flat = x.reshape(B, S * Din).astype(jnp.float32)
    x_flat = jnp.pad(x_flat, ((0, B_pad - B), (0, 0)))
    grid = (B_pad // TB,)

    # Advisory cost estimate for the XLA scheduler.
    mm_flops = 2 * B_pad * ((S * Din) * (S * W) + (layers - 1) * (S * W) ** 2
                            + (S * W) * (S * W2) + (S * W2) * (S * Dout_pad))
    transcendentals = 2 * B_pad * (layers * S * W + S * W2)
    weight_bytes = sum(int(np.prod(a.shape)) * a.dtype.itemsize
                       for a in (slabs["op0"], slabs["ops"], slabs["biases"],
                                 slabs["p1_op"], slabs["p1_b"],
                                 slabs["p2_op"], slabs["p2_b"]))
    bytes_accessed = int(weight_bytes + x_flat.size * 4
                         + B_pad * S * Dout_pad * 4)

    def resident(a):
        # Full-array block with a constant index_map: DMA'd once, stays in
        # VMEM across all grid steps.
        nd = a.ndim
        return pl.BlockSpec(a.shape, lambda i, _nd=nd: (0,) * _nd)

    out_flat = pl.pallas_call(
        functools.partial(_fno1d_kernel, layers),
        out_shape=jax.ShapeDtypeStruct((B_pad, S * Dout_pad), jnp.float32),
        grid_spec=pltpu.PrefetchScalarGridSpec(
            num_scalar_prefetch=0,
            grid=grid,
            in_specs=[
                pl.BlockSpec((TB, S * Din), lambda i: (i, 0)),
                resident(slabs["op0"]), resident(slabs["ops"]),
                resident(slabs["biases"]),
                resident(slabs["p1_op"]), resident(slabs["p1_b"]),
                resident(slabs["p2_op"]), resident(slabs["p2_b"]),
            ],
            out_specs=pl.BlockSpec((TB, S * Dout_pad), lambda i: (i, 0)),
        ),
        compiler_params=pltpu.CompilerParams(
            dimension_semantics=("parallel",),      # shards batch over v7x TCs
            vmem_limit_bytes=32 * 1024 * 1024),
        cost_estimate=pl.CostEstimate(
            flops=int(mm_flops), transcendentals=int(transcendentals),
            bytes_accessed=bytes_accessed),
    )(x_flat, slabs["op0"], slabs["ops"], slabs["biases"],
      slabs["p1_op"], slabs["p1_b"], slabs["p2_op"], slabs["p2_b"])

    return out_flat.reshape(B_pad, S, Dout_pad)[:B, :, :Dout]


def fno1d_reference(x, params, *, modes, layers):
    # Pure-JAX f32 reference mirroring the PyTorch module (NCW Fourier blocks,
    # jnp.fft rfft/irfft, exact erf GELU).
    h = x @ params["lift_w"] + params["lift_b"]                      # (B, S, W)
    h = jnp.transpose(h, (0, 2, 1))                                  # (B, W, S)
    S = h.shape[-1]
    for l in range(layers):
        hf = jnp.fft.rfft(h, axis=-1)                                # (B, W, S//2+1)
        w = (params["spec_wr"][l] + 1j * params["spec_wi"][l]).astype(hf.dtype)
        mixed = jnp.einsum("bix,iox->box", hf[:, :, :modes], w)
        out_ft = jnp.zeros(hf.shape, dtype=hf.dtype).at[:, :, :modes].set(mixed)
        spec = jnp.fft.irfft(out_ft, n=S, axis=-1)
        pw = (jnp.einsum("oi,bis->bos", params["conv_w"][l], h)
              + params["conv_b"][l][None, :, None])
        h = jax.nn.gelu(spec + pw, approximate=False)
    h = jnp.transpose(h, (0, 2, 1))                                  # (B, S, W)
    z = jax.nn.gelu(h @ params["p1_w"] + params["p1_b"], approximate=False)
    z = z @ params["p2_w"] + params["p2_b"]
    return z


if __name__ == "__main__":
    B, S = 2, 16
    input_dim, output_dim = 2, 2
    width, modes, layers = 32, 8, 4
    w2dim = width // 2

    key = jax.random.PRNGKey(0)
    ks = jax.random.split(key, 11)
    params = {
        "lift_w": jax.random.normal(ks[0], (input_dim, width), jnp.float32) * 0.5,
        "lift_b": jax.random.normal(ks[1], (width,), jnp.float32) * 0.1,
        "spec_wr": jax.random.normal(ks[2], (layers, width, width, modes), jnp.float32) / width,
        "spec_wi": jax.random.normal(ks[3], (layers, width, width, modes), jnp.float32) / width,
        "conv_w": jax.random.normal(ks[4], (layers, width, width), jnp.float32) / np.sqrt(width),
        "conv_b": jax.random.normal(ks[5], (layers, width), jnp.float32) * 0.1,
        "p1_w": jax.random.normal(ks[6], (width, w2dim), jnp.float32) / np.sqrt(width),
        "p1_b": jax.random.normal(ks[7], (w2dim,), jnp.float32) * 0.1,
        "p2_w": jax.random.normal(ks[8], (w2dim, output_dim), jnp.float32) / np.sqrt(w2dim),
        "p2_b": jax.random.normal(ks[9], (output_dim,), jnp.float32) * 0.1,
    }
    x = jax.random.normal(ks[10], (B, S, input_dim), jnp.float32)

    out = jax.block_until_ready(fno1d_pallas(x, params, modes=modes, layers=layers))
    ref = jax.block_until_ready(fno1d_reference(x, params, modes=modes, layers=layers))

    assert out.shape == (B, S, output_dim)
    # Tolerance absorbs bf16 weight slabs + bf16 matmul-input casts (f32 ref).
    np.testing.assert_allclose(np.asarray(out), np.asarray(ref), rtol=2e-2, atol=2e-2)
    print("KERNEL_OK")
</pallas_src>

<mosaic_0001>
module attributes {stable_mosaic.version = 11 : i64} {
  func.func @_fno1d_kernel(%arg0: i32, %arg1: memref<8x32xf32, #tpu.memory_space<vmem>>, %arg2: memref<32x512xbf16, #tpu.memory_space<vmem>>, %arg3: memref<3x512x512xbf16, #tpu.memory_space<vmem>>, %arg4: memref<4x512xf32, #tpu.memory_space<vmem>>, %arg5: memref<512x256xbf16, #tpu.memory_space<vmem>>, %arg6: memref<1x256xf32, #tpu.memory_space<vmem>>, %arg7: memref<256x128xbf16, #tpu.memory_space<vmem>>, %arg8: memref<1x128xf32, #tpu.memory_space<vmem>>, %arg9: memref<8x128xf32, #tpu.memory_space<vmem>>) attributes {dimension_semantics = [#tpu.dimension_semantics<parallel>], iteration_bounds = array<i64: 1>, scalar_prefetch = 0 : i64, scratch_operands = 0 : i64, tpu.core_type = #tpu.core_type<tc>, window_params = [{transform_indices = @transform_0, window_bounds = array<i64: 8, 32>}, {pipeline_mode = #tpu.pipeline_mode<synchronous>, transform_indices = @transform_1, window_bounds = array<i64: 32, 512>}, {pipeline_mode = #tpu.pipeline_mode<synchronous>, transform_indices = @transform_2, window_bounds = array<i64: 3, 512, 512>}, {pipeline_mode = #tpu.pipeline_mode<synchronous>, transform_indices = @transform_3, window_bounds = array<i64: 4, 512>}, {pipeline_mode = #tpu.pipeline_mode<synchronous>, transform_indices = @transform_4, window_bounds = array<i64: 512, 256>}, {pipeline_mode = #tpu.pipeline_mode<synchronous>, transform_indices = @transform_5, window_bounds = array<i64: 1, 256>}, {pipeline_mode = #tpu.pipeline_mode<synchronous>, transform_indices = @transform_6, window_bounds = array<i64: 256, 128>}, {pipeline_mode = #tpu.pipeline_mode<synchronous>, transform_indices = @transform_7, window_bounds = array<i64: 1, 128>}, {transform_indices = @transform_8, window_bounds = array<i64: 8, 128>}]} {
    %c0 = arith.constant 0 : index
    %c0_0 = arith.constant 0 : index
    %0 = vector.load %arg1[%c0, %c0_0] : memref<8x32xf32, #tpu.memory_space<vmem>>, vector<8x32xf32>
    %1 = arith.truncf %0 : vector<8x32xf32> to vector<8x32xbf16>
    %c0_1 = arith.constant 0 : index
    %c0_2 = arith.constant 0 : index
    %2 = vector.load %arg2[%c0_1, %c0_2] : memref<32x512xbf16, #tpu.memory_space<vmem>>, vector<32x512xbf16>
    %cst = arith.constant dense<0.000000e+00> : vector<8x512xf32>
    %3 = tpu.matmul %1, %2, %cst {dimension_numbers = #tpu.dot_dimension_numbers<[1], [0], [0], [1], [0, 0, 1, 1], [], []>} : vector<8x32xbf16>, vector<32x512xbf16>, vector<8x512xf32> -> vector<8x512xf32>
    %c0_3 = arith.constant 0 : index
    %c0_4 = arith.constant 0 : index
    %4 = vector.load %arg4[%c0_3, %c0_4] : memref<4x512xf32, #tpu.memory_space<vmem>>, vector<1x512xf32>
    %5 = vector.broadcast %4 : vector<1x512xf32> to vector<8x512xf32>
    %6 = arith.addf %3, %5 : vector<8x512xf32>
    %cst_5 = arith.constant 5.000000e-01 : f32
    %7 = vector.broadcast %cst_5 : f32 to vector<8x512xf32>
    %8 = arith.mulf %7, %6 : vector<8x512xf32>
    %cst_6 = arith.constant 0.707106769 : f32
    %9 = vector.broadcast %cst_6 : f32 to vector<8x512xf32>
    %10 = arith.mulf %6, %9 : vector<8x512xf32>
    %cst_7 = arith.constant 0.000000e+00 : f32
    %11 = vector.broadcast %cst_7 : f32 to vector<8x512xf32>
    %12 = arith.cmpf oge, %10, %11 : vector<8x512xf32>
    %cst_8 = arith.constant 1.000000e+00 : f32
    %cst_9 = arith.constant -1.000000e+00 : f32
    %13 = vector.broadcast %cst_8 : f32 to vector<8x512xf32>
    %14 = vector.broadcast %cst_9 : f32 to vector<8x512xf32>
    %15 = arith.select %12, %13, %14 : vector<8x512xi1>, vector<8x512xf32>
    %16 = math.absf %10 : vector<8x512xf32>
    %cst_10 = arith.constant 0.327591091 : f32
    %17 = vector.broadcast %cst_10 : f32 to vector<8x512xf32>
    %18 = arith.mulf %17, %16 : vector<8x512xf32>
    %cst_11 = arith.constant 1.000000e+00 : f32
    %19 = vector.broadcast %cst_11 : f32 to vector<8x512xf32>
    %20 = arith.addf %19, %18 : vector<8x512xf32>
    %21 = tpu.reciprocal %20 {approx = true} : vector<8x512xf32> -> vector<8x512xf32>
    %cst_12 = arith.constant 1.06140542 : f32
    %22 = vector.broadcast %cst_12 : f32 to vector<8x512xf32>
    %23 = arith.mulf %22, %21 : vector<8x512xf32>
    %cst_13 = arith.constant -1.45315206 : f32
    %24 = vector.broadcast %cst_13 : f32 to vector<8x512xf32>
    %25 = arith.addf %23, %24 : vector<8x512xf32>
    %26 = arith.mulf %25, %21 : vector<8x512xf32>
    %cst_14 = arith.constant 1.42141378 : f32
    %27 = vector.broadcast %cst_14 : f32 to vector<8x512xf32>
    %28 = arith.addf %26, %27 : vector<8x512xf32>
    %29 = arith.mulf %28, %21 : vector<8x512xf32>
    %cst_15 = arith.constant -0.284496725 : f32
    %30 = vector.broadcast %cst_15 : f32 to vector<8x512xf32>
    %31 = arith.addf %29, %30 : vector<8x512xf32>
    %32 = arith.mulf %31, %21 : vector<8x512xf32>
    %cst_16 = arith.constant 0.254829586 : f32
    %33 = vector.broadcast %cst_16 : f32 to vector<8x512xf32>
    %34 = arith.addf %32, %33 : vector<8x512xf32>
    %35 = arith.mulf %34, %21 : vector<8x512xf32>
    %cst_17 = arith.constant 0.000000e+00 : f32
    %36 = vector.broadcast %cst_17 : f32 to vector<8x512xf32>
    %37 = arith.subf %36, %16 : vector<8x512xf32>
    %38 = arith.mulf %37, %16 : vector<8x512xf32>
    %39 = math.exp %38 : vector<8x512xf32>
    %40 = arith.mulf %35, %39 : vector<8x512xf32>
    %cst_18 = arith.constant 1.000000e+00 : f32
    %41 = vector.broadcast %cst_18 : f32 to vector<8x512xf32>
    %42 = arith.subf %41, %40 : vector<8x512xf32>
    %43 = arith.mulf %15, %42 : vector<8x512xf32>
    %cst_19 = arith.constant 1.000000e+00 : f32
    %44 = vector.broadcast %cst_19 : f32 to vector<8x512xf32>
    %45 = arith.addf %44, %43 : vector<8x512xf32>
    %46 = arith.mulf %8, %45 : vector<8x512xf32>
    %47 = arith.truncf %46 : vector<8x512xf32> to vector<8x512xbf16>
    %c0_20 = arith.constant 0 : index
    %c0_21 = arith.constant 0 : index
    %c0_22 = arith.constant 0 : index
    %48 = vector.load %arg3[%c0_20, %c0_21, %c0_22] : memref<3x512x512xbf16, #tpu.memory_space<vmem>>, vector<1x512x512xbf16>
    %49 = vector.shape_cast %48 : vector<1x512x512xbf16> to vector<512x512xbf16>
    %cst_23 = arith.constant dense<0.000000e+00> : vector<8x512xf32>
    %50 = tpu.matmul %47, %49, %cst_23 {dimension_numbers = #tpu.dot_dimension_numbers<[1], [0], [0], [1], [0, 0, 1, 1], [], []>} : vector<8x512xbf16>, vector<512x512xbf16>, vector<8x512xf32> -> vector<8x512xf32>
    %c1 = arith.constant 1 : index
    %c0_24 = arith.constant 0 : index
    %51 = vector.load %arg4[%c1, %c0_24] : memref<4x512xf32, #tpu.memory_space<vmem>>, vector<1x512xf32>
    %52 = vector.broadcast %51 : vector<1x512xf32> to vector<8x512xf32>
    %53 = arith.addf %50, %52 : vector<8x512xf32>
    %cst_25 = arith.constant 5.000000e-01 : f32
    %54 = vector.broadcast %cst_25 : f32 to vector<8x512xf32>
    %55 = arith.mulf %54, %53 : vector<8x512xf32>
    %cst_26 = arith.constant 0.707106769 : f32
    %56 = vector.broadcast %cst_26 : f32 to vector<8x512xf32>
    %57 = arith.mulf %53, %56 : vector<8x512xf32>
    %cst_27 = arith.constant 0.000000e+00 : f32
    %58 = vector.broadcast %cst_27 : f32 to vector<8x512xf32>
    %59 = arith.cmpf oge, %57, %58 : vector<8x512xf32>
    %cst_28 = arith.constant 1.000000e+00 : f32
    %cst_29 = arith.constant -1.000000e+00 : f32
    %60 = vector.broadcast %cst_28 : f32 to vector<8x512xf32>
    %61 = vector.broadcast %cst_29 : f32 to vector<8x512xf32>
    %62 = arith.select %59, %60, %61 : vector<8x512xi1>, vector<8x512xf32>
    %63 = math.absf %57 : vector<8x512xf32>
    %cst_30 = arith.constant 0.327591091 : f32
    %64 = vector.broadcast %cst_30 : f32 to vector<8x512xf32>
    %65 = arith.mulf %64, %63 : vector<8x512xf32>
    %cst_31 = arith.constant 1.000000e+00 : f32
    %66 = vector.broadcast %cst_31 : f32 to vector<8x512xf32>
    %67 = arith.addf %66, %65 : vector<8x512xf32>
    %68 = tpu.reciprocal %67 {approx = true} : vector<8x512xf32> -> vector<8x512xf32>
    %cst_32 = arith.constant 1.06140542 : f32
    %69 = vector.broadcast %cst_32 : f32 to vector<8x512xf32>
    %70 = arith.mulf %69, %68 : vector<8x512xf32>
    %cst_33 = arith.constant -1.45315206 : f32
    %71 = vector.broadcast %cst_33 : f32 to vector<8x512xf32>
    %72 = arith.addf %70, %71 : vector<8x512xf32>
    %73 = arith.mulf %72, %68 : vector<8x512xf32>
    %cst_34 = arith.constant 1.42141378 : f32
    %74 = vector.broadcast %cst_34 : f32 to vector<8x512xf32>
    %75 = arith.addf %73, %74 : vector<8x512xf32>
    %76 = arith.mulf %75, %68 : vector<8x512xf32>
    %cst_35 = arith.constant -0.284496725 : f32
    %77 = vector.broadcast %cst_35 : f32 to vector<8x512xf32>
    %78 = arith.addf %76, %77 : vector<8x512xf32>
    %79 = arith.mulf %78, %68 : vector<8x512xf32>
    %cst_36 = arith.constant 0.254829586 : f32
    %80 = vector.broadcast %cst_36 : f32 to vector<8x512xf32>
    %81 = arith.addf %79, %80 : vector<8x512xf32>
    %82 = arith.mulf %81, %68 : vector<8x512xf32>
    %cst_37 = arith.constant 0.000000e+00 : f32
    %83 = vector.broadcast %cst_37 : f32 to vector<8x512xf32>
    %84 = arith.subf %83, %63 : vector<8x512xf32>
    %85 = arith.mulf %84, %63 : vector<8x512xf32>
    %86 = math.exp %85 : vector<8x512xf32>
    %87 = arith.mulf %82, %86 : vector<8x512xf32>
    %cst_38 = arith.constant 1.000000e+00 : f32
    %88 = vector.broadcast %cst_38 : f32 to vector<8x512xf32>
    %89 = arith.subf %88, %87 : vector<8x512xf32>
    %90 = arith.mulf %62, %89 : vector<8x512xf32>
    %cst_39 = arith.constant 1.000000e+00 : f32
    %91 = vector.broadcast %cst_39 : f32 to vector<8x512xf32>
    %92 = arith.addf %91, %90 : vector<8x512xf32>
    %93 = arith.mulf %55, %92 : vector<8x512xf32>
    %94 = arith.truncf %93 : vector<8x512xf32> to vector<8x512xbf16>
    %c1_40 = arith.constant 1 : index
    %c0_41 = arith.constant 0 : index
    %c0_42 = arith.constant 0 : index
    %95 = vector.load %arg3[%c1_40, %c0_41, %c0_42] : memref<3x512x512xbf16, #tpu.memory_space<vmem>>, vector<1x512x512xbf16>
    %96 = vector.shape_cast %95 : vector<1x512x512xbf16> to vector<512x512xbf16>
    %cst_43 = arith.constant dense<0.000000e+00> : vector<8x512xf32>
    %97 = tpu.matmul %94, %96, %cst_43 {dimension_numbers = #tpu.dot_dimension_numbers<[1], [0], [0], [1], [0, 0, 1, 1], [], []>} : vector<8x512xbf16>, vector<512x512xbf16>, vector<8x512xf32> -> vector<8x512xf32>
    %c2 = arith.constant 2 : index
    %c0_44 = arith.constant 0 : index
    %98 = vector.load %arg4[%c2, %c0_44] : memref<4x512xf32, #tpu.memory_space<vmem>>, vector<1x512xf32>
    %99 = vector.broadcast %98 : vector<1x512xf32> to vector<8x512xf32>
    %100 = arith.addf %97, %99 : vector<8x512xf32>
    %cst_45 = arith.constant 5.000000e-01 : f32
    %101 = vector.broadcast %cst_45 : f32 to vector<8x512xf32>
    %102 = arith.mulf %101, %100 : vector<8x512xf32>
    %cst_46 = arith.constant 0.707106769 : f32
    %103 = vector.broadcast %cst_46 : f32 to vector<8x512xf32>
    %104 = arith.mulf %100, %103 : vector<8x512xf32>
    %cst_47 = arith.constant 0.000000e+00 : f32
    %105 = vector.broadcast %cst_47 : f32 to vector<8x512xf32>
    %106 = arith.cmpf oge, %104, %105 : vector<8x512xf32>
    %cst_48 = arith.constant 1.000000e+00 : f32
    %cst_49 = arith.constant -1.000000e+00 : f32
    %107 = vector.broadcast %cst_48 : f32 to vector<8x512xf32>
    %108 = vector.broadcast %cst_49 : f32 to vector<8x512xf32>
    %109 = arith.select %106, %107, %108 : vector<8x512xi1>, vector<8x512xf32>
    %110 = math.absf %104 : vector<8x512xf32>
    %cst_50 = arith.constant 0.327591091 : f32
    %111 = vector.broadcast %cst_50 : f32 to vector<8x512xf32>
    %112 = arith.mulf %111, %110 : vector<8x512xf32>
    %cst_51 = arith.constant 1.000000e+00 : f32
    %113 = vector.broadcast %cst_51 : f32 to vector<8x512xf32>
    %114 = arith.addf %113, %112 : vector<8x512xf32>
    %115 = tpu.reciprocal %114 {approx = true} : vector<8x512xf32> -> vector<8x512xf32>
    %cst_52 = arith.constant 1.06140542 : f32
    %116 = vector.broadcast %cst_52 : f32 to vector<8x512xf32>
    %117 = arith.mulf %116, %115 : vector<8x512xf32>
    %cst_53 = arith.constant -1.45315206 : f32
    %118 = vector.broadcast %cst_53 : f32 to vector<8x512xf32>
    %119 = arith.addf %117, %118 : vector<8x512xf32>
    %120 = arith.mulf %119, %115 : vector<8x512xf32>
    %cst_54 = arith.constant 1.42141378 : f32
    %121 = vector.broadcast %cst_54 : f32 to vector<8x512xf32>
    %122 = arith.addf %120, %121 : vector<8x512xf32>
    %123 = arith.mulf %122, %115 : vector<8x512xf32>
    %cst_55 = arith.constant -0.284496725 : f32
    %124 = vector.broadcast %cst_55 : f32 to vector<8x512xf32>
    %125 = arith.addf %123, %124 : vector<8x512xf32>
    %126 = arith.mulf %125, %115 : vector<8x512xf32>
    %cst_56 = arith.constant 0.254829586 : f32
    %127 = vector.broadcast %cst_56 : f32 to vector<8x512xf32>
    %128 = arith.addf %126, %127 : vector<8x512xf32>
    %129 = arith.mulf %128, %115 : vector<8x512xf32>
    %cst_57 = arith.constant 0.000000e+00 : f32
    %130 = vector.broadcast %cst_57 : f32 to vector<8x512xf32>
    %131 = arith.subf %130, %110 : vector<8x512xf32>
    %132 = arith.mulf %131, %110 : vector<8x512xf32>
    %133 = math.exp %132 : vector<8x512xf32>
    %134 = arith.mulf %129, %133 : vector<8x512xf32>
    %cst_58 = arith.constant 1.000000e+00 : f32
    %135 = vector.broadcast %cst_58 : f32 to vector<8x512xf32>
    %136 = arith.subf %135, %134 : vector<8x512xf32>
    %137 = arith.mulf %109, %136 : vector<8x512xf32>
    %cst_59 = arith.constant 1.000000e+00 : f32
    %138 = vector.broadcast %cst_59 : f32 to vector<8x512xf32>
    %139 = arith.addf %138, %137 : vector<8x512xf32>
    %140 = arith.mulf %102, %139 : vector<8x512xf32>
    %141 = arith.truncf %140 : vector<8x512xf32> to vector<8x512xbf16>
    %c2_60 = arith.constant 2 : index
    %c0_61 = arith.constant 0 : index
    %c0_62 = arith.constant 0 : index
    %142 = vector.load %arg3[%c2_60, %c0_61, %c0_62] : memref<3x512x512xbf16, #tpu.memory_space<vmem>>, vector<1x512x512xbf16>
    %143 = vector.shape_cast %142 : vector<1x512x512xbf16> to vector<512x512xbf16>
    %cst_63 = arith.constant dense<0.000000e+00> : vector<8x512xf32>
    %144 = tpu.matmul %141, %143, %cst_63 {dimension_numbers = #tpu.dot_dimension_numbers<[1], [0], [0], [1], [0, 0, 1, 1], [], []>} : vector<8x512xbf16>, vector<512x512xbf16>, vector<8x512xf32> -> vector<8x512xf32>
    %c3 = arith.constant 3 : index
    %c0_64 = arith.constant 0 : index
    %145 = vector.load %arg4[%c3, %c0_64] : memref<4x512xf32, #tpu.memory_space<vmem>>, vector<1x512xf32>
    %146 = vector.broadcast %145 : vector<1x512xf32> to vector<8x512xf32>
    %147 = arith.addf %144, %146 : vector<8x512xf32>
    %cst_65 = arith.constant 5.000000e-01 : f32
    %148 = vector.broadcast %cst_65 : f32 to vector<8x512xf32>
    %149 = arith.mulf %148, %147 : vector<8x512xf32>
    %cst_66 = arith.constant 0.707106769 : f32
    %150 = vector.broadcast %cst_66 : f32 to vector<8x512xf32>
    %151 = arith.mulf %147, %150 : vector<8x512xf32>
    %cst_67 = arith.constant 0.000000e+00 : f32
    %152 = vector.broadcast %cst_67 : f32 to vector<8x512xf32>
    %153 = arith.cmpf oge, %151, %152 : vector<8x512xf32>
    %cst_68 = arith.constant 1.000000e+00 : f32
    %cst_69 = arith.constant -1.000000e+00 : f32
    %154 = vector.broadcast %cst_68 : f32 to vector<8x512xf32>
    %155 = vector.broadcast %cst_69 : f32 to vector<8x512xf32>
    %156 = arith.select %153, %154, %155 : vector<8x512xi1>, vector<8x512xf32>
    %157 = math.absf %151 : vector<8x512xf32>
    %cst_70 = arith.constant 0.327591091 : f32
    %158 = vector.broadcast %cst_70 : f32 to vector<8x512xf32>
    %159 = arith.mulf %158, %157 : vector<8x512xf32>
    %cst_71 = arith.constant 1.000000e+00 : f32
    %160 = vector.broadcast %cst_71 : f32 to vector<8x512xf32>
    %161 = arith.addf %160, %159 : vector<8x512xf32>
    %162 = tpu.reciprocal %161 {approx = true} : vector<8x512xf32> -> vector<8x512xf32>
    %cst_72 = arith.constant 1.06140542 : f32
    %163 = vector.broadcast %cst_72 : f32 to vector<8x512xf32>
    %164 = arith.mulf %163, %162 : vector<8x512xf32>
    %cst_73 = arith.constant -1.45315206 : f32
    %165 = vector.broadcast %cst_73 : f32 to vector<8x512xf32>
    %166 = arith.addf %164, %165 : vector<8x512xf32>
    %167 = arith.mulf %166, %162 : vector<8x512xf32>
    %cst_74 = arith.constant 1.42141378 : f32
    %168 = vector.broadcast %cst_74 : f32 to vector<8x512xf32>
    %169 = arith.addf %167, %168 : vector<8x512xf32>
    %170 = arith.mulf %169, %162 : vector<8x512xf32>
    %cst_75 = arith.constant -0.284496725 : f32
    %171 = vector.broadcast %cst_75 : f32 to vector<8x512xf32>
    %172 = arith.addf %170, %171 : vector<8x512xf32>
    %173 = arith.mulf %172, %162 : vector<8x512xf32>
    %cst_76 = arith.constant 0.254829586 : f32
    %174 = vector.broadcast %cst_76 : f32 to vector<8x512xf32>
    %175 = arith.addf %173, %174 : vector<8x512xf32>
    %176 = arith.mulf %175, %162 : vector<8x512xf32>
    %cst_77 = arith.constant 0.000000e+00 : f32
    %177 = vector.broadcast %cst_77 : f32 to vector<8x512xf32>
    %178 = arith.subf %177, %157 : vector<8x512xf32>
    %179 = arith.mulf %178, %157 : vector<8x512xf32>
    %180 = math.exp %179 : vector<8x512xf32>
    %181 = arith.mulf %176, %180 : vector<8x512xf32>
    %cst_78 = arith.constant 1.000000e+00 : f32
    %182 = vector.broadcast %cst_78 : f32 to vector<8x512xf32>
    %183 = arith.subf %182, %181 : vector<8x512xf32>
    %184 = arith.mulf %156, %183 : vector<8x512xf32>
    %cst_79 = arith.constant 1.000000e+00 : f32
    %185 = vector.broadcast %cst_79 : f32 to vector<8x512xf32>
    %186 = arith.addf %185, %184 : vector<8x512xf32>
    %187 = arith.mulf %149, %186 : vector<8x512xf32>
    %188 = arith.truncf %187 : vector<8x512xf32> to vector<8x512xbf16>
    %c0_80 = arith.constant 0 : index
    %c0_81 = arith.constant 0 : index
    %189 = vector.load %arg5[%c0_80, %c0_81] : memref<512x256xbf16, #tpu.memory_space<vmem>>, vector<512x256xbf16>
    %cst_82 = arith.constant dense<0.000000e+00> : vector<8x256xf32>
    %190 = tpu.matmul %188, %189, %cst_82 {dimension_numbers = #tpu.dot_dimension_numbers<[1], [0], [0], [1], [0, 0, 1, 1], [], []>} : vector<8x512xbf16>, vector<512x256xbf16>, vector<8x256xf32> -> vector<8x256xf32>
    %c0_83 = arith.constant 0 : index
    %c0_84 = arith.constant 0 : index
    %191 = vector.load %arg6[%c0_83, %c0_84] : memref<1x256xf32, #tpu.memory_space<vmem>>, vector<1x256xf32>
    %192 = vector.broadcast %191 : vector<1x256xf32> to vector<8x256xf32>
    %193 = arith.addf %190, %192 : vector<8x256xf32>
    %cst_85 = arith.constant 5.000000e-01 : f32
    %194 = vector.broadcast %cst_85 : f32 to vector<8x256xf32>
    %195 = arith.mulf %194, %193 : vector<8x256xf32>
    %cst_86 = arith.constant 0.707106769 : f32
    %196 = vector.broadcast %cst_86 : f32 to vector<8x256xf32>
    %197 = arith.mulf %193, %196 : vector<8x256xf32>
    %cst_87 = arith.constant 0.000000e+00 : f32
    %198 = vector.broadcast %cst_87 : f32 to vector<8x256xf32>
    %199 = arith.cmpf oge, %197, %198 : vector<8x256xf32>
    %cst_88 = arith.constant 1.000000e+00 : f32
    %cst_89 = arith.constant -1.000000e+00 : f32
    %200 = vector.broadcast %cst_88 : f32 to vector<8x256xf32>
    %201 = vector.broadcast %cst_89 : f32 to vector<8x256xf32>
    %202 = arith.select %199, %200, %201 : vector<8x256xi1>, vector<8x256xf32>
    %203 = math.absf %197 : vector<8x256xf32>
    %cst_90 = arith.constant 0.327591091 : f32
    %204 = vector.broadcast %cst_90 : f32 to vector<8x256xf32>
    %205 = arith.mulf %204, %203 : vector<8x256xf32>
    %cst_91 = arith.constant 1.000000e+00 : f32
    %206 = vector.broadcast %cst_91 : f32 to vector<8x256xf32>
    %207 = arith.addf %206, %205 : vector<8x256xf32>
    %208 = tpu.reciprocal %207 {approx = true} : vector<8x256xf32> -> vector<8x256xf32>
    %cst_92 = arith.constant 1.06140542 : f32
    %209 = vector.broadcast %cst_92 : f32 to vector<8x256xf32>
    %210 = arith.mulf %209, %208 : vector<8x256xf32>
    %cst_93 = arith.constant -1.45315206 : f32
    %211 = vector.broadcast %cst_93 : f32 to vector<8x256xf32>
    %212 = arith.addf %210, %211 : vector<8x256xf32>
    %213 = arith.mulf %212, %208 : vector<8x256xf32>
    %cst_94 = arith.constant 1.42141378 : f32
    %214 = vector.broadcast %cst_94 : f32 to vector<8x256xf32>
    %215 = arith.addf %213, %214 : vector<8x256xf32>
    %216 = arith.mulf %215, %208 : vector<8x256xf32>
    %cst_95 = arith.constant -0.284496725 : f32
    %217 = vector.broadcast %cst_95 : f32 to vector<8x256xf32>
    %218 = arith.addf %216, %217 : vector<8x256xf32>
    %219 = arith.mulf %218, %208 : vector<8x256xf32>
    %cst_96 = arith.constant 0.254829586 : f32
    %220 = vector.broadcast %cst_96 : f32 to vector<8x256xf32>
    %221 = arith.addf %219, %220 : vector<8x256xf32>
    %222 = arith.mulf %221, %208 : vector<8x256xf32>
    %cst_97 = arith.constant 0.000000e+00 : f32
    %223 = vector.broadcast %cst_97 : f32 to vector<8x256xf32>
    %224 = arith.subf %223, %203 : vector<8x256xf32>
    %225 = arith.mulf %224, %203 : vector<8x256xf32>
    %226 = math.exp %225 : vector<8x256xf32>
    %227 = arith.mulf %222, %226 : vector<8x256xf32>
    %cst_98 = arith.constant 1.000000e+00 : f32
    %228 = vector.broadcast %cst_98 : f32 to vector<8x256xf32>
    %229 = arith.subf %228, %227 : vector<8x256xf32>
    %230 = arith.mulf %202, %229 : vector<8x256xf32>
    %cst_99 = arith.constant 1.000000e+00 : f32
    %231 = vector.broadcast %cst_99 : f32 to vector<8x256xf32>
    %232 = arith.addf %231, %230 : vector<8x256xf32>
    %233 = arith.mulf %195, %232 : vector<8x256xf32>
    %234 = arith.truncf %233 : vector<8x256xf32> to vector<8x256xbf16>
    %c0_100 = arith.constant 0 : index
    %c0_101 = arith.constant 0 : index
    %235 = vector.load %arg7[%c0_100, %c0_101] : memref<256x128xbf16, #tpu.memory_space<vmem>>, vector<256x128xbf16>
    %cst_102 = arith.constant dense<0.000000e+00> : vector<8x128xf32>
    %236 = tpu.matmul %234, %235, %cst_102 {dimension_numbers = #tpu.dot_dimension_numbers<[1], [0], [0], [1], [0, 0, 1, 1], [], []>} : vector<8x256xbf16>, vector<256x128xbf16>, vector<8x128xf32> -> vector<8x128xf32>
    %c0_103 = arith.constant 0 : index
    %c0_104 = arith.constant 0 : index
    %237 = vector.load %arg8[%c0_103, %c0_104] : memref<1x128xf32, #tpu.memory_space<vmem>>, vector<1x128xf32>
    %238 = vector.broadcast %237 : vector<1x128xf32> to vector<8x128xf32>
    %239 = arith.addf %236, %238 : vector<8x128xf32>
    %c0_105 = arith.constant 0 : index
    %c0_106 = arith.constant 0 : index
    %240 = vector.load %arg9[%c0_105, %c0_106] : memref<8x128xf32, #tpu.memory_space<vmem>>, vector<8x128xf32>
    tpu.vector_store %arg9[%c0_105, %c0_106], %239 {strides = array<i32>} : memref<8x128xf32, #tpu.memory_space<vmem>>, vector<8x128xf32>,
    return
  }
  func.func @transform_0(%arg0: i32) -> (i32, i32) {
    %c0_i32 = arith.constant 0 : i32
    %c0_i32_0 = arith.constant 0 : i32
    return %arg0, %c0_i32 : i32, i32
  }
  func.func @transform_1(%arg0: i32) -> (i32, i32) {
    %c0_i32 = arith.constant 0 : i32
    %c0_i32_0 = arith.constant 0 : i32
    %c0_i32_1 = arith.constant 0 : i32
    return %c0_i32, %c0_i32_0 : i32, i32
  }
  func.func @transform_2(%arg0: i32) -> (i32, i32, i32) {
    %c0_i32 = arith.constant 0 : i32
    %c0_i32_0 = arith.constant 0 : i32
    %c0_i32_1 = arith.constant 0 : i32
    %c0_i32_2 = arith.constant 0 : i32
    return %c0_i32, %c0_i32_0, %c0_i32_1 : i32, i32, i32
  }
  func.func @transform_3(%arg0: i32) -> (i32, i32) {
    %c0_i32 = arith.constant 0 : i32
    %c0_i32_0 = arith.constant 0 : i32
    %c0_i32_1 = arith.constant 0 : i32
    return %c0_i32, %c0_i32_0 : i32, i32
  }
  func.func @transform_4(%arg0: i32) -> (i32, i32) {
    %c0_i32 = arith.constant 0 : i32
    %c0_i32_0 = arith.constant 0 : i32
    %c0_i32_1 = arith.constant 0 : i32
    return %c0_i32, %c0_i32_0 : i32, i32
  }
  func.func @transform_5(%arg0: i32) -> (i32, i32) {
    %c0_i32 = arith.constant 0 : i32
    %c0_i32_0 = arith.constant 0 : i32
    %c0_i32_1 = arith.constant 0 : i32
    return %c0_i32, %c0_i32_0 : i32, i32
  }
  func.func @transform_6(%arg0: i32) -> (i32, i32) {
    %c0_i32 = arith.constant 0 : i32
    %c0_i32_0 = arith.constant 0 : i32
    %c0_i32_1 = arith.constant 0 : i32
    return %c0_i32, %c0_i32_0 : i32, i32
  }
  func.func @transform_7(%arg0: i32) -> (i32, i32) {
    %c0_i32 = arith.constant 0 : i32
    %c0_i32_0 = arith.constant 0 : i32
    %c0_i32_1 = arith.constant 0 : i32
    return %c0_i32, %c0_i32_0 : i32, i32
  }
  func.func @transform_8(%arg0: i32) -> (i32, i32) {
    %c0_i32 = arith.constant 0 : i32
    %c0_i32_0 = arith.constant 0 : i32
    return %arg0, %c0_i32 : i32, i32
  }
}

</mosaic_0001>

<bundles_post_ra>
// kernel: tpu_custom_call.1
= control target key start
LH: loop header
LB: loop body
LE: loop exit
PB: predicated region body
PF: predicated region fallthrough
CT: control target
= control target key end

     0   :  { %13 = vsyncpa [#allocation3], 0  ;;  %s6063_s0 = inlined_call_operand.hbm [shape: f32[8,32], index: 0, kind: input, shape index: {}]   ;;  %s6064_s1 = inlined_call_operand.hbm [shape: bf16[32,512], index: 1, kind: input, shape index: {}]   ;;  %s6065_s2 = inlined_call_operand.hbm [shape: bf16[3,512,512], index: 2, kind: input, shape index: {}]   ;;  %s6066_s3 = inlined_call_operand.hbm [shape: f32[4,512], index: 3, kind: input, shape index: {}]   ;;  %s6067_s4 = inlined_call_operand.hbm [shape: bf16[512,256], index: 4, kind: input, shape index: {}]   ;;  %s6068_s5 = inlined_call_operand.hbm [shape: f32[1,256], index: 5, kind: input, shape index: {}]   ;;  %s6069_s6 = inlined_call_operand.hbm [shape: bf16[256,128], index: 6, kind: input, shape index: {}]   ;;  %s6070_s7 = inlined_call_operand.hbm [shape: f32[1,128], index: 7, kind: input, shape index: {}]   ;;  %s6071_s8 = inlined_call_operand.hbm [shape: f32[8,128], index: 8, kind: output, shape index: {}]  }
   0x1   :  { %14 = vsyncpa [#allocation6], 0 }
   0x2   :  { %15 = vsyncpa [#allocation9], 0 }
   0x3   :  { %16 = vsyncpa [#allocation12], 0 }
   0x4   :  { %17 = vsyncpa [#allocation15], 0 }
   0x5   :  { %18 = vsyncpa [#allocation4], 0  ;;  %s5794_s27 = smov [#allocation5]  }
   0x6   :  { %s34_s28 = sshll.u32 %s5794_s27, 4  ;;  %s35_s28 = int_to_ptr.vmem [resolvable:$true] %s34_s28 }
   0x7   :  { %s5610_s29 = scalar_lea.vmem %s35_s28, 1024  ;;  %p5615_p1 = scmp.lt.s32.totalorder %s35_s28, %s35_s28 }
   0x8   :  { %p5611_p0 = scmp.ne.s32.totalorder %s35_s28, %s5610_s29  ;;  %p5616_p2 = scmp.lt.s32.totalorder %s5610_s29, %s5610_s29 }
   0xa   :  { %p5617_p3 = por %p5616_p2, %p5615_p1 }
   0xc   :  { %p5618_p4 = pnand %p5617_p3, %p5611_p0 }
   0xe   :  { %5621 = shalt.err (!%p5618_p4)
}
   0xf   :  { %s5795_s30 = smov 256   ;;  %s5796_s9 = smov 16  }
  0x10   :  { %40 = dma.hbm_to_vmem [thread:$0]  %s6064_s1, 1024, %s35_s28, [#allocation6], %s5795_s30, %s5795_s30, %s5796_s9  }
  0x11   :  { %s5797_s12 = smov [#allocation8]   ;;  %s5798_s14 = smov [#allocation11]  }
  0x12   :  { %s59_s13 = sshll.u32 %s5797_s12, 4  ;;  %s81_s15 = sshll.u32 %s5798_s14, 4  ;;  %s60_s13 = int_to_ptr.vmem [resolvable:$true] %s59_s13  ;;  %s82_s15 = int_to_ptr.vmem [resolvable:$true] %s81_s15 }
  0x13   :  { %s5630_s16 = scalar_lea.vmem %s60_s13, 256  ;;  %p5635_p6 = scmp.lt.s32.totalorder %s60_s13, %s60_s13 }
  0x14   :  { %p5631_p5 = scmp.ne.s32.totalorder %s60_s13, %s5630_s16  ;;  %p5636_p7 = scmp.lt.s32.totalorder %s5630_s16, %s5630_s16 }
  0x16   :  { %p5637_p8 = por %p5636_p7, %p5635_p6 }
  0x18   :  { %p5638_p9 = pnand %p5637_p8, %p5631_p5 }
  0x1a   :  { %5641 = shalt.err (!%p5638_p9)
}
  0x1b   :  { %62 = dma.hbm_to_vmem [thread:$0]  %s6066_s3, 256, %s60_s13, [#allocation9]  }
  0x1c   :  { %s5650_s19 = scalar_lea.vmem %s82_s15, 32  ;;  %p5655_p11 = scmp.lt.s32.totalorder %s82_s15, %s82_s15 }
  0x1d   :  { %p5651_p10 = scmp.ne.s32.totalorder %s82_s15, %s5650_s19  ;;  %p5656_p12 = scmp.lt.s32.totalorder %s5650_s19, %s5650_s19 }
  0x1f   :  { %p5657_p13 = por %p5656_p12, %p5655_p11 }
  0x21   :  { %p5658_p0 = pnand %p5657_p13, %p5651_p10 }
  0x23   :  { %5661 = shalt.err (!%p5658_p0)
}
  0x24   :  { %84 = dma.hbm_to_vmem [thread:$0]  %s6068_s5, 32, %s82_s15, [#allocation12]  }
  0x25   :  { %s5799_s21 = smov [#allocation2]   ;;  %s5800_s23 = smov [#allocation7]  }
  0x26   :  { %s25_s22 = sshll.u32 %s5799_s21, 4  ;;  %s46_s24 = sshll.u32 %s5800_s23, 4  ;;  %s26_s22 = int_to_ptr.vmem [resolvable:$true] %s25_s22  ;;  %s47_s24 = int_to_ptr.vmem [resolvable:$true] %s46_s24 }
  0x27   :  { %s5670_s25 = scalar_lea.vmem %s26_s22, 128  ;;  %p5675_p2 = scmp.lt.s32.totalorder %s26_s22, %s26_s22 }
  0x28   :  { %p5671_p1 = scmp.ne.s32.totalorder %s26_s22, %s5670_s25  ;;  %p5676_p3 = scmp.lt.s32.totalorder %s5670_s25, %s5670_s25 }
  0x2a   :  { %p5677_p4 = por %p5676_p3, %p5675_p2 }
  0x2c   :  { %p5678_p5 = pnand %p5677_p4, %p5671_p1 }
  0x2e   :  { %5681 = shalt.err (!%p5678_p5)
}
  0x2f   :  { %28 = dma.hbm_to_vmem [thread:$0]  %s6063_s0, 128, %s26_s22, [#allocation3]  }
  0x30   :  { %s5690_s27 = scalar_lea.vmem %s47_s24, 49152  ;;  %p5695_p7 = scmp.lt.s32.totalorder %s47_s24, %s47_s24 }
  0x31   :  { %p5691_p6 = scmp.ne.s32.totalorder %s47_s24, %s5690_s27  ;;  %p5696_p8 = scmp.lt.s32.totalorder %s5690_s27, %s5690_s27 }
  0x33   :  { %p5697_p9 = por %p5696_p8, %p5695_p7 }
  0x35   :  { %p5698_p10 = pnand %p5697_p9, %p5691_p6 }
  0x37   :  { %5701 = shalt.err (!%p5698_p10)
}
  0x38   :  { %52 = dma.hbm_to_vmem [thread:$0]  %s6065_s2, 49152, %s47_s24, [#allocation6], %s5795_s30, %s5795_s30, %s5796_s9  }
  0x39   :  { %s5801_s29 = smov [#allocation10]  }
  0x3a   :  { %s68_s10 = sshll.u32 %s5801_s29, 4  ;;  %s69_s10 = int_to_ptr.vmem [resolvable:$true] %s68_s10 }
  0x3b   :  { %s5710_s11 = scalar_lea.vmem %s69_s10, 8192  ;;  %p5715_p12 = scmp.lt.s32.totalorder %s69_s10, %s69_s10 }
  0x3c   :  { %p5711_p11 = scmp.ne.s32.totalorder %s69_s10, %s5710_s11  ;;  %p5716_p13 = scmp.lt.s32.totalorder %s5710_s11, %s5710_s11 }
  0x3e   :  { %p5717_p0 = por %p5716_p13, %p5715_p12 }
  0x40   :  { %p5718_p1 = pnand %p5717_p0, %p5711_p11 }
  0x42   :  { %5721 = shalt.err (!%p5718_p1)
}
  0x43   :  { %s5802_s0 = smov 128   ;;  %s5803_s12 = smov 8  }
  0x44   :  { %74 = dma.hbm_to_vmem [thread:$0]  %s6067_s4, 8192, %s69_s10, [#allocation9], %s5802_s0, %s5802_s0, %s5803_s12  }
  0x45   :  { %s5804_s15 = smov [#allocation13]  }
  0x46   :  { %s90_s16 = sshll.u32 %s5804_s15, 4  ;;  %s91_s16 = int_to_ptr.vmem [resolvable:$true] %s90_s16 }
  0x47   :  { %s5730_s2 = scalar_lea.vmem %s91_s16, 2048  ;;  %p5735_p3 = scmp.lt.s32.totalorder %s91_s16, %s91_s16 }
  0x48   :  { %p5731_p2 = scmp.ne.s32.totalorder %s91_s16, %s5730_s2  ;;  %p5736_p4 = scmp.lt.s32.totalorder %s5730_s2, %s5730_s2 }
  0x4a   :  { %p5737_p5 = por %p5736_p4, %p5735_p3 }
  0x4c   :  { %p5738_p6 = pnand %p5737_p5, %p5731_p2 }
  0x4e   :  { %5741 = shalt.err (!%p5738_p6)
}
  0x4f   :  { %s5805_s30 = smov 64   ;;  %s5806_s9 = smov 4  }
  0x50   :  { %96 = dma.hbm_to_vmem [thread:$0]  %s6069_s6, 2048, %s91_s16, [#allocation12], %s5805_s30, %s5805_s30, %s5806_s9  }
  0x51   :  { %s5807_s19 = smov [#allocation14]  }
  0x52   :  { %s103_s1 = sshll.u32 %s5807_s19, 4  ;;  %s104_s1 = int_to_ptr.vmem [resolvable:$true] %s103_s1 }
  0x53   :  { %s5750_s4 = scalar_lea.vmem %s104_s1, 16  ;;  %s5754_s20 = scalar_lea.vmem %s104_s1, 32 }
  0x54   :  { %p5751_p7 = scmp.ne.s32.totalorder %s104_s1, %s5750_s4  ;;  %p5755_p8 = scmp.lt.s32.totalorder %s104_s1, %s104_s1 }
  0x55   :  { %p5756_p9 = scmp.lt.s32.totalorder %s5754_s20, %s5750_s4 }
  0x57   :  { %p5757_p10 = por %p5756_p9, %p5755_p8 }
  0x59   :  { %p5758_p11 = pnand %p5757_p10, %p5751_p7 }
  0x5b   :  { %5761 = shalt.err (!%p5758_p11)
}
  0x5c   :  { %106 = dma.hbm_to_vmem [thread:$0]  %s6070_s7, 16, %s104_s1, [#allocation15]  }
  0x5d   :  { %5782 = dma.done.wait [#allocation3], 128  }
  0x5e   :  { %5783 = vsyncadd [#allocation3], 4294967168 }
  0x5f   :  { %5784 = dma.done.wait [#allocation6], 50176  }
  0x60   :  { %5785 = vsyncadd [#allocation6], 4294917120 }
  0x61   :  { %5786 = dma.done.wait [#allocation9], 8448  }
  0x62   :  { %5787 = vsyncadd [#allocation9], 4294958848 }
  0x63   :  { %5788 = dma.done.wait [#allocation12], 2080  }
  0x64   :  { %5789 = vsyncadd [#allocation12], 4294965216 }
  0x65   :  { %5790 = dma.done.wait [#allocation15], 16  }
  0x66   :  { %5791 = vsyncadd [#allocation15], 4294967280  ;;  %v5808_v0 = vmov 0   ;;  %v4830_v1 = vld [vmem:[#allocation5 + $0x24] ss:$16 sps:$4 sm:$0xff]   ;;  %v132_v5 = vld [vmem:[#allocation2] sm:$0xff] }
  0x67   :  { %240 = vmatprep.mubr.bf16.mxu1 %v5808_v0  ;;  %v4832_v2 = vld [vmem:[#allocation5 + $0x20] ss:$16 sps:$4 sm:$0xff]   ;;  %220 = vmatprep.subr.bf16.mxu1 %v4830_v1  ;;  %v4833_v3 = vld [vmem:[#allocation5 + $0x4] ss:$16 sps:$4 sm:$0xff]   ;;  %v4838_v6 = vld [vmem:[#allocation5 + $0x2c] ss:$16 sps:$4 sm:$0xff]   ;;  %v133_v8 = vpack.c.bf16 %v132_v5, %v132_v5 }
  0x68   :  { %v4835_v4 = vld [vmem:[#allocation5] ss:$16 sps:$4 sm:$0xff]   ;;  %221 = vmatpush1.bf16.msra.mxu1 %v4832_v2  ;;  %v4836_v7 = vld [vmem:[#allocation5 + $0x28] ss:$16 sps:$4 sm:$0xff]   ;;  %v4842_v9 = vld [vmem:[#allocation7 + $0xe4] ss:$16 sps:$4 sm:$0xff]  }
  0x69   :  { %222 = vmatprep.subr.bf16.mxu1 %v4833_v3  ;;  %v4844_v10 = vld [vmem:[#allocation7 + $0xe0] ss:$16 sps:$4 sm:$0xff]   ;;  %vm204_vm0 = vcmask 261120   ;;  %v4845_v11 = vld [vmem:[#allocation7 + $0xc4] ss:$16 sps:$4 sm:$0xff]   ;;  %1189 = vmatprep.subr.bf16.mxu0 %v4842_v9  ;;  %s5810_s6 = smov [#allocation16]  }
  0x6a   :  { %v4841_v12 = vld [vmem:[#allocation5 + $0xc] ss:$16 sps:$4 sm:$0xff]   ;;  %v4847_v13 = vld [vmem:[#allocation7 + $0xc0] ss:$16 sps:$4 sm:$0xff]   ;;  %v4839_v14 = vld [vmem:[#allocation5 + $0x8] ss:$16 sps:$4 sm:$0xff]   ;;  %1190 = vmatpush1.bf16.msra.mxu0 %v4844_v10 }
  0x6b   :  { %1191 = vmatprep.subr.bf16.mxu0 %v4845_v11  ;;  %v4848_v15 = vld [vmem:[#allocation7 + $0xa4] ss:$16 sps:$4 sm:$0xff]   ;;  %v4850_v17 = vld [vmem:[#allocation7 + $0x2e0] ss:$16 sps:$4 sm:$0xff]   ;;  %s4303_s7 = sshll.u32 %s5810_s6, 4  ;;  %s4304_s7 = int_to_ptr.vmem [resolvable:$true] %s4303_s7 }
  0x6c   :  { %223 = vmatpush1.bf16.msra.mxu1 %v4835_v4  ;;  %v4852_v16 = vld [vmem:[#allocation7 + $0x2e4] ss:$16 sps:$4 sm:$0xff]   ;;  %v4853_v18 = vld [vmem:[#allocation7 + $0xa0] ss:$16 sps:$4 sm:$0xff]   ;;  %s5762_s23 = scalar_lea.vmem %s4304_s7, 128  ;;  %p5767_p13 = scmp.lt.s32.totalorder %s4304_s7, %s4304_s7 }
  0x6d   :  { %261 = vmatprep.subr.bf16.mxu1 %v4838_v6  ;;  %v4854_v19 = vld [vmem:[#allocation7 + $0x84] ss:$16 sps:$4 sm:$0xff]   ;;  %v4856_v21 = vld [vmem:[#allocation7 + $0x2c0] ss:$16 sps:$4 sm:$0xff]   ;;  %p5763_p12 = scmp.ne.s32.totalorder %s4304_s7, %s5762_s23  ;;  %p5768_p0 = scmp.lt.s32.totalorder %s5762_s23, %s5762_s23 }
  0x6e   :  { %1192 = vmatpush1.bf16.msra.mxu0 %v4847_v13  ;;  %v4858_v20 = vld [vmem:[#allocation7 + $0x2c4] ss:$16 sps:$4 sm:$0xff]   ;;  %v4859_v22 = vld [vmem:[#allocation7 + $0x80] ss:$16 sps:$4 sm:$0xff]   ;;  %v144_v13 = vlaneseq }
  0x6f   :  { %4324 = vmatmul.mubr.msk.bf16.vlgmr.msra.gmra.mxu1 %vm204_vm0, %v133_v8  ;;  %1193 = vmatprep.subr.bf16.mxu0 %v4848_v15  ;;  %v4860_v23 = vld [vmem:[#allocation7 + $0x64] ss:$16 sps:$4 sm:$0xff]   ;;  %v4862_v25 = vld [vmem:[#allocation7 + $0x2a0] ss:$16 sps:$4 sm:$0xff]   ;;  %p5769_p1 = por %p5768_p0, %p5767_p13 }
  0x70   :  { %262 = vmatpush1.bf16.msra.mxu1 %v4836_v7  ;;  %281 = vmatprep.mubr.bf16.mxu1 %v5808_v0  ;;  %v4864_v24 = vld [vmem:[#allocation7 + $0x2a4] ss:$16 sps:$4 sm:$0xff]   ;;  %v4865_v26 = vld [vmem:[#allocation7 + $0x60] ss:$16 sps:$4 sm:$0xff]  }
  0x71   :  { %263 = vmatprep.subr.bf16.mxu1 %v4841_v12  ;;  %v4866_v27 = vld [vmem:[#allocation7 + $0x44] ss:$16 sps:$4 sm:$0xff]   ;;  %v4868_v29 = vld [vmem:[#allocation7 + $0x280] ss:$16 sps:$4 sm:$0xff]   ;;  %v4949_v12 = vld [vmem:[#allocation7 + $0x2ec] ss:$16 sps:$4 sm:$0xff]   ;;  %p5770_p2 = pnand %p5769_p1, %p5763_p12 }
  0x72   :  { %1194 = vmatpush1.bf16.msra.mxu0 %v4853_v18  ;;  %v4870_v28 = vld [vmem:[#allocation7 + $0x284] ss:$16 sps:$4 sm:$0xff]   ;;  %v4871_v30 = vld [vmem:[#allocation7 + $0x40] ss:$16 sps:$4 sm:$0xff]  }
  0x73   :  { %1195 = vmatprep.subr.bf16.mxu0 %v4854_v19  ;;  %v4872_v31 = vld [vmem:[#allocation7 + $0x24] ss:$16 sps:$4 sm:$0xff]   ;;  %v4874_v33 = vld [vmem:[#allocation7 + $0x260] ss:$16 sps:$4 sm:$0xff]  }
  0x74   :  { %264 = vmatpush1.bf16.msra.mxu1 %v4839_v14  ;;  %v4876_v32 = vld [vmem:[#allocation7 + $0x264] ss:$16 sps:$4 sm:$0xff]   ;;  %v4877_v34 = vld [vmem:[#allocation7 + $0x20] ss:$16 sps:$4 sm:$0xff]   ;;  %v145_v14 = vshrl.u32 %v144_v13, 7 }
  0x75   :  { %1230 = vmatprep.subr.bf16.mxu1 %v4852_v16  ;;  %v4878_v35 = vld [vmem:[#allocation7 + $0x4] ss:$16 sps:$4 sm:$0xff]   ;;  %v4880_v37 = vld [vmem:[#allocation7 + $0x240] ss:$16 sps:$4 sm:$0xff]  }
  0x76   :  { %1196 = vmatpush1.bf16.msra.mxu0 %v4859_v22  ;;  %v4882_v36 = vld [vmem:[#allocation7 + $0x244] ss:$16 sps:$4 sm:$0xff]   ;;  %v4883_v38 = vld [vmem:[#allocation7] ss:$16 sps:$4 sm:$0xff]   ;;  %v5886_v15 = vsub.s32 0, %v145_v14  ;;  %v5891_v19 = vsub.s32 2, %v145_v14 }
  0x77   :  { %4325 = vmatmul.mubr.msk.bf16.vlgmr.msra.gmra.mxu1 %vm204_vm0, %v133_v8  ;;  %1197 = vmatprep.subr.bf16.mxu0 %v4860_v23  ;;  %v4884_v39 = vld [vmem:[#allocation7 + $0x1e4] ss:$16 sps:$4 sm:$0xff]   ;;  %v4886_v41 = vld [vmem:[#allocation7 + $0x220] ss:$16 sps:$4 sm:$0xff]   ;;  %v4937_v8 = vld [vmem:[#allocation7 + $0xec] ss:$16 sps:$4 sm:$0xff]  }
  0x78   :  { %1231 = vmatpush1.bf16.msra.mxu1 %v4850_v17  ;;  %v4888_v40 = vld [vmem:[#allocation7 + $0x224] ss:$16 sps:$4 sm:$0xff]   ;;  %v4889_v42 = vld [vmem:[#allocation7 + $0x1e0] ss:$16 sps:$4 sm:$0xff]   ;;  %v5888_v17 = vsub.s32 1, %v145_v14 }
  0x79   :  { %1232 = vmatprep.subr.bf16.mxu1 %v4858_v20  ;;  %v4890_v43 = vld [vmem:[#allocation7 + $0x1c4] ss:$16 sps:$4 sm:$0xff]   ;;  %v4892_v45 = vld [vmem:[#allocation7 + $0x200] ss:$16 sps:$4 sm:$0xff]  }
  0x7a   :  { %1198 = vmatpush1.bf16.msra.mxu0 %v4865_v26  ;;  %v4894_v44 = vld [vmem:[#allocation7 + $0x204] ss:$16 sps:$4 sm:$0xff]   ;;  %v4895_v46 = vld [vmem:[#allocation7 + $0x1c0] ss:$16 sps:$4 sm:$0xff]  }
  0x7b   :  { %1199 = vmatprep.subr.bf16.mxu0 %v4866_v27  ;;  %v4896_v47 = vld [vmem:[#allocation7 + $0x1a4] ss:$16 sps:$4 sm:$0xff]   ;;  %v4898_v49 = vld [vmem:[#allocation7 + $0x3e0] ss:$16 sps:$4 sm:$0xff]   ;;  %v5901_v27 = vsub.s32 3, %v145_v14 }
  0x7c   :  { %1233 = vmatpush1.bf16.msra.mxu1 %v4856_v21  ;;  %v4900_v48 = vld [vmem:[#allocation7 + $0x3e4] ss:$16 sps:$4 sm:$0xff]   ;;  %v4901_v50 = vld [vmem:[#allocation7 + $0x1a0] ss:$16 sps:$4 sm:$0xff]  }
  0x7d   :  { %1234 = vmatprep.subr.bf16.mxu1 %v4864_v24  ;;  %v4902_v51 = vld [vmem:[#allocation7 + $0x184] ss:$16 sps:$4 sm:$0xff]   ;;  %v4904_v53 = vld [vmem:[#allocation7 + $0x3c0] ss:$16 sps:$4 sm:$0xff]  }
  0x7e   :  { %1200 = vmatpush1.bf16.msra.mxu0 %v4871_v30  ;;  %v4906_v52 = vld [vmem:[#allocation7 + $0x3c4] ss:$16 sps:$4 sm:$0xff]   ;;  %v4907_v54 = vld [vmem:[#allocation7 + $0x180] ss:$16 sps:$4 sm:$0xff]  }
  0x7f   :  { %1201 = vmatprep.subr.bf16.mxu0 %v4872_v31  ;;  %v4908_v55 = vld [vmem:[#allocation7 + $0x164] ss:$16 sps:$4 sm:$0xff]   ;;  %v4910_v57 = vld [vmem:[#allocation7 + $0x3a0] ss:$16 sps:$4 sm:$0xff]  }
  0x80   :  { %1235 = vmatpush1.bf16.msra.mxu1 %v4862_v25  ;;  %v4912_v56 = vld [vmem:[#allocation7 + $0x3a4] ss:$16 sps:$4 sm:$0xff]   ;;  %v4913_v58 = vld [vmem:[#allocation7 + $0x160] ss:$16 sps:$4 sm:$0xff]  }
  0x81   :  { %1236 = vmatprep.subr.bf16.mxu1 %v4870_v28  ;;  %v4914_v59 = vld [vmem:[#allocation7 + $0x144] ss:$16 sps:$4 sm:$0xff]   ;;  %v4916_v61 = vld [vmem:[#allocation7 + $0x380] ss:$16 sps:$4 sm:$0xff]  }
  0x82   :  { %1202 = vmatpush1.bf16.msra.mxu0 %v4877_v34  ;;  %v4918_v60 = vld [vmem:[#allocation7 + $0x384] ss:$16 sps:$4 sm:$0xff]   ;;  %v4919_v62 = vld [vmem:[#allocation7 + $0x140] ss:$16 sps:$4 sm:$0xff]  }
  0x83   :  { %1203 = vmatprep.subr.bf16.mxu0 %v4878_v35  ;;  %v4920_v63 = vld [vmem:[#allocation7 + $0x124] ss:$16 sps:$4 sm:$0xff]   ;;  %v4922_v1 = vld [vmem:[#allocation7 + $0x360] ss:$16 sps:$4 sm:$0xff]  }
  0x84   :  { %1237 = vmatpush1.bf16.msra.mxu1 %v4868_v29  ;;  %v4924_v0 = vld [vmem:[#allocation7 + $0x364] ss:$16 sps:$4 sm:$0xff]   ;;  %v4925_v2 = vld [vmem:[#allocation7 + $0x120] ss:$16 sps:$4 sm:$0xff]  }
  0x85   :  { %1238 = vmatprep.subr.bf16.mxu1 %v4876_v32  ;;  %v4926_v3 = vld [vmem:[#allocation7 + $0x104] ss:$16 sps:$4 sm:$0xff]   ;;  %v4928_v5 = vld [vmem:[#allocation7 + $0x340] ss:$16 sps:$4 sm:$0xff]  }
  0x86   :  { %1204 = vmatpush1.bf16.msra.mxu0 %v4883_v38  ;;  %v4930_v4 = vld [vmem:[#allocation7 + $0x344] ss:$16 sps:$4 sm:$0xff]   ;;  %v4931_v6 = vld [vmem:[#allocation7 + $0x100] ss:$16 sps:$4 sm:$0xff]  }
  0x87   :  { %1205 = vmatprep.subr.bf16.mxu0 %v4884_v39  ;;  %v4934_v7 = vld [vmem:[#allocation7 + $0x324] ss:$16 sps:$4 sm:$0xff]   ;;  %v4932_v9 = vld [vmem:[#allocation7 + $0x320] ss:$16 sps:$4 sm:$0xff]  }
  0x88   :  { %1239 = vmatpush1.bf16.msra.mxu1 %v4874_v33  ;;  %v4940_v10 = vld [vmem:[#allocation7 + $0x304] ss:$16 sps:$4 sm:$0xff]   ;;  %v4938_v11 = vld [vmem:[#allocation7 + $0x300] ss:$16 sps:$4 sm:$0xff]  }
  0x89   :  { %1240 = vmatprep.subr.bf16.mxu1 %v4882_v36  ;;  %v142_v16 = vld [vmem:[#allocation8] ss:$4 sm:$0xf] }
  0x8a   :  { %1206 = vmatpush2.bf16.msra.mxu0 %v4889_v42  ;;  %v147_v18 = vrot.slane %v142_v16, %v5886_v15  ;;  %v151_v20 = vrot.slane %v142_v16, %v5888_v17  ;;  %v155_v31 = vrot.slane %v142_v16, %v5891_v19  ;;  %v159_v35 = vrot.slane %v142_v16, %v5901_v27 }
  0x8b   :  { %1207 = vmatprep.subr.bf16.mxu0 %v4890_v43 }
  0x8c   :  { %1241 = vmatpush1.bf16.msra.mxu1 %v4880_v37 }
  0x8d   :  { %1242 = vmatprep.subr.bf16.mxu1 %v4888_v40 }
  0x8e   :  { %1208 = vmatpush2.bf16.msra.mxu0 %v4895_v46 }
  0x8f   :  { %1209 = vmatprep.subr.bf16.mxu0 %v4896_v47 }
  0x90   :  { %1243 = vmatpush1.bf16.msra.mxu1 %v4886_v41 }
  0x91   :  { %1244 = vmatprep.subr.bf16.mxu1 %v4894_v44 }
  0x92   :  { %1210 = vmatpush2.bf16.msra.mxu0 %v4901_v50 }
  0x93   :  { %1211 = vmatprep.subr.bf16.mxu0 %v4902_v51 }
  0x94   :  { %1245 = vmatpush1.bf16.msra.mxu1 %v4892_v45 }
  0x95   :  { %1246 = vmatprep.subr.bf16.mxu1 %v4900_v48 }
  0x96   :  { %1212 = vmatpush2.bf16.msra.mxu0 %v4907_v54 }
  0x97   :  { %1213 = vmatprep.subr.bf16.mxu0 %v4908_v55 }
  0x98   :  { %1247 = vmatpush2.bf16.msra.mxu1 %v4898_v49 }
  0x99   :  { %1248 = vmatprep.subr.bf16.mxu1 %v4906_v52 }
  0x9a   :  { %1214 = vmatpush2.bf16.msra.mxu0 %v4913_v58 }
  0x9b   :  { %1215 = vmatprep.subr.bf16.mxu0 %v4914_v59 }
  0x9c   :  { %1249 = vmatpush2.bf16.msra.mxu1 %v4904_v53 }
  0x9d   :  { %1250 = vmatprep.subr.bf16.mxu1 %v4912_v56 }
  0x9e   :  { %1216 = vmatpush2.bf16.msra.mxu0 %v4919_v62 }
  0x9f   :  { %1217 = vmatprep.subr.bf16.mxu0 %v4920_v63 }
  0xa0   :  { %1251 = vmatpush2.bf16.msra.mxu1 %v4910_v57 }
  0xa1   :  { %1252 = vmatprep.subr.bf16.mxu1 %v4918_v60 }
  0xa2   :  { %1218 = vmatpush2.bf16.msra.mxu0 %v4925_v2 }
  0xa3   :  { %1219 = vmatprep.subr.bf16.mxu0 %v4926_v3 }
  0xa4   :  { %1253 = vmatpush2.bf16.msra.mxu1 %v4916_v61 }
  0xa5   :  { %1254 = vmatprep.subr.bf16.mxu1 %v4924_v0 }
  0xa6   :  { %1220 = vmatpush2.bf16.msra.mxu0 %v4931_v6 }
  0xa7   :  { %1271 = vmatprep.subr.bf16.mxu0 %v4937_v8 }
  0xa8   :  { %1255 = vmatpush2.bf16.msra.mxu1 %v4922_v1 }
  0xa9   :  { %1256 = vmatprep.subr.bf16.mxu1 %v4930_v4 }
  0xac   :  { %1257 = vmatpush2.bf16.msra.mxu1 %v4928_v5 }
  0xad   :  { %1258 = vmatprep.subr.bf16.mxu1 %v4934_v7 }
  0xb0   :  { %1259 = vmatpush2.bf16.msra.mxu1 %v4932_v9 }
  0xb1   :  { %1260 = vmatprep.subr.bf16.mxu1 %v4940_v10 }
  0xb4   :  { %1261 = vmatpush2.bf16.msra.mxu1 %v4938_v11 }
  0xb5   :  { %1312 = vmatprep.subr.bf16.mxu1 %v4949_v12 }
 0x12f   :  { %v242_v21 = vpop.f32.mrf.mxu1 }
 0x130   :  { %v5894_v22 = vadd.f32 %v242_v21, %v147_v18 }
 0x131   :  { %v244_v23 = vpop.f32.mrf.mxu1 }
 0x132   :  { %v5897_v24 = vmul.f32 0.70710677, %v5894_v22  ;;  %v5899_v25 = vadd.f32 %v244_v23, %v151_v20 }
 0x133   :  { %v246_v26 = vpop.f32.mrf.mxu1 }
 0x134   :  { %v306_v28 = vand.u32 2147483647, %v5897_v24  ;;  %v5905_v29 = vmul.f32 0.70710677, %v5899_v25  ;;  %vm298_vm1 = vcmp.ge.f32.partialorder %v5897_v24, 0.0 }
 0x135   :  { %v247_v30 = vpop.f32.mrf.mxu1 }
 0x136   :  { %v310_v32 = vmul.f32 0.3275911, %v306_v28  ;;  %v307_v33 = vand.u32 2147483647, %v5905_v29  ;;  %v358_v48 = vsub.f32 0.0, %v306_v28  ;;  %vm299_vm2 = vcmp.ge.f32.partialorder %v5905_v29, 0.0 }
 0x137   :  { %v283_v34 = vpop.f32.mrf.mxu1 }
 0x138   :  { %v314_v36 = vadd.f32 1.0, %v310_v32  ;;  %v311_v37 = vmul.f32 0.3275911, %v307_v33  ;;  %v5910_v38 = vadd.f32 %v283_v34, %v155_v31  ;;  %v359_v52 = vsub.f32 0.0, %v307_v33 }
 0x139   :  { %v285_v39 = vpop.f32.mrf.mxu1  ;;  %v362_v53 = vmul.f32 %v358_v48, %v306_v28 }
 0x13a   :  { %5530 = vrcp.f32 %v314_v36  ;;  %v315_v40 = vadd.f32 1.0, %v311_v37  ;;  %v5913_v41 = vmul.f32 0.70710677, %v5910_v38  ;;  %v5915_v42 = vadd.f32 %v285_v39, %v159_v35 }
 0x13b   :  { %v287_v43 = vpop.f32.mrf.mxu1  ;;  %v363_v56 = vmul.f32 %v359_v52, %v307_v33  ;;  %v366_v58 = vmul.f32 1.442695, %v362_v53 }
 0x13c   :  { %5532 = vrcp.f32 %v315_v40  ;;  %v308_v44 = vand.u32 2147483647, %v5913_v41  ;;  %v5919_v46 = vmul.f32 0.70710677, %v5915_v42  ;;  %vm300_vm3 = vcmp.ge.f32.partialorder %v5913_v41, 0.0 }
 0x13d   :  { %v288_v45 = vpop.f32.mrf.mxu1  ;;  %v368_v62 = vmul.f32 1.442695, %v363_v56 }
 0x13e   :  { %v312_v47 = vmul.f32 0.3275911, %v308_v44  ;;  %v309_v49 = vand.u32 2147483647, %v5919_v46  ;;  %v360_v59 = vsub.f32 0.0, %v308_v44  ;;  %vm301_vm4 = vcmp.ge.f32.partialorder %v5919_v46, 0.0 }
 0x13f   :  { %v4941_v46 = vld [vmem:[#allocation7 + $0xc8] ss:$16 sps:$4 sm:$0xff]  }
 0x140   :  { %v316_v50 = vadd.f32 1.0, %v312_v47  ;;  %v313_v51 = vmul.f32 0.3275911, %v309_v49  ;;  %v361_v1 = vsub.f32 0.0, %v309_v49  ;;  %v364_v2 = vmul.f32 %v360_v59, %v308_v44 }
 0x142   :  { %5534 = vrcp.f32 %v316_v50  ;;  %v317_v54 = vadd.f32 1.0, %v313_v51  ;;  %v365_v8 = vmul.f32 %v361_v1, %v309_v49  ;;  %v370_v10 = vmul.f32 1.442695, %v364_v2 }
 0x143   :  { %v5809_v49 = vmov -1.0  }
 0x144   :  { %5536 = vrcp.f32 %v317_v54  ;;  %v372_v21 = vmul.f32 1.442695, %v365_v8  ;;  %v302_v50 = vsel %vm298_vm1, 1.0, %v5809_v49  ;;  %v303_v24 = vsel %vm299_vm2, 1.0, %v5809_v49 }
 0x145   :  { %5538 = vpow2.f32 %v366_v58  ;;  %v304_v8 = vsel %vm300_vm3, 1.0, %v5809_v49 }
 0x146   :  { %5540 = vpow2.f32 %v368_v62  ;;  %v290_v62 = vmul.f32 0.5, %v5894_v22  ;;  %v4935_v22 = vld [vmem:[#allocation7 + $0xe8] ss:$16 sps:$4 sm:$0xff]  }
 0x147   :  { %v5531_v55 = vpop.eup %5530  ;;  %5542 = vpow2.f32 %v370_v10 }
 0x148   :  { %v322_v57 = vmul.f32 1.0614054, %v5531_v55  ;;  %5544 = vpow2.f32 %v372_v21  ;;  %v4946_v21 = vld [vmem:[#allocation7 + $0xac] ss:$16 sps:$4 sm:$0xff]  }
 0x149   :  { %v5533_v60 = vpop.eup %5532 }
 0x14a   :  { %v326_v61 = vadd.f32 -1.4531521, %v322_v57  ;;  %v323_v63 = vmul.f32 1.0614054, %v5533_v60 }
 0x14c   :  { %v330_v0 = vmul.f32 %v5531_v55, %v326_v61  ;;  %v327_v3 = vadd.f32 -1.4531521, %v323_v63 }
 0x14e   :  { %v334_v4 = vadd.f32 1.4214138, %v330_v0  ;;  %v331_v5 = vmul.f32 %v5533_v60, %v327_v3  ;;  %v291_v0 = vmul.f32 0.5, %v5899_v25  ;;  %v4943_v25 = vld [vmem:[#allocation7 + $0xcc] ss:$16 sps:$4 sm:$0xff]  }
 0x14f   :  { %v5535_v6 = vpop.eup %5534 }
 0x150   :  { %v338_v7 = vmul.f32 %v5531_v55, %v334_v4  ;;  %v324_v9 = vmul.f32 1.0614054, %v5535_v6  ;;  %v335_v11 = vadd.f32 1.4214138, %v331_v5 }
 0x151   :  { %v5537_v13 = vpop.eup %5536 }
 0x152   :  { %v342_v12 = vadd.f32 -0.28449672, %v338_v7  ;;  %v328_v14 = vadd.f32 -1.4531521, %v324_v9  ;;  %v339_v16 = vmul.f32 %v5533_v60, %v335_v11  ;;  %v325_v20 = vmul.f32 1.0614054, %v5537_v13  ;;  %v5539_v35 = vpop.eup %5538 }
 0x153   :  { %v5541_v45 = vpop.eup %5540 }
 0x154   :  { %v346_v18 = vmul.f32 %v5531_v55, %v342_v12  ;;  %v332_v23 = vmul.f32 %v5535_v6, %v328_v14  ;;  %v343_v26 = vadd.f32 -0.28449672, %v339_v16  ;;  %v329_v30 = vadd.f32 -1.4531521, %v325_v20  ;;  %v5543_v61 = vpop.eup %5542 }
 0x155   :  { %v5545_v4 = vpop.eup %5544  ;;  %v305_v14 = vsel %vm301_vm4, 1.0, %v5809_v49  ;;  %v292_v16 = vmul.f32 0.5, %v5910_v38  ;;  %v4950_v38 = vld [vmem:[#allocation7 + $0x88] ss:$16 sps:$4 sm:$0xff]  }
 0x156   :  { %v350_v28 = vadd.f32 0.2548296, %v346_v18  ;;  %v336_v31 = vadd.f32 1.4214138, %v332_v23  ;;  %v347_v32 = vmul.f32 %v5533_v60, %v343_v26  ;;  %v333_v34 = vmul.f32 %v5537_v13, %v329_v30 }
 0x157   :  { %v293_v18 = vmul.f32 0.5, %v5915_v42  ;;  %v4953_v42 = vld [vmem:[#allocation7 + $0x2c8] ss:$16 sps:$4 sm:$0xff]  }
 0x158   :  { %v354_v33 = vmul.f32 %v5531_v55, %v350_v28  ;;  %v340_v36 = vmul.f32 %v5535_v6, %v336_v31  ;;  %v351_v37 = vadd.f32 0.2548296, %v347_v32  ;;  %v337_v40 = vadd.f32 1.4214138, %v333_v34  ;;  %v4944_v28 = vld [vmem:[#allocation7 + $0xa8] ss:$16 sps:$4 sm:$0xff]  }
 0x159   :  { %v4947_v31 = vld [vmem:[#allocation7 + $0x2e8] ss:$16 sps:$4 sm:$0xff]   ;;  %v4955_v34 = vld [vmem:[#allocation7 + $0x2cc] ss:$16 sps:$4 sm:$0xff]  }
 0x15a   :  { %v374_v39 = vmul.f32 %v5539_v35, %v354_v33  ;;  %v344_v43 = vadd.f32 -0.28449672, %v340_v36  ;;  %v355_v44 = vmul.f32 %v5533_v60, %v351_v37  ;;  %v341_v48 = vmul.f32 %v5537_v13, %v337_v40  ;;  %v4952_v33 = vld [vmem:[#allocation7 + $0x8c] ss:$16 sps:$4 sm:$0xff]   ;;  %v4956_v37 = vld [vmem:[#allocation7 + $0x68] ss:$16 sps:$4 sm:$0xff]  }
 0x15b   :  { %v4958_v35 = vld [vmem:[#allocation7 + $0x6c] ss:$16 sps:$4 sm:$0xff]  }
 0x15c   :  { %v378_v47 = vsub.f32 1.0, %v374_v39  ;;  %v348_v51 = vmul.f32 %v5535_v6, %v344_v43  ;;  %v375_v52 = vmul.f32 %v5541_v45, %v355_v44  ;;  %v345_v54 = vadd.f32 -0.28449672, %v341_v48  ;;  %v4961_v36 = vld [vmem:[#allocation7 + $0x2ac] ss:$16 sps:$4 sm:$0xff]  }
 0x15d   :  { %v4959_v39 = vld [vmem:[#allocation7 + $0x2a8] ss:$16 sps:$4 sm:$0xff]   ;;  %v4964_v40 = vld [vmem:[#allocation7 + $0x4c] ss:$16 sps:$4 sm:$0xff]  }
 0x15e   :  { %v382_v53 = vmul.f32 %v378_v47, %v302_v50  ;;  %v352_v55 = vadd.f32 0.2548296, %v348_v51  ;;  %v379_v56 = vsub.f32 1.0, %v375_v52  ;;  %v349_v57 = vmul.f32 %v5537_v13, %v345_v54  ;;  %v4967_v43 = vld [vmem:[#allocation7 + $0x28c] ss:$16 sps:$4 sm:$0xff]  }
 0x15f   :  { %v4962_v44 = vld [vmem:[#allocation7 + $0x48] ss:$16 sps:$4 sm:$0xff]   ;;  %v4970_v47 = vld [vmem:[#allocation7 + $0x2c] ss:$16 sps:$4 sm:$0xff]  }
 0x160   :  { %v386_v58 = vadd.f32 1.0, %v382_v53  ;;  %v356_v59 = vmul.f32 %v5535_v6, %v352_v55  ;;  %v383_v60 = vmul.f32 %v379_v56, %v303_v24  ;;  %v353_v63 = vadd.f32 0.2548296, %v349_v57  ;;  %v4965_v45 = vld [vmem:[#allocation7 + $0x288] ss:$16 sps:$4 sm:$0xff]  }
 0x161   :  { %v4973_v48 = vld [vmem:[#allocation7 + $0x26c] ss:$16 sps:$4 sm:$0xff]   ;;  %v4968_v50 = vld [vmem:[#allocation7 + $0x28] ss:$16 sps:$4 sm:$0xff]  }
 0x162   :  { %v376_v29 = vmul.f32 %v5543_v61, %v356_v59  ;;  %v387_v1 = vadd.f32 1.0, %v383_v60  ;;  %v357_v2 = vmul.f32 %v5537_v13, %v353_v63  ;;  %v390_v3 = vmul.f32 %v386_v58, %v290_v62  ;;  %v4971_v51 = vld [vmem:[#allocation7 + $0x268] ss:$16 sps:$4 sm:$0xff]   ;;  %v4976_v52 = vld [vmem:[#allocation7 + $0xc] ss:$16 sps:$4 sm:$0xff]  }
 0x163   :  { %v4979_v53 = vld [vmem:[#allocation7 + $0x24c] ss:$16 sps:$4 sm:$0xff]   ;;  %v4974_v54 = vld [vmem:[#allocation7 + $0x8] ss:$16 sps:$4 sm:$0xff]  }
 0x164   :  { %v380_v5 = vsub.f32 1.0, %v376_v29  ;;  %v391_v7 = vmul.f32 %v387_v1, %v291_v0  ;;  %v377_v6 = vmul.f32 %v5545_v4, %v357_v2  ;;  %v5931_v12 = vpack.c.bf16 %v390_v3, %v390_v3  ;;  %v4977_v55 = vld [vmem:[#allocation7 + $0x248] ss:$16 sps:$4 sm:$0xff]   ;;  %v4982_v56 = vld [vmem:[#allocation7 + $0x1ec] ss:$16 sps:$4 sm:$0xff]  }
 0x165   :  { %v4985_v57 = vld [vmem:[#allocation7 + $0x22c] ss:$16 sps:$4 sm:$0xff]   ;;  %v4980_v24 = vld [vmem:[#allocation7 + $0x1e8] ss:$16 sps:$4 sm:$0xff]  }
 0x166   :  { %v384_v9 = vmul.f32 %v380_v5, %v304_v8  ;;  %v395_v10 = vpack.c.bf16 %v391_v7, %v391_v7  ;;  %v381_v11 = vsub.f32 1.0, %v377_v6  ;;  %v4983_v58 = vld [vmem:[#allocation7 + $0x228] ss:$16 sps:$4 sm:$0xff]   ;;  %v4988_v59 = vld [vmem:[#allocation7 + $0x1cc] ss:$16 sps:$4 sm:$0xff]  }
 0x167   :  { %v4991_v60 = vld [vmem:[#allocation7 + $0x20c] ss:$16 sps:$4 sm:$0xff]   ;;  %v4986_v61 = vld [vmem:[#allocation7 + $0x1c8] ss:$16 sps:$4 sm:$0xff]  }
 0x168   :  { %v388_v41 = vadd.f32 1.0, %v384_v9  ;;  %1221 = vmatprep.mubr.bf16.mxu0 %v395_v10  ;;  %v385_v13 = vmul.f32 %v381_v11, %v305_v14  ;;  %v4989_v62 = vld [vmem:[#allocation7 + $0x208] ss:$16 sps:$4 sm:$0xff]   ;;  %v4994_v63 = vld [vmem:[#allocation7 + $0x1ac] ss:$16 sps:$4 sm:$0xff]  }
 0x169   :  { %1222 = vmatmul.mubr.bf16.vlgmr.msra.gmra.mxu0 %v5931_v12  ;;  %v4997_v0 = vld [vmem:[#allocation7 + $0x3ec] ss:$16 sps:$4 sm:$0xff]   ;;  %v4992_v29 = vld [vmem:[#allocation7 + $0x1a8] ss:$16 sps:$4 sm:$0xff]  }
 0x16a   :  { %1272 = vmatpush1.bf16.msra.mxu0 %v4935_v22  ;;  %1303 = vmatprep.mubr.bf16.mxu0 %v395_v10  ;;  %v389_v20 = vadd.f32 1.0, %v385_v13  ;;  %v392_v23 = vmul.f32 %v388_v41, %v292_v16  ;;  %v4995_v1 = vld [vmem:[#allocation7 + $0x3e8] ss:$16 sps:$4 sm:$0xff]   ;;  %v5000_v2 = vld [vmem:[#allocation7 + $0x18c] ss:$16 sps:$4 sm:$0xff]  }
 0x16b   :  { %1273 = vmatprep.subr.bf16.mxu0 %v4943_v25  ;;  %v5003_v3 = vld [vmem:[#allocation7 + $0x3cc] ss:$16 sps:$4 sm:$0xff]   ;;  %v4998_v4 = vld [vmem:[#allocation7 + $0x188] ss:$16 sps:$4 sm:$0xff]  }
 0x16c   :  { %v393_v26 = vmul.f32 %v389_v20, %v293_v18  ;;  %v5937_v32 = vpack.c.bf16 %v392_v23, %v392_v23  ;;  %v5001_v5 = vld [vmem:[#allocation7 + $0x3c8] ss:$16 sps:$4 sm:$0xff]   ;;  %v5006_v7 = vld [vmem:[#allocation7 + $0x16c] ss:$16 sps:$4 sm:$0xff]  }
 0x16d   :  { %v5009_v8 = vld [vmem:[#allocation7 + $0x3ac] ss:$16 sps:$4 sm:$0xff]   ;;  %v5004_v6 = vld [vmem:[#allocation7 + $0x168] ss:$16 sps:$4 sm:$0xff]  }
 0x16e   :  { %1274 = vmatpush1.bf16.msra.mxu0 %v4941_v46  ;;  %v397_v30 = vpack.c.bf16 %v393_v26, %v393_v26  ;;  %v5007_v9 = vld [vmem:[#allocation7 + $0x3a8] ss:$16 sps:$4 sm:$0xff]   ;;  %v5012_v10 = vld [vmem:[#allocation7 + $0x14c] ss:$16 sps:$4 sm:$0xff]  }
 0x16f   :  { %1275 = vmatprep.subr.bf16.mxu0 %v4946_v21  ;;  %v5015_v22 = vld [vmem:[#allocation7 + $0x38c] ss:$16 sps:$4 sm:$0xff]   ;;  %v5010_v11 = vld [vmem:[#allocation7 + $0x148] ss:$16 sps:$4 sm:$0xff]  }
 0x170   :  { %1262 = vmatprep.mubr.bf16.mxu1 %v397_v30  ;;  %v5013_v25 = vld [vmem:[#allocation7 + $0x388] ss:$16 sps:$4 sm:$0xff]   ;;  %v5018_v41 = vld [vmem:[#allocation7 + $0x12c] ss:$16 sps:$4 sm:$0xff]  }
 0x171   :  { %1263 = vmatmul.mubr.bf16.vlgmr.msra.gmra.mxu1 %v5937_v32  ;;  %v5021_v14 = vld [vmem:[#allocation7 + $0x36c] ss:$16 sps:$4 sm:$0xff]   ;;  %v5016_v13 = vld [vmem:[#allocation7 + $0x128] ss:$16 sps:$4 sm:$0xff]  }
 0x172   :  { %1276 = vmatpush1.bf16.msra.mxu0 %v4944_v28  ;;  %1313 = vmatpush1.bf16.msra.mxu1 %v4947_v31  ;;  %v5019_v16 = vld [vmem:[#allocation7 + $0x368] ss:$16 sps:$4 sm:$0xff]   ;;  %v5024_v46 = vld [vmem:[#allocation7 + $0x10c] ss:$16 sps:$4 sm:$0xff]   ;;  %v5036_v31 = vld [vmem:[#allocation7 + $0x4e4] ss:$16 sps:$4 sm:$0xff]  }
 0x173   :  { %1344 = vmatprep.mubr.bf16.mxu1 %v397_v30  ;;  %1277 = vmatprep.subr.bf16.mxu0 %v4952_v33  ;;  %v5027_v18 = vld [vmem:[#allocation7 + $0x34c] ss:$16 sps:$4 sm:$0xff]   ;;  %v5022_v20 = vld [vmem:[#allocation7 + $0x108] ss:$16 sps:$4 sm:$0xff]   ;;  %v5034_v30 = vld [vmem:[#allocation7 + $0x4e0] ss:$16 sps:$4 sm:$0xff]  }
 0x174   :  { %1314 = vmatprep.subr.bf16.mxu1 %v4955_v34  ;;  %v5025_v21 = vld [vmem:[#allocation7 + $0x348] ss:$16 sps:$4 sm:$0xff]   ;;  %v5030_v23 = vld [vmem:[#allocation7 + $0x32c] ss:$16 sps:$4 sm:$0xff]   ;;  %v5037_v34 = vld [vmem:[#allocation7 + $0x4c0] ss:$16 sps:$4 sm:$0xff]  }
 0x175   :  { %v5028_v26 = vld [vmem:[#allocation7 + $0x328] ss:$16 sps:$4 sm:$0xff]   ;;  %v5033_v28 = vld [vmem:[#allocation7 + $0x30c] ss:$16 sps:$4 sm:$0xff]  }
 0x176   :  { %1278 = vmatpush1.bf16.msra.mxu0 %v4950_v38  ;;  %1315 = vmatpush1.bf16.msra.mxu1 %v4953_v42  ;;  %v5031_v33 = vld [vmem:[#allocation7 + $0x308] ss:$16 sps:$4 sm:$0xff]   ;;  %v5039_v38 = vld [vmem:[#allocation7 + $0x4c4] ss:$16 sps:$4 sm:$0xff]  }
 0x177   :  { %1279 = vmatprep.subr.bf16.mxu0 %v4958_v35  ;;  %1316 = vmatprep.subr.bf16.mxu1 %v4961_v36  ;;  %v5042_v42 = vld [vmem:[#allocation7 + $0x4a4] ss:$16 sps:$4 sm:$0xff]   ;;  %v5040_v35 = vld [vmem:[#allocation7 + $0x4a0] ss:$16 sps:$4 sm:$0xff]  }
 0x178   :  { %v5045_v36 = vld [vmem:[#allocation7 + $0x484] ss:$16 sps:$4 sm:$0xff]  }
 0x17a   :  { %1280 = vmatpush1.bf16.msra.mxu0 %v4956_v37  ;;  %1317 = vmatpush1.bf16.msra.mxu1 %v4959_v39  ;;  %v5048_v37 = vld [vmem:[#allocation7 + $0x464] ss:$16 sps:$4 sm:$0xff]   ;;  %v5046_v39 = vld [vmem:[#allocation7 + $0x460] ss:$16 sps:$4 sm:$0xff]  }
 0x17b   :  { %1281 = vmatprep.subr.bf16.mxu0 %v4964_v40  ;;  %1318 = vmatprep.subr.bf16.mxu1 %v4967_v43  ;;  %v5051_v40 = vld [vmem:[#allocation7 + $0x444] ss:$16 sps:$4 sm:$0xff]   ;;  %v5049_v43 = vld [vmem:[#allocation7 + $0x440] ss:$16 sps:$4 sm:$0xff]  }
 0x17e   :  { %1282 = vmatpush1.bf16.msra.mxu0 %v4962_v44  ;;  %1319 = vmatpush1.bf16.msra.mxu1 %v4965_v45  ;;  %v5054_v44 = vld [vmem:[#allocation7 + $0x424] ss:$16 sps:$4 sm:$0xff]   ;;  %v5052_v45 = vld [vmem:[#allocation7 + $0x420] ss:$16 sps:$4 sm:$0xff]  }
 0x17f   :  { %1283 = vmatprep.subr.bf16.mxu0 %v4970_v47  ;;  %1320 = vmatprep.subr.bf16.mxu1 %v4973_v48  ;;  %v5055_v47 = vld [vmem:[#allocation7 + $0x400] ss:$16 sps:$4 sm:$0xff]   ;;  %v5060_v48 = vld [vmem:[#allocation7 + $0x5e4] ss:$16 sps:$4 sm:$0xff]  }
 0x182   :  { %1284 = vmatpush1.bf16.msra.mxu0 %v4968_v50  ;;  %1321 = vmatpush1.bf16.msra.mxu1 %v4971_v51  ;;  %v5058_v50 = vld [vmem:[#allocation7 + $0x5e0] ss:$16 sps:$4 sm:$0xff]   ;;  %v5063_v51 = vld [vmem:[#allocation7 + $0x5c4] ss:$16 sps:$4 sm:$0xff]  }
 0x183   :  { %1285 = vmatprep.subr.bf16.mxu0 %v4976_v52  ;;  %1322 = vmatprep.subr.bf16.mxu1 %v4979_v53  ;;  %v5061_v52 = vld [vmem:[#allocation7 + $0x5c0] ss:$16 sps:$4 sm:$0xff]   ;;  %v5066_v53 = vld [vmem:[#allocation7 + $0x5a4] ss:$16 sps:$4 sm:$0xff]  }
 0x186   :  { %1286 = vmatpush1.bf16.msra.mxu0 %v4974_v54  ;;  %1323 = vmatpush1.bf16.msra.mxu1 %v4977_v55  ;;  %v5064_v54 = vld [vmem:[#allocation7 + $0x5a0] ss:$16 sps:$4 sm:$0xff]   ;;  %v5069_v55 = vld [vmem:[#allocation7 + $0x584] ss:$16 sps:$4 sm:$0xff]  }
 0x187   :  { %1287 = vmatprep.subr.bf16.mxu0 %v4982_v56  ;;  %1324 = vmatprep.subr.bf16.mxu1 %v4985_v57  ;;  %v5067_v56 = vld [vmem:[#allocation7 + $0x580] ss:$16 sps:$4 sm:$0xff]   ;;  %v5072_v57 = vld [vmem:[#allocation7 + $0x564] ss:$16 sps:$4 sm:$0xff]  }
 0x18a   :  { %1288 = vmatpush2.bf16.msra.mxu0 %v4980_v24  ;;  %1325 = vmatpush1.bf16.msra.mxu1 %v4983_v58  ;;  %v5070_v24 = vld [vmem:[#allocation7 + $0x560] ss:$16 sps:$4 sm:$0xff]   ;;  %v5075_v58 = vld [vmem:[#allocation7 + $0x544] ss:$16 sps:$4 sm:$0xff]  }
 0x18b   :  { %1289 = vmatprep.subr.bf16.mxu0 %v4988_v59  ;;  %1326 = vmatprep.subr.bf16.mxu1 %v4991_v60  ;;  %v5073_v59 = vld [vmem:[#allocation7 + $0x540] ss:$16 sps:$4 sm:$0xff]   ;;  %v5078_v60 = vld [vmem:[#allocation7 + $0x524] ss:$16 sps:$4 sm:$0xff]  }
 0x18e   :  { %1290 = vmatpush2.bf16.msra.mxu0 %v4986_v61  ;;  %1327 = vmatpush1.bf16.msra.mxu1 %v4989_v62  ;;  %v5076_v61 = vld [vmem:[#allocation7 + $0x520] ss:$16 sps:$4 sm:$0xff]   ;;  %v5081_v62 = vld [vmem:[#allocation7 + $0x504] ss:$16 sps:$4 sm:$0xff]  }
 0x18f   :  { %1291 = vmatprep.subr.bf16.mxu0 %v4994_v63  ;;  %1328 = vmatprep.subr.bf16.mxu1 %v4997_v0  ;;  %v5079_v63 = vld [vmem:[#allocation7 + $0x500] ss:$16 sps:$4 sm:$0xff]   ;;  %v5084_v0 = vld [vmem:[#allocation7 + $0x6e4] ss:$16 sps:$4 sm:$0xff]  }
 0x192   :  { %1292 = vmatpush2.bf16.msra.mxu0 %v4992_v29  ;;  %1329 = vmatpush2.bf16.msra.mxu1 %v4995_v1  ;;  %v5082_v29 = vld [vmem:[#allocation7 + $0x6e0] ss:$16 sps:$4 sm:$0xff]   ;;  %v5087_v1 = vld [vmem:[#allocation7 + $0x4ec] ss:$16 sps:$4 sm:$0xff]  }
 0x193   :  { %1293 = vmatprep.subr.bf16.mxu0 %v5000_v2  ;;  %1330 = vmatprep.subr.bf16.mxu1 %v5003_v3  ;;  %v5088_v2 = vld [vmem:[#allocation7 + $0x6c0] ss:$16 sps:$4 sm:$0xff]   ;;  %v5090_v3 = vld [vmem:[#allocation7 + $0x6c4] ss:$16 sps:$4 sm:$0xff]  }
 0x196   :  { %1294 = vmatpush2.bf16.msra.mxu0 %v4998_v4  ;;  %1331 = vmatpush2.bf16.msra.mxu1 %v5001_v5  ;;  %v5096_v4 = vld [vmem:[#allocation7 + $0x6a4] ss:$16 sps:$4 sm:$0xff]   ;;  %v5094_v5 = vld [vmem:[#allocation7 + $0x6a0] ss:$16 sps:$4 sm:$0xff]  }
 0x197   :  { %1295 = vmatprep.subr.bf16.mxu0 %v5006_v7  ;;  %1332 = vmatprep.subr.bf16.mxu1 %v5009_v8  ;;  %v5102_v7 = vld [vmem:[#allocation7 + $0x684] ss:$16 sps:$4 sm:$0xff]   ;;  %v5100_v8 = vld [vmem:[#allocation7 + $0x680] ss:$16 sps:$4 sm:$0xff]  }
 0x19a   :  { %1296 = vmatpush2.bf16.msra.mxu0 %v5004_v6  ;;  %1333 = vmatpush2.bf16.msra.mxu1 %v5007_v9  ;;  %v5108_v6 = vld [vmem:[#allocation7 + $0x664] ss:$16 sps:$4 sm:$0xff]   ;;  %v5106_v9 = vld [vmem:[#allocation7 + $0x660] ss:$16 sps:$4 sm:$0xff]  }
 0x19b   :  { %1297 = vmatprep.subr.bf16.mxu0 %v5012_v10  ;;  %1334 = vmatprep.subr.bf16.mxu1 %v5015_v22  ;;  %v5114_v10 = vld [vmem:[#allocation7 + $0x644] ss:$16 sps:$4 sm:$0xff]   ;;  %v5112_v22 = vld [vmem:[#allocation7 + $0x640] ss:$16 sps:$4 sm:$0xff]  }
 0x19e   :  { %1298 = vmatpush2.bf16.msra.mxu0 %v5010_v11  ;;  %1335 = vmatpush2.bf16.msra.mxu1 %v5013_v25  ;;  %v5120_v11 = vld [vmem:[#allocation7 + $0x624] ss:$16 sps:$4 sm:$0xff]   ;;  %v5118_v25 = vld [vmem:[#allocation7 + $0x620] ss:$16 sps:$4 sm:$0xff]  }
 0x19f   :  { %1299 = vmatprep.subr.bf16.mxu0 %v5018_v41  ;;  %1336 = vmatprep.subr.bf16.mxu1 %v5021_v14  ;;  %v5126_v41 = vld [vmem:[#allocation7 + $0x604] ss:$16 sps:$4 sm:$0xff]   ;;  %v5124_v14 = vld [vmem:[#allocation7 + $0x600] ss:$16 sps:$4 sm:$0xff]  }
 0x1a2   :  { %1300 = vmatpush2.bf16.msra.mxu0 %v5016_v13  ;;  %1337 = vmatpush2.bf16.msra.mxu1 %v5019_v16  ;;  %v5132_v13 = vld [vmem:[#allocation7 + $0x7e4] ss:$16 sps:$4 sm:$0xff]   ;;  %v5130_v16 = vld [vmem:[#allocation7 + $0x7e0] ss:$16 sps:$4 sm:$0xff]  }
 0x1a3   :  { %1301 = vmatprep.subr.bf16.mxu0 %v5024_v46  ;;  %1338 = vmatprep.subr.bf16.mxu1 %v5027_v18  ;;  %v5138_v46 = vld [vmem:[#allocation7 + $0x7c4] ss:$16 sps:$4 sm:$0xff]   ;;  %v5136_v18 = vld [vmem:[#allocation7 + $0x7c0] ss:$16 sps:$4 sm:$0xff]  }
 0x1a6   :  { %1302 = vmatpush2.bf16.msra.mxu0 %v5022_v20  ;;  %1339 = vmatpush2.bf16.msra.mxu1 %v5025_v21  ;;  %v5144_v20 = vld [vmem:[#allocation7 + $0x7a4] ss:$16 sps:$4 sm:$0xff]   ;;  %v5142_v21 = vld [vmem:[#allocation7 + $0x7a0] ss:$16 sps:$4 sm:$0xff]  }
 0x1a7   :  { %1340 = vmatprep.subr.bf16.mxu1 %v5030_v23  ;;  %2253 = vmatprep.subr.bf16.mxu0 %v5036_v31  ;;  %v5150_v23 = vld [vmem:[#allocation7 + $0x784] ss:$16 sps:$4 sm:$0xff]  }
 0x1a8   :  { %v5162_v31 = vld [vmem:[#allocation7 + $0x744] ss:$16 sps:$4 sm:$0xff]  }
 0x1a9   :  { %1304 = vmatmul.mubr.bf16.vlgmr.msra.gmra.mxu0 %v5931_v12  ;;  %v5043_v12 = vld [vmem:[#allocation7 + $0x480] ss:$16 sps:$4 sm:$0xff]  }
 0x1aa   :  { %1341 = vmatpush2.bf16.msra.mxu1 %v5028_v26  ;;  %2254 = vmatpush1.bf16.msra.mxu0 %v5034_v30  ;;  %v5148_v26 = vld [vmem:[#allocation7 + $0x780] ss:$16 sps:$4 sm:$0xff]  }
 0x1ab   :  { %1342 = vmatprep.subr.bf16.mxu1 %v5033_v28  ;;  %2255 = vmatprep.subr.bf16.mxu0 %v5039_v38  ;;  %v5156_v28 = vld [vmem:[#allocation7 + $0x764] ss:$16 sps:$4 sm:$0xff]   ;;  %v5154_v30 = vld [vmem:[#allocation7 + $0x760] ss:$16 sps:$4 sm:$0xff]  }
 0x1ac   :  { %v5166_v38 = vld [vmem:[#allocation7 + $0x720] ss:$16 sps:$4 sm:$0xff]  }
 0x1ae   :  { %1343 = vmatpush2.bf16.msra.mxu1 %v5031_v33  ;;  %2256 = vmatpush1.bf16.msra.mxu0 %v5037_v34  ;;  %v5160_v33 = vld [vmem:[#allocation7 + $0x740] ss:$16 sps:$4 sm:$0xff]   ;;  %v5168_v34 = vld [vmem:[#allocation7 + $0x724] ss:$16 sps:$4 sm:$0xff]  }
 0x1af   :  { %2257 = vmatprep.subr.bf16.mxu0 %v5042_v42  ;;  %2294 = vmatprep.subr.bf16.mxu1 %v5084_v0  ;;  %v5174_v42 = vld [vmem:[#allocation7 + $0x704] ss:$16 sps:$4 sm:$0xff]  }
 0x1b1   :  { %1345 = vmatmul.mubr.bf16.vlgmr.msra.gmra.mxu1 %v5937_v32  ;;  %v5057_v32 = vld [vmem:[#allocation7 + $0x404] ss:$16 sps:$4 sm:$0xff]  }
 0x1b2   :  { %2258 = vmatpush1.bf16.msra.mxu0 %v5040_v35  ;;  %2295 = vmatpush1.bf16.msra.mxu1 %v5082_v29  ;;  %v5172_v35 = vld [vmem:[#allocation7 + $0x700] ss:$16 sps:$4 sm:$0xff]  }
 0x1b3   :  { %2259 = vmatprep.subr.bf16.mxu0 %v5045_v36  ;;  %2296 = vmatprep.subr.bf16.mxu1 %v5090_v3 }
 0x1b6   :  { %2260 = vmatpush1.bf16.msra.mxu0 %v5043_v12  ;;  %2297 = vmatpush1.bf16.msra.mxu1 %v5088_v2  ;;  %v5942_v12 = vld [vmem:[#allocation8 + $0x1] ss:$4 sm:$0xf] }
 0x1b7   :  { %2261 = vmatprep.subr.bf16.mxu0 %v5048_v37  ;;  %2298 = vmatprep.subr.bf16.mxu1 %v5096_v4  ;;  %v5180_v37 = vld [vmem:[#allocation7 + $0x6ec] ss:$16 sps:$4 sm:$0xff]  }
 0x1ba   :  { %2262 = vmatpush1.bf16.msra.mxu0 %v5046_v39  ;;  %2299 = vmatpush1.bf16.msra.mxu1 %v5094_v5 }
 0x1bb   :  { %2263 = vmatprep.subr.bf16.mxu0 %v5051_v40  ;;  %2300 = vmatprep.subr.bf16.mxu1 %v5102_v7  ;;  %v532_v40 = vrot.slane %v5942_v12, %v5886_v15 }
 0x1be   :  { %2264 = vmatpush1.bf16.msra.mxu0 %v5049_v43  ;;  %2301 = vmatpush1.bf16.msra.mxu1 %v5100_v8 }
 0x1bf   :  { %2265 = vmatprep.subr.bf16.mxu0 %v5054_v44  ;;  %2302 = vmatprep.subr.bf16.mxu1 %v5108_v6  ;;  %v536_v44 = vrot.slane %v5942_v12, %v5888_v17 }
 0x1c2   :  { %2266 = vmatpush1.bf16.msra.mxu0 %v5052_v45  ;;  %2303 = vmatpush1.bf16.msra.mxu1 %v5106_v9 }
 0x1c3   :  { %2267 = vmatprep.subr.bf16.mxu0 %v5057_v32  ;;  %2304 = vmatprep.subr.bf16.mxu1 %v5114_v10 }
 0x1c6   :  { %2268 = vmatpush1.bf16.msra.mxu0 %v5055_v47  ;;  %2305 = vmatpush1.bf16.msra.mxu1 %v5112_v22 }
 0x1c7   :  { %2269 = vmatprep.subr.bf16.mxu0 %v5060_v48  ;;  %2306 = vmatprep.subr.bf16.mxu1 %v5120_v11 }
 0x1ca   :  { %2270 = vmatpush2.bf16.msra.mxu0 %v5058_v50  ;;  %2307 = vmatpush1.bf16.msra.mxu1 %v5118_v25 }
 0x1cb   :  { %2271 = vmatprep.subr.bf16.mxu0 %v5063_v51  ;;  %2308 = vmatprep.subr.bf16.mxu1 %v5126_v41 }
 0x1ce   :  { %2272 = vmatpush2.bf16.msra.mxu0 %v5061_v52  ;;  %2309 = vmatpush1.bf16.msra.mxu1 %v5124_v14 }
 0x1cf   :  { %2273 = vmatprep.subr.bf16.mxu0 %v5066_v53  ;;  %2310 = vmatprep.subr.bf16.mxu1 %v5132_v13 }
 0x1d2   :  { %2274 = vmatpush2.bf16.msra.mxu0 %v5064_v54  ;;  %2311 = vmatpush2.bf16.msra.mxu1 %v5130_v16 }
 0x1d3   :  { %2275 = vmatprep.subr.bf16.mxu0 %v5069_v55  ;;  %2312 = vmatprep.subr.bf16.mxu1 %v5138_v46 }
 0x1d6   :  { %2276 = vmatpush2.bf16.msra.mxu0 %v5067_v56  ;;  %2313 = vmatpush2.bf16.msra.mxu1 %v5136_v18 }
 0x1d7   :  { %2277 = vmatprep.subr.bf16.mxu0 %v5072_v57  ;;  %2314 = vmatprep.subr.bf16.mxu1 %v5144_v20 }
 0x1da   :  { %2278 = vmatpush2.bf16.msra.mxu0 %v5070_v24  ;;  %2315 = vmatpush2.bf16.msra.mxu1 %v5142_v21 }
 0x1db   :  { %2279 = vmatprep.subr.bf16.mxu0 %v5075_v58  ;;  %2316 = vmatprep.subr.bf16.mxu1 %v5150_v23 }
 0x1de   :  { %2280 = vmatpush2.bf16.msra.mxu0 %v5073_v59  ;;  %2317 = vmatpush2.bf16.msra.mxu1 %v5148_v26 }
 0x1df   :  { %2281 = vmatprep.subr.bf16.mxu0 %v5078_v60  ;;  %2318 = vmatprep.subr.bf16.mxu1 %v5156_v28 }
 0x1e2   :  { %2282 = vmatpush2.bf16.msra.mxu0 %v5076_v61  ;;  %2319 = vmatpush2.bf16.msra.mxu1 %v5154_v30 }
 0x1e3   :  { %2283 = vmatprep.subr.bf16.mxu0 %v5081_v62  ;;  %2320 = vmatprep.subr.bf16.mxu1 %v5162_v31 }
 0x1e6   :  { %2284 = vmatpush2.bf16.msra.mxu0 %v5079_v63  ;;  %2321 = vmatpush2.bf16.msra.mxu1 %v5160_v33 }
 0x1e7   :  { %2335 = vmatprep.subr.bf16.mxu0 %v5087_v1  ;;  %2322 = vmatprep.subr.bf16.mxu1 %v5168_v34 }
 0x1ea   :  { %2323 = vmatpush2.bf16.msra.mxu1 %v5166_v38 }
 0x1eb   :  { %2324 = vmatprep.subr.bf16.mxu1 %v5174_v42 }
 0x1ee   :  { %2325 = vmatpush2.bf16.msra.mxu1 %v5172_v35 }
 0x1ef   :  { %2376 = vmatprep.subr.bf16.mxu1 %v5180_v37 }
 0x229   :  { %v1223_v36 = vpop.f32.mrf.mxu0 }
 0x22a   :  { %v1224_v32 = vadd.f32 %v1223_v36, %v532_v40 }
 0x22b   :  { %v1225_v39 = vpop.f32.mrf.mxu0 }
 0x22c   :  { %v1226_v48 = vadd.f32 %v1225_v39, %v536_v44 }
 0x22d   :  { %v1227_v43 = vpop.f32.mrf.mxu0 }
 0x22f   :  { %v1228_v45 = vpop.f32.mrf.mxu0 }
 0x231   :  { %v1264_v47 = vpop.f32.mrf.mxu1 }
 0x232   :  { %v1265_v50 = vadd.f32 %v1264_v47, %v1224_v32 }
 0x233   :  { %v1266_v51 = vpop.f32.mrf.mxu1 }
 0x234   :  { %v1357_v52 = vmul.f32 0.70710677, %v1265_v50  ;;  %v1267_v53 = vadd.f32 %v1266_v51, %v1226_v48  ;;  %v1353_v39 = vmul.f32 0.5, %v1265_v50  ;;  %v5085_v48 = vld [vmem:[#allocation7 + $0x4e8] ss:$16 sps:$4 sm:$0xff]  }
 0x235   :  { %v1268_v54 = vpop.f32.mrf.mxu1  ;;  %v5091_v50 = vld [vmem:[#allocation7 + $0x4c8] ss:$16 sps:$4 sm:$0xff]  }
 0x236   :  { %v1369_v55 = vand.u32 2147483647, %v1357_v52  ;;  %v1358_v56 = vmul.f32 0.70710677, %v1267_v53  ;;  %vm1361_vm5 = vcmp.ge.f32.partialorder %v1357_v52, 0.0  ;;  %v1354_v40 = vmul.f32 0.5, %v1267_v53 }
 0x237   :  { %v1269_v57 = vpop.f32.mrf.mxu1  ;;  %v1365_v33 = vsel %vm1361_vm5, 1.0, %v5809_v49  ;;  %v5093_v54 = vld [vmem:[#allocation7 + $0x4cc] ss:$16 sps:$4 sm:$0xff]   ;;  %v544_v53 = vrot.slane %v5942_v12, %v5901_v27 }
 0x238   :  { %v1373_v24 = vmul.f32 0.3275911, %v1369_v55  ;;  %v1370_v58 = vand.u32 2147483647, %v1358_v56  ;;  %v1421_v62 = vsub.f32 0.0, %v1369_v55  ;;  %vm1362_vm6 = vcmp.ge.f32.partialorder %v1358_v56, 0.0 }
 0x239   :  { %v1366_v36 = vsel %vm1362_vm6, 1.0, %v5809_v49 }
 0x23a   :  { %v1377_v59 = vadd.f32 1.0, %v1373_v24  ;;  %v1374_v60 = vmul.f32 0.3275911, %v1370_v58  ;;  %v1422_v63 = vsub.f32 0.0, %v1370_v58  ;;  %v1425_v0 = vmul.f32 %v1421_v62, %v1369_v55  ;;  %v5099_v24 = vld [vmem:[#allocation7 + $0x4ac] ss:$16 sps:$4 sm:$0xff]  }
 0x23b   :  { %v540_v55 = vrot.slane %v5942_v12, %v5891_v19 }
 0x23c   :  { %5546 = vrcp.f32 %v1377_v59  ;;  %v1378_v61 = vadd.f32 1.0, %v1374_v60  ;;  %v1426_v1 = vmul.f32 %v1422_v63, %v1370_v58  ;;  %v1429_v3 = vmul.f32 1.442695, %v1425_v0  ;;  %v5097_v60 = vld [vmem:[#allocation7 + $0x4a8] ss:$16 sps:$4 sm:$0xff]  }
 0x23d   :  { %v5105_v63 = vld [vmem:[#allocation7 + $0x48c] ss:$16 sps:$4 sm:$0xff]  }
 0x23e   :  { %5548 = vrcp.f32 %v1378_v61  ;;  %v1431_v8 = vmul.f32 1.442695, %v1426_v1 }
 0x23f   :  { %5550 = vpow2.f32 %v1429_v3 }
 0x240   :  { %5552 = vpow2.f32 %v1431_v8 }
 0x249   :  { %v5547_v29 = vpop.eup %5546 }
 0x24a   :  { %v1385_v2 = vmul.f32 1.0614054, %v5547_v29 }
 0x24b   :  { %v5549_v4 = vpop.eup %5548 }
 0x24c   :  { %v1389_v5 = vadd.f32 -1.4531521, %v1385_v2  ;;  %v1386_v7 = vmul.f32 1.0614054, %v5549_v4  ;;  %v5551_v21 = vpop.eup %5550  ;;  %v5103_v2 = vld [vmem:[#allocation7 + $0x488] ss:$16 sps:$4 sm:$0xff]  }
 0x24d   :  { %v5553_v30 = vpop.eup %5552 }
 0x24e   :  { %v1393_v6 = vmul.f32 %v5547_v29, %v1389_v5  ;;  %v1390_v9 = vadd.f32 -1.4531521, %v1386_v7  ;;  %v5111_v5 = vld [vmem:[#allocation7 + $0x46c] ss:$16 sps:$4 sm:$0xff]  }
 0x250   :  { %v1397_v10 = vadd.f32 1.4214138, %v1393_v6  ;;  %v1394_v22 = vmul.f32 %v5549_v4, %v1390_v9  ;;  %v5109_v9 = vld [vmem:[#allocation7 + $0x468] ss:$16 sps:$4 sm:$0xff]  }
 0x252   :  { %v1401_v11 = vmul.f32 %v5547_v29, %v1397_v10  ;;  %v1398_v25 = vadd.f32 1.4214138, %v1394_v22 }
 0x254   :  { %v1405_v41 = vadd.f32 -0.28449672, %v1401_v11  ;;  %v1402_v14 = vmul.f32 %v5549_v4, %v1398_v25  ;;  %v5117_v11 = vld [vmem:[#allocation7 + $0x44c] ss:$16 sps:$4 sm:$0xff]  }
 0x256   :  { %v1409_v13 = vmul.f32 %v5547_v29, %v1405_v41  ;;  %v1406_v16 = vadd.f32 -0.28449672, %v1402_v14  ;;  %v5115_v41 = vld [vmem:[#allocation7 + $0x448] ss:$16 sps:$4 sm:$0xff]   ;;  %v5123_v14 = vld [vmem:[#allocation7 + $0x42c] ss:$16 sps:$4 sm:$0xff]  }
 0x258   :  { %v1413_v46 = vadd.f32 0.2548296, %v1409_v13  ;;  %v1410_v18 = vmul.f32 %v5549_v4, %v1406_v16  ;;  %v5121_v13 = vld [vmem:[#allocation7 + $0x428] ss:$16 sps:$4 sm:$0xff]  }
 0x25a   :  { %v1417_v20 = vmul.f32 %v5547_v29, %v1413_v46  ;;  %v1414_v23 = vadd.f32 0.2548296, %v1410_v18  ;;  %v5129_v46 = vld [vmem:[#allocation7 + $0x40c] ss:$16 sps:$4 sm:$0xff]  }
 0x25c   :  { %v1437_v26 = vmul.f32 %v5551_v21, %v1417_v20  ;;  %v1418_v28 = vmul.f32 %v5549_v4, %v1414_v23  ;;  %v5127_v20 = vld [vmem:[#allocation7 + $0x408] ss:$16 sps:$4 sm:$0xff]   ;;  %v5135_v23 = vld [vmem:[#allocation7 + $0x5ec] ss:$16 sps:$4 sm:$0xff]  }
 0x25e   :  { %v1441_v31 = vsub.f32 1.0, %v1437_v26  ;;  %v1438_v34 = vmul.f32 %v5553_v30, %v1418_v28  ;;  %v5133_v30 = vld [vmem:[#allocation7 + $0x5e8] ss:$16 sps:$4 sm:$0xff]  }
 0x260   :  { %v1445_v38 = vmul.f32 %v1441_v31, %v1365_v33  ;;  %v1442_v42 = vsub.f32 1.0, %v1438_v34  ;;  %v5141_v34 = vld [vmem:[#allocation7 + $0x5cc] ss:$16 sps:$4 sm:$0xff]  }
 0x262   :  { %v1449_v35 = vadd.f32 1.0, %v1445_v38  ;;  %v1446_v37 = vmul.f32 %v1442_v42, %v1366_v36 }
 0x264   :  { %v1450_v43 = vadd.f32 1.0, %v1446_v37  ;;  %v1453_v44 = vmul.f32 %v1449_v35, %v1353_v39  ;;  %v5139_v37 = vld [vmem:[#allocation7 + $0x5c8] ss:$16 sps:$4 sm:$0xff]  }
 0x266   :  { %v1454_v45 = vmul.f32 %v1450_v43, %v1354_v40  ;;  %v5950_v51 = vpack.c.bf16 %v1453_v44, %v1453_v44  ;;  %v5147_v40 = vld [vmem:[#allocation7 + $0x5ac] ss:$16 sps:$4 sm:$0xff]  }
 0x268   :  { %v1458_v47 = vpack.c.bf16 %v1454_v45, %v1454_v45 }
 0x269   :  { %v1305_v32 = vpop.f32.mrf.mxu0 }
 0x26a   :  { %2285 = vmatprep.mubr.bf16.mxu0 %v1458_v47  ;;  %v1306_v58 = vadd.f32 %v1305_v32, %v540_v55  ;;  %v5145_v32 = vld [vmem:[#allocation7 + $0x5a8] ss:$16 sps:$4 sm:$0xff]  }
 0x26b   :  { %v1307_v52 = vpop.f32.mrf.mxu0  ;;  %2286 = vmatmul.mubr.bf16.vlgmr.msra.gmra.mxu0 %v5950_v51 }
 0x26c   :  { %2336 = vmatpush1.bf16.msra.mxu0 %v5085_v48  ;;  %2367 = vmatprep.mubr.bf16.mxu0 %v1458_v47  ;;  %v1308_v61 = vadd.f32 %v1307_v52, %v544_v53  ;;  %v5153_v48 = vld [vmem:[#allocation7 + $0x58c] ss:$16 sps:$4 sm:$0xff]  }
 0x26d   :  { %v1309_v56 = vpop.f32.mrf.mxu0  ;;  %2337 = vmatprep.subr.bf16.mxu0 %v5093_v54  ;;  %v5159_v53 = vld [vmem:[#allocation7 + $0x56c] ss:$16 sps:$4 sm:$0xff]  }
 0x26e   :  { %v5151_v56 = vld [vmem:[#allocation7 + $0x588] ss:$16 sps:$4 sm:$0xff]  }
 0x26f   :  { %v1310_v57 = vpop.f32.mrf.mxu0 }
 0x270   :  { %2338 = vmatpush1.bf16.msra.mxu0 %v5091_v50 }
 0x271   :  { %v1346_v59 = vpop.f32.mrf.mxu1  ;;  %2339 = vmatprep.subr.bf16.mxu0 %v5099_v24 }
 0x272   :  { %v5957_v62 = vadd.f32 %v1346_v59, %v1306_v58  ;;  %v5157_v59 = vld [vmem:[#allocation7 + $0x568] ss:$16 sps:$4 sm:$0xff]  }
 0x273   :  { %v1348_v0 = vpop.f32.mrf.mxu1 }
 0x274   :  { %v5960_v29 = vmul.f32 0.70710677, %v5957_v62  ;;  %v5962_v1 = vadd.f32 %v1348_v0, %v1308_v61  ;;  %2340 = vmatpush1.bf16.msra.mxu0 %v5097_v60  ;;  %v5165_v61 = vld [vmem:[#allocation7 + $0x54c] ss:$16 sps:$4 sm:$0xff]  }
 0x275   :  { %v1350_v12 = vpop.f32.mrf.mxu1  ;;  %2341 = vmatprep.subr.bf16.mxu0 %v5105_v63 }
 0x276   :  { %v1371_v3 = vand.u32 2147483647, %v5960_v29  ;;  %v5966_v4 = vmul.f32 0.70710677, %v5962_v1  ;;  %vm1363_vm7 = vcmp.ge.f32.partialorder %v5960_v29, 0.0 }
 0x277   :  { %v1351_v7 = vpop.f32.mrf.mxu1 }
 0x278   :  { %v1375_v8 = vmul.f32 0.3275911, %v1371_v3  ;;  %v1372_v6 = vand.u32 2147483647, %v5966_v4  ;;  %2342 = vmatpush1.bf16.msra.mxu0 %v5103_v2  ;;  %v1423_v16 = vsub.f32 0.0, %v1371_v3  ;;  %vm1364_vm8 = vcmp.ge.f32.partialorder %v5966_v4, 0.0 }
 0x279   :  { %2343 = vmatprep.subr.bf16.mxu0 %v5111_v5  ;;  %v1368_v29 = vsel %vm1364_vm8, 1.0, %v5809_v49 }
 0x27a   :  { %v1379_v10 = vadd.f32 1.0, %v1375_v8  ;;  %v1376_v22 = vmul.f32 0.3275911, %v1372_v6  ;;  %v1424_v18 = vsub.f32 0.0, %v1372_v6  ;;  %v1427_v21 = vmul.f32 %v1423_v16, %v1371_v3  ;;  %v5163_v3 = vld [vmem:[#allocation7 + $0x548] ss:$16 sps:$4 sm:$0xff]  }
 0x27b   :  { %v5171_v8 = vld [vmem:[#allocation7 + $0x52c] ss:$16 sps:$4 sm:$0xff]   ;;  %v1356_v16 = vmul.f32 0.5, %v5962_v1 }
 0x27c   :  { %5554 = vrcp.f32 %v1379_v10  ;;  %v1380_v25 = vadd.f32 1.0, %v1376_v22  ;;  %2344 = vmatpush1.bf16.msra.mxu0 %v5109_v9  ;;  %v1428_v28 = vmul.f32 %v1424_v18, %v1372_v6  ;;  %v1433_v33 = vmul.f32 1.442695, %v1427_v21  ;;  %v5186_v1 = vld [vmem:[#allocation7 + $0x6ac] ss:$16 sps:$4 sm:$0xff]  }
 0x27d   :  { %2345 = vmatprep.subr.bf16.mxu0 %v5117_v11  ;;  %v1367_v6 = vsel %vm1363_vm7, 1.0, %v5809_v49  ;;  %v5169_v11 = vld [vmem:[#allocation7 + $0x528] ss:$16 sps:$4 sm:$0xff]  }
 0x27e   :  { %5556 = vrcp.f32 %v1380_v25  ;;  %v1435_v36 = vmul.f32 1.442695, %v1428_v28  ;;  %v5183_v28 = vld [vmem:[#allocation7 + $0x6cc] ss:$16 sps:$4 sm:$0xff]  }
 0x27f   :  { %5558 = vpow2.f32 %v1433_v33  ;;  %v5226_v33 = vld [vmem:[#allocation7 + $0x8e0] ss:$16 sps:$4 sm:$0xff]  }
 0x280   :  { %2346 = vmatpush1.bf16.msra.mxu0 %v5115_v41  ;;  %5560 = vpow2.f32 %v1435_v36  ;;  %v5177_v41 = vld [vmem:[#allocation7 + $0x50c] ss:$16 sps:$4 sm:$0xff]  }
 0x281   :  { %2347 = vmatprep.subr.bf16.mxu0 %v5123_v14  ;;  %v5192_v36 = vld [vmem:[#allocation7 + $0x66c] ss:$16 sps:$4 sm:$0xff]  }
 0x284   :  { %2348 = vmatpush1.bf16.msra.mxu0 %v5121_v13  ;;  %v1355_v13 = vmul.f32 0.5, %v5957_v62  ;;  %v5181_v62 = vld [vmem:[#allocation7 + $0x6c8] ss:$16 sps:$4 sm:$0xff]  }
 0x285   :  { %2349 = vmatprep.subr.bf16.mxu0 %v5129_v46  ;;  %v5175_v46 = vld [vmem:[#allocation7 + $0x508] ss:$16 sps:$4 sm:$0xff]  }
 0x288   :  { %2350 = vmatpush1.bf16.msra.mxu0 %v5127_v20 }
 0x289   :  { %v5555_v26 = vpop.eup %5554  ;;  %2351 = vmatprep.subr.bf16.mxu0 %v5135_v23  ;;  %v5178_v23 = vld [vmem:[#allocation7 + $0x6e8] ss:$16 sps:$4 sm:$0xff]  }
 0x28a   :  { %v1387_v31 = vmul.f32 1.0614054, %v5555_v26 }
 0x28b   :  { %v5557_v38 = vpop.eup %5556 }
 0x28c   :  { %v1391_v42 = vadd.f32 -1.4531521, %v1387_v31  ;;  %v1388_v35 = vmul.f32 1.0614054, %v5557_v38  ;;  %2352 = vmatpush2.bf16.msra.mxu0 %v5133_v30  ;;  %v5559_v63 = vpop.eup %5558  ;;  %v5184_v30 = vld [vmem:[#allocation7 + $0x6a8] ss:$16 sps:$4 sm:$0xff]  }
 0x28d   :  { %2353 = vmatprep.subr.bf16.mxu0 %v5141_v34  ;;  %v5561_v5 = vpop.eup %5560  ;;  %v5189_v31 = vld [vmem:[#allocation7 + $0x68c] ss:$16 sps:$4 sm:$0xff]   ;;  %v5228_v34 = vld [vmem:[#allocation7 + $0x8e4] ss:$16 sps:$4 sm:$0xff]  }
 0x28e   :  { %v1395_v39 = vmul.f32 %v5555_v26, %v1391_v42  ;;  %v1392_v43 = vadd.f32 -1.4531521, %v1388_v35  ;;  %v5187_v42 = vld [vmem:[#allocation7 + $0x688] ss:$16 sps:$4 sm:$0xff]   ;;  %v5229_v35 = vld [vmem:[#allocation7 + $0x8c0] ss:$16 sps:$4 sm:$0xff]  }
 0x290   :  { %v1399_v44 = vadd.f32 1.4214138, %v1395_v39  ;;  %v1396_v45 = vmul.f32 %v5557_v38, %v1392_v43  ;;  %2354 = vmatpush2.bf16.msra.mxu0 %v5139_v37  ;;  %v5195_v37 = vld [vmem:[#allocation7 + $0x64c] ss:$16 sps:$4 sm:$0xff]   ;;  %v5193_v39 = vld [vmem:[#allocation7 + $0x648] ss:$16 sps:$4 sm:$0xff]  }
 0x291   :  { %2355 = vmatprep.subr.bf16.mxu0 %v5147_v40  ;;  %v5198_v40 = vld [vmem:[#allocation7 + $0x62c] ss:$16 sps:$4 sm:$0xff]   ;;  %v5196_v43 = vld [vmem:[#allocation7 + $0x628] ss:$16 sps:$4 sm:$0xff]  }
 0x292   :  { %v1403_v47 = vmul.f32 %v5555_v26, %v1399_v44  ;;  %v1400_v52 = vadd.f32 1.4214138, %v1396_v45  ;;  %v5201_v44 = vld [vmem:[#allocation7 + $0x60c] ss:$16 sps:$4 sm:$0xff]   ;;  %v5199_v45 = vld [vmem:[#allocation7 + $0x608] ss:$16 sps:$4 sm:$0xff]  }
 0x294   :  { %v1407_v54 = vadd.f32 -0.28449672, %v1403_v47  ;;  %v1404_v55 = vmul.f32 %v5557_v38, %v1400_v52  ;;  %2356 = vmatpush2.bf16.msra.mxu0 %v5145_v32  ;;  %v5204_v32 = vld [vmem:[#allocation7 + $0x7ec] ss:$16 sps:$4 sm:$0xff]   ;;  %v5202_v47 = vld [vmem:[#allocation7 + $0x7e8] ss:$16 sps:$4 sm:$0xff]  }
 0x295   :  { %2357 = vmatprep.subr.bf16.mxu0 %v5153_v48  ;;  %v5207_v48 = vld [vmem:[#allocation7 + $0x7cc] ss:$16 sps:$4 sm:$0xff]   ;;  %v5205_v52 = vld [vmem:[#allocation7 + $0x7c8] ss:$16 sps:$4 sm:$0xff]  }
 0x296   :  { %v1411_v50 = vmul.f32 %v5555_v26, %v1407_v54  ;;  %v1408_v57 = vadd.f32 -0.28449672, %v1404_v55  ;;  %v5210_v54 = vld [vmem:[#allocation7 + $0x7ac] ss:$16 sps:$4 sm:$0xff]   ;;  %v5208_v55 = vld [vmem:[#allocation7 + $0x7a8] ss:$16 sps:$4 sm:$0xff]  }
 0x298   :  { %v1415_v24 = vadd.f32 0.2548296, %v1411_v50  ;;  %v1412_v58 = vmul.f32 %v5557_v38, %v1408_v57  ;;  %2358 = vmatpush2.bf16.msra.mxu0 %v5151_v56  ;;  %v5213_v56 = vld [vmem:[#allocation7 + $0x78c] ss:$16 sps:$4 sm:$0xff]   ;;  %v5211_v50 = vld [vmem:[#allocation7 + $0x788] ss:$16 sps:$4 sm:$0xff]  }
 0x299   :  { %2359 = vmatprep.subr.bf16.mxu0 %v5159_v53  ;;  %v5216_v53 = vld [vmem:[#allocation7 + $0x76c] ss:$16 sps:$4 sm:$0xff]   ;;  %v5214_v57 = vld [vmem:[#allocation7 + $0x768] ss:$16 sps:$4 sm:$0xff]  }
 0x29a   :  { %v1419_v60 = vmul.f32 %v5555_v26, %v1415_v24  ;;  %v1416_v0 = vadd.f32 0.2548296, %v1412_v58  ;;  %v5219_v24 = vld [vmem:[#allocation7 + $0x74c] ss:$16 sps:$4 sm:$0xff]   ;;  %v5217_v58 = vld [vmem:[#allocation7 + $0x748] ss:$16 sps:$4 sm:$0xff]  }
 0x29c   :  { %v1439_v12 = vmul.f32 %v5559_v63, %v1419_v60  ;;  %v1420_v2 = vmul.f32 %v5557_v38, %v1416_v0  ;;  %2360 = vmatpush2.bf16.msra.mxu0 %v5157_v59  ;;  %v5231_v38 = vld [vmem:[#allocation7 + $0x8c4] ss:$16 sps:$4 sm:$0xff]   ;;  %v5222_v59 = vld [vmem:[#allocation7 + $0x72c] ss:$16 sps:$4 sm:$0xff]   ;;  %v5220_v60 = vld [vmem:[#allocation7 + $0x728] ss:$16 sps:$4 sm:$0xff]  }
 0x29d   :  { %2361 = vmatprep.subr.bf16.mxu0 %v5165_v61  ;;  %v5225_v61 = vld [vmem:[#allocation7 + $0x70c] ss:$16 sps:$4 sm:$0xff]   ;;  %v5223_v63 = vld [vmem:[#allocation7 + $0x708] ss:$16 sps:$4 sm:$0xff]   ;;  %v5234_v0 = vld [vmem:[#allocation7 + $0x8a4] ss:$16 sps:$4 sm:$0xff]  }
 0x29e   :  { %v1443_v7 = vsub.f32 1.0, %v1439_v12  ;;  %v1440_v9 = vmul.f32 %v5561_v5, %v1420_v2  ;;  %v5232_v12 = vld [vmem:[#allocation7 + $0x8a0] ss:$16 sps:$4 sm:$0xff]   ;;  %v5237_v2 = vld [vmem:[#allocation7 + $0x884] ss:$16 sps:$4 sm:$0xff]  }
 0x29f   :  { %v5240_v5 = vld [vmem:[#allocation7 + $0x864] ss:$16 sps:$4 sm:$0xff]  }
 0x2a0   :  { %v1447_v10 = vmul.f32 %v1443_v7, %v1367_v6  ;;  %v1444_v22 = vsub.f32 1.0, %v1440_v9  ;;  %2362 = vmatpush2.bf16.msra.mxu0 %v5163_v3  ;;  %v5235_v3 = vld [vmem:[#allocation7 + $0x880] ss:$16 sps:$4 sm:$0xff]   ;;  %v5246_v9 = vld [vmem:[#allocation7 + $0x824] ss:$16 sps:$4 sm:$0xff]  }
 0x2a1   :  { %2363 = vmatprep.subr.bf16.mxu0 %v5171_v8  ;;  %v5238_v7 = vld [vmem:[#allocation7 + $0x860] ss:$16 sps:$4 sm:$0xff]   ;;  %v5243_v8 = vld [vmem:[#allocation7 + $0x844] ss:$16 sps:$4 sm:$0xff]  }
 0x2a2   :  { %v1451_v25 = vadd.f32 1.0, %v1447_v10  ;;  %v1448_v14 = vmul.f32 %v1444_v22, %v1368_v29  ;;  %v5241_v6 = vld [vmem:[#allocation7 + $0x840] ss:$16 sps:$4 sm:$0xff]   ;;  %v5249_v22 = vld [vmem:[#allocation7 + $0x804] ss:$16 sps:$4 sm:$0xff]  }
 0x2a3   :  { %v5244_v10 = vld [vmem:[#allocation7 + $0x820] ss:$16 sps:$4 sm:$0xff]  }
 0x2a4   :  { %2364 = vmatpush2.bf16.msra.mxu0 %v5169_v11  ;;  %v1452_v18 = vadd.f32 1.0, %v1448_v14  ;;  %v1455_v20 = vmul.f32 %v1451_v25, %v1355_v13  ;;  %v5247_v11 = vld [vmem:[#allocation7 + $0x800] ss:$16 sps:$4 sm:$0xff]   ;;  %v5252_v25 = vld [vmem:[#allocation7 + $0x9e4] ss:$16 sps:$4 sm:$0xff]  }
 0x2a5   :  { %2365 = vmatprep.subr.bf16.mxu0 %v5177_v41  ;;  %v5250_v29 = vld [vmem:[#allocation7 + $0x9e0] ss:$16 sps:$4 sm:$0xff]   ;;  %v5255_v41 = vld [vmem:[#allocation7 + $0x9c4] ss:$16 sps:$4 sm:$0xff]  }
 0x2a6   :  { %v1456_v4 = vmul.f32 %v1452_v18, %v1356_v16  ;;  %v5975_v26 = vpack.c.bf16 %v1455_v20, %v1455_v20  ;;  %v5253_v14 = vld [vmem:[#allocation7 + $0x9c0] ss:$16 sps:$4 sm:$0xff]   ;;  %v5258_v13 = vld [vmem:[#allocation7 + $0x9a4] ss:$16 sps:$4 sm:$0xff]  }
 0x2a7   :  { %v5256_v16 = vld [vmem:[#allocation7 + $0x9a0] ss:$16 sps:$4 sm:$0xff]   ;;  %v5264_v20 = vld [vmem:[#allocation7 + $0x964] ss:$16 sps:$4 sm:$0xff]  }
 0x2a8   :  { %2366 = vmatpush2.bf16.msra.mxu0 %v5175_v46  ;;  %v1460_v21 = vpack.c.bf16 %v1456_v4, %v1456_v4  ;;  %v5261_v46 = vld [vmem:[#allocation7 + $0x984] ss:$16 sps:$4 sm:$0xff]   ;;  %v5259_v18 = vld [vmem:[#allocation7 + $0x980] ss:$16 sps:$4 sm:$0xff]  }
 0x2a9   :  { %3317 = vmatprep.subr.bf16.mxu0 %v5228_v34  ;;  %v5262_v4 = vld [vmem:[#allocation7 + $0x960] ss:$16 sps:$4 sm:$0xff]  }
 0x2aa   :  { %2326 = vmatprep.mubr.bf16.mxu1 %v1460_v21  ;;  %v5280_v34 = vld [vmem:[#allocation7 + $0xac0] ss:$16 sps:$4 sm:$0xff]  }
 0x2ab   :  { %2327 = vmatmul.mubr.bf16.vlgmr.msra.gmra.mxu1 %v5975_v26  ;;  %2368 = vmatmul.mubr.bf16.vlgmr.msra.gmra.mxu0 %v5950_v51  ;;  %v5190_v51 = vld [vmem:[#allocation7 + $0x668] ss:$16 sps:$4 sm:$0xff]  }
 0x2ac   :  { %2377 = vmatpush1.bf16.msra.mxu1 %v5178_v23  ;;  %2408 = vmatprep.mubr.bf16.mxu1 %v1460_v21  ;;  %v5267_v21 = vld [vmem:[#allocation7 + $0x944] ss:$16 sps:$4 sm:$0xff]   ;;  %v5265_v23 = vld [vmem:[#allocation7 + $0x940] ss:$16 sps:$4 sm:$0xff]  }
 0x2ad   :  { %2378 = vmatprep.subr.bf16.mxu1 %v5183_v28  ;;  %3318 = vmatpush1.bf16.msra.mxu0 %v5226_v33  ;;  %v5268_v28 = vld [vmem:[#allocation7 + $0x920] ss:$16 sps:$4 sm:$0xff]   ;;  %v5279_v33 = vld [vmem:[#allocation7 + $0x8ec] ss:$16 sps:$4 sm:$0xff]  }
 0x2ae   :  { %3319 = vmatprep.subr.bf16.mxu0 %v5231_v38  ;;  %v5282_v38 = vld [vmem:[#allocation7 + $0xac4] ss:$16 sps:$4 sm:$0xff]  }
 0x2b0   :  { %2379 = vmatpush1.bf16.msra.mxu1 %v5181_v62  ;;  %v5273_v62 = vld [vmem:[#allocation7 + $0x904] ss:$16 sps:$4 sm:$0xff]  }
 0x2b1   :  { %2380 = vmatprep.subr.bf16.mxu1 %v5186_v1  ;;  %3320 = vmatpush1.bf16.msra.mxu0 %v5229_v35  ;;  %v5271_v1 = vld [vmem:[#allocation7 + $0x900] ss:$16 sps:$4 sm:$0xff]   ;;  %v5288_v35 = vld [vmem:[#allocation7 + $0xaa4] ss:$16 sps:$4 sm:$0xff]  }
 0x2b2   :  { %3321 = vmatprep.subr.bf16.mxu0 %v5234_v0  ;;  %v5354_v0 = vld [vmem:[#allocation7 + $0xb44] ss:$16 sps:$4 sm:$0xff]  }
 0x2b4   :  { %2381 = vmatpush1.bf16.msra.mxu1 %v5184_v30  ;;  %v5274_v30 = vld [vmem:[#allocation7 + $0xae0] ss:$16 sps:$4 sm:$0xff]  }
 0x2b5   :  { %2382 = vmatprep.subr.bf16.mxu1 %v5189_v31  ;;  %3322 = vmatpush1.bf16.msra.mxu0 %v5232_v12  ;;  %v5276_v31 = vld [vmem:[#allocation7 + $0xae4] ss:$16 sps:$4 sm:$0xff]   ;;  %v5352_v12 = vld [vmem:[#allocation7 + $0xb40] ss:$16 sps:$4 sm:$0xff]  }
 0x2b6   :  { %3323 = vmatprep.subr.bf16.mxu0 %v5237_v2  ;;  %v5360_v2 = vld [vmem:[#allocation7 + $0xb24] ss:$16 sps:$4 sm:$0xff]  }
 0x2b8   :  { %2383 = vmatpush1.bf16.msra.mxu1 %v5187_v42 }
 0x2b9   :  { %2384 = vmatprep.subr.bf16.mxu1 %v5192_v36  ;;  %3324 = vmatpush1.bf16.msra.mxu0 %v5235_v3  ;;  %v5286_v36 = vld [vmem:[#allocation7 + $0xaa0] ss:$16 sps:$4 sm:$0xff]  }
 0x2ba   :  { %3325 = vmatprep.subr.bf16.mxu0 %v5240_v5  ;;  %v5358_v3 = vld [vmem:[#allocation7 + $0xb20] ss:$16 sps:$4 sm:$0xff]   ;;  %v5366_v5 = vld [vmem:[#allocation7 + $0xb04] ss:$16 sps:$4 sm:$0xff]  }
 0x2bc   :  { %2385 = vmatpush1.bf16.msra.mxu1 %v5190_v51 }
 0x2bd   :  { %2386 = vmatprep.subr.bf16.mxu1 %v5195_v37  ;;  %3326 = vmatpush1.bf16.msra.mxu0 %v5238_v7  ;;  %v5364_v7 = vld [vmem:[#allocation7 + $0xb00] ss:$16 sps:$4 sm:$0xff]  }
 0x2be   :  { %3327 = vmatprep.subr.bf16.mxu0 %v5243_v8  ;;  %v5984_v8 = vld [vmem:[#allocation8 + $0x2] ss:$4 sm:$0xf] }
 0x2c0   :  { %2387 = vmatpush1.bf16.msra.mxu1 %v5193_v39  ;;  %v5294_v39 = vld [vmem:[#allocation7 + $0xa84] ss:$16 sps:$4 sm:$0xff]  }
 0x2c1   :  { %2388 = vmatprep.subr.bf16.mxu1 %v5198_v40  ;;  %3328 = vmatpush1.bf16.msra.mxu0 %v5241_v6  ;;  %v5292_v40 = vld [vmem:[#allocation7 + $0xa80] ss:$16 sps:$4 sm:$0xff]   ;;  %v5372_v6 = vld [vmem:[#allocation7 + $0xaec] ss:$16 sps:$4 sm:$0xff]  }
 0x2c2   :  { %3329 = vmatprep.subr.bf16.mxu0 %v5246_v9  ;;  %v1596_v9 = vrot.slane %v5984_v8, %v5886_v15 }
 0x2c4   :  { %2389 = vmatpush1.bf16.msra.mxu1 %v5196_v43 }
 0x2c5   :  { %2390 = vmatprep.subr.bf16.mxu1 %v5201_v44  ;;  %3330 = vmatpush1.bf16.msra.mxu0 %v5244_v10  ;;  %v5300_v44 = vld [vmem:[#allocation7 + $0xa64] ss:$16 sps:$4 sm:$0xff]   ;;  %v1600_v10 = vrot.slane %v5984_v8, %v5888_v17 }
 0x2c6   :  { %3331 = vmatprep.subr.bf16.mxu0 %v5249_v22 }
 0x2c8   :  { %2391 = vmatpush1.bf16.msra.mxu1 %v5199_v45  ;;  %v5298_v45 = vld [vmem:[#allocation7 + $0xa60] ss:$16 sps:$4 sm:$0xff]  }
 0x2c9   :  { %2392 = vmatprep.subr.bf16.mxu1 %v5204_v32  ;;  %3332 = vmatpush1.bf16.msra.mxu0 %v5247_v11  ;;  %v5306_v32 = vld [vmem:[#allocation7 + $0xa44] ss:$16 sps:$4 sm:$0xff]  }
 0x2ca   :  { %3333 = vmatprep.subr.bf16.mxu0 %v5252_v25 }
 0x2cc   :  { %2393 = vmatpush2.bf16.msra.mxu1 %v5202_v47  ;;  %v5304_v47 = vld [vmem:[#allocation7 + $0xa40] ss:$16 sps:$4 sm:$0xff]  }
 0x2cd   :  { %2394 = vmatprep.subr.bf16.mxu1 %v5207_v48  ;;  %3334 = vmatpush2.bf16.msra.mxu0 %v5250_v29  ;;  %v5312_v48 = vld [vmem:[#allocation7 + $0xa24] ss:$16 sps:$4 sm:$0xff]  }
 0x2ce   :  { %3335 = vmatprep.subr.bf16.mxu0 %v5255_v41 }
 0x2d0   :  { %2395 = vmatpush2.bf16.msra.mxu1 %v5205_v52  ;;  %v5310_v52 = vld [vmem:[#allocation7 + $0xa20] ss:$16 sps:$4 sm:$0xff]  }
 0x2d1   :  { %2396 = vmatprep.subr.bf16.mxu1 %v5210_v54  ;;  %3336 = vmatpush2.bf16.msra.mxu0 %v5253_v14  ;;  %v5318_v54 = vld [vmem:[#allocation7 + $0xa04] ss:$16 sps:$4 sm:$0xff]  }
 0x2d2   :  { %3337 = vmatprep.subr.bf16.mxu0 %v5258_v13 }
 0x2d4   :  { %2397 = vmatpush2.bf16.msra.mxu1 %v5208_v55  ;;  %v5316_v55 = vld [vmem:[#allocation7 + $0xa00] ss:$16 sps:$4 sm:$0xff]  }
 0x2d5   :  { %2398 = vmatprep.subr.bf16.mxu1 %v5213_v56  ;;  %3338 = vmatpush2.bf16.msra.mxu0 %v5256_v16  ;;  %v5324_v56 = vld [vmem:[#allocation7 + $0xbe4] ss:$16 sps:$4 sm:$0xff]  }
 0x2d6   :  { %3339 = vmatprep.subr.bf16.mxu0 %v5261_v46 }
 0x2d8   :  { %2399 = vmatpush2.bf16.msra.mxu1 %v5211_v50  ;;  %v5322_v50 = vld [vmem:[#allocation7 + $0xbe0] ss:$16 sps:$4 sm:$0xff]  }
 0x2d9   :  { %2400 = vmatprep.subr.bf16.mxu1 %v5216_v53  ;;  %3340 = vmatpush2.bf16.msra.mxu0 %v5259_v18  ;;  %v5330_v53 = vld [vmem:[#allocation7 + $0xbc4] ss:$16 sps:$4 sm:$0xff]  }
 0x2da   :  { %3341 = vmatprep.subr.bf16.mxu0 %v5264_v20 }
 0x2dc   :  { %2401 = vmatpush2.bf16.msra.mxu1 %v5214_v57  ;;  %v5328_v57 = vld [vmem:[#allocation7 + $0xbc0] ss:$16 sps:$4 sm:$0xff]  }
 0x2dd   :  { %2402 = vmatprep.subr.bf16.mxu1 %v5219_v24  ;;  %3342 = vmatpush2.bf16.msra.mxu0 %v5262_v4  ;;  %v5336_v24 = vld [vmem:[#allocation7 + $0xba4] ss:$16 sps:$4 sm:$0xff]  }
 0x2de   :  { %3343 = vmatprep.subr.bf16.mxu0 %v5267_v21 }
 0x2e0   :  { %2403 = vmatpush2.bf16.msra.mxu1 %v5217_v58  ;;  %v5334_v58 = vld [vmem:[#allocation7 + $0xba0] ss:$16 sps:$4 sm:$0xff]  }
 0x2e1   :  { %2404 = vmatprep.subr.bf16.mxu1 %v5222_v59  ;;  %3344 = vmatpush2.bf16.msra.mxu0 %v5265_v23  ;;  %v5342_v59 = vld [vmem:[#allocation7 + $0xb84] ss:$16 sps:$4 sm:$0xff]  }
 0x2e4   :  { %2405 = vmatpush2.bf16.msra.mxu1 %v5220_v60  ;;  %v5340_v60 = vld [vmem:[#allocation7 + $0xb80] ss:$16 sps:$4 sm:$0xff]  }
 0x2e5   :  { %2406 = vmatprep.subr.bf16.mxu1 %v5225_v61  ;;  %v5348_v61 = vld [vmem:[#allocation7 + $0xb64] ss:$16 sps:$4 sm:$0xff]  }
 0x2e8   :  { %2407 = vmatpush2.bf16.msra.mxu1 %v5223_v63  ;;  %v5346_v63 = vld [vmem:[#allocation7 + $0xb60] ss:$16 sps:$4 sm:$0xff]  }
 0x2e9   :  { %3358 = vmatprep.subr.bf16.mxu1 %v5276_v31 }
 0x2eb   :  { %2409 = vmatmul.mubr.bf16.vlgmr.msra.gmra.mxu1 %v5975_v26  ;;  %v5270_v26 = vld [vmem:[#allocation7 + $0x924] ss:$16 sps:$4 sm:$0xff]  }
 0x2ec   :  { %3345 = vmatprep.subr.bf16.mxu0 %v5270_v26  ;;  %3359 = vmatpush1.bf16.msra.mxu1 %v5274_v30 }
 0x2ed   :  { %3346 = vmatpush2.bf16.msra.mxu0 %v5268_v28  ;;  %3360 = vmatprep.subr.bf16.mxu1 %v5282_v38 }
 0x2ee   :  { %3347 = vmatprep.subr.bf16.mxu0 %v5273_v62 }
 0x2f0   :  { %3361 = vmatpush1.bf16.msra.mxu1 %v5280_v34 }
 0x2f1   :  { %3348 = vmatpush2.bf16.msra.mxu0 %v5271_v1  ;;  %3362 = vmatprep.subr.bf16.mxu1 %v5288_v35 }
 0x2f2   :  { %3399 = vmatprep.subr.bf16.mxu0 %v5279_v33 }
 0x2f4   :  { %3363 = vmatpush1.bf16.msra.mxu1 %v5286_v36 }
 0x2f5   :  { %3364 = vmatprep.subr.bf16.mxu1 %v5294_v39 }
 0x2f8   :  { %3365 = vmatpush1.bf16.msra.mxu1 %v5292_v40 }
 0x2f9   :  { %3366 = vmatprep.subr.bf16.mxu1 %v5300_v44 }
 0x2fc   :  { %3367 = vmatpush1.bf16.msra.mxu1 %v5298_v45 }
 0x2fd   :  { %3368 = vmatprep.subr.bf16.mxu1 %v5306_v32 }
 0x300   :  { %3369 = vmatpush1.bf16.msra.mxu1 %v5304_v47 }
 0x301   :  { %3370 = vmatprep.subr.bf16.mxu1 %v5312_v48 }
 0x304   :  { %3371 = vmatpush1.bf16.msra.mxu1 %v5310_v52 }
 0x305   :  { %3372 = vmatprep.subr.bf16.mxu1 %v5318_v54 }
 0x308   :  { %3373 = vmatpush1.bf16.msra.mxu1 %v5316_v55 }
 0x309   :  { %3374 = vmatprep.subr.bf16.mxu1 %v5324_v56 }
 0x30c   :  { %3375 = vmatpush2.bf16.msra.mxu1 %v5322_v50 }
 0x30d   :  { %3376 = vmatprep.subr.bf16.mxu1 %v5330_v53 }
 0x310   :  { %3377 = vmatpush2.bf16.msra.mxu1 %v5328_v57 }
 0x311   :  { %3378 = vmatprep.subr.bf16.mxu1 %v5336_v24 }
 0x314   :  { %3379 = vmatpush2.bf16.msra.mxu1 %v5334_v58 }
 0x315   :  { %3380 = vmatprep.subr.bf16.mxu1 %v5342_v59 }
 0x318   :  { %3381 = vmatpush2.bf16.msra.mxu1 %v5340_v60 }
 0x319   :  { %3382 = vmatprep.subr.bf16.mxu1 %v5348_v61 }
 0x31c   :  { %3383 = vmatpush2.bf16.msra.mxu1 %v5346_v63 }
 0x31d   :  { %3384 = vmatprep.subr.bf16.mxu1 %v5354_v0 }
 0x320   :  { %3385 = vmatpush2.bf16.msra.mxu1 %v5352_v12 }
 0x321   :  { %3386 = vmatprep.subr.bf16.mxu1 %v5360_v2 }
 0x324   :  { %3387 = vmatpush2.bf16.msra.mxu1 %v5358_v3 }
 0x325   :  { %3388 = vmatprep.subr.bf16.mxu1 %v5366_v5 }
 0x328   :  { %3389 = vmatpush2.bf16.msra.mxu1 %v5364_v7 }
 0x329   :  { %3440 = vmatprep.subr.bf16.mxu1 %v5372_v6 }
 0x32b   :  { %v5980_v42 = vpop.f32.mrf.mxu0 }
 0x32c   :  { %v2288_v22 = vadd.f32 %v5980_v42, %v1596_v9 }
 0x32d   :  { %v5982_v51 = vpop.f32.mrf.mxu0 }
 0x32e   :  { %v2290_v29 = vadd.f32 %v5982_v51, %v1600_v10 }
 0x32f   :  { %v2291_v37 = vpop.f32.mrf.mxu0 }
 0x331   :  { %v2292_v43 = vpop.f32.mrf.mxu0 }
 0x36b   :  { %v2328_v11 = vpop.f32.mrf.mxu1  ;;  %v5991_v25 = vpop.f32.mrf.mxu0 }
 0x36c   :  { %v2329_v41 = vadd.f32 %v2328_v11, %v2288_v22 }
 0x36d   :  { %v2330_v14 = vpop.f32.mrf.mxu1  ;;  %v5994_v13 = vpop.f32.mrf.mxu0 }
 0x36e   :  { %v2421_v16 = vmul.f32 0.70710677, %v2329_v41  ;;  %v2331_v46 = vadd.f32 %v2330_v14, %v2290_v29  ;;  %v2417_v10 = vmul.f32 0.5, %v2329_v41  ;;  %v1608_v41 = vrot.slane %v5984_v8, %v5901_v27 }
 0x36f   :  { %v2332_v18 = vpop.f32.mrf.mxu1  ;;  %v2373_v20 = vpop.f32.mrf.mxu0 }
 0x370   :  { %v2433_v4 = vand.u32 2147483647, %v2421_v16  ;;  %v2422_v21 = vmul.f32 0.70710677, %v2331_v46  ;;  %vm2425_vm9 = vcmp.ge.f32.partialorder %v2421_v16, 0.0  ;;  %v2418_v22 = vmul.f32 0.5, %v2331_v46 }
 0x371   :  { %v2333_v23 = vpop.f32.mrf.mxu1  ;;  %v2374_v26 = vpop.f32.mrf.mxu0  ;;  %v2429_v12 = vsel %vm2425_vm9, 1.0, %v5809_v49  ;;  %v5277_v18 = vld [vmem:[#allocation7 + $0x8e8] ss:$16 sps:$4 sm:$0xff]   ;;  %v5291_v46 = vld [vmem:[#allocation7 + $0x8ac] ss:$16 sps:$4 sm:$0xff]  }
 0x372   :  { %v2437_v28 = vmul.f32 0.3275911, %v2433_v4  ;;  %v2434_v62 = vand.u32 2147483647, %v2422_v21  ;;  %v2485_v33 = vsub.f32 0.0, %v2433_v4  ;;  %vm2426_vm10 = vcmp.ge.f32.partialorder %v2422_v21, 0.0 }
 0x373   :  { %v2430_v6 = vsel %vm2426_vm10, 1.0, %v5809_v49  ;;  %v1604_v21 = vrot.slane %v5984_v8, %v5891_v19  ;;  %v5283_v23 = vld [vmem:[#allocation7 + $0x8c8] ss:$16 sps:$4 sm:$0xff]  }
 0x374   :  { %v2441_v1 = vadd.f32 1.0, %v2437_v28  ;;  %v2438_v30 = vmul.f32 0.3275911, %v2434_v62  ;;  %v2486_v34 = vsub.f32 0.0, %v2434_v62  ;;  %v2489_v38 = vmul.f32 %v2485_v33, %v2433_v4  ;;  %v5285_v4 = vld [vmem:[#allocation7 + $0x8cc] ss:$16 sps:$4 sm:$0xff]  }
 0x375   :  { %v2370_v26 = vadd.f32 %v5991_v25, %v1604_v21 }
 0x376   :  { %5562 = vrcp.f32 %v2441_v1  ;;  %v2442_v31 = vadd.f32 1.0, %v2438_v30  ;;  %v2490_v35 = vmul.f32 %v2486_v34, %v2434_v62  ;;  %v2493_v51 = vmul.f32 1.442695, %v2489_v38  ;;  %v5289_v62 = vld [vmem:[#allocation7 + $0x8a8] ss:$16 sps:$4 sm:$0xff]  }
 0x377   :  { %v2372_v1 = vadd.f32 %v5994_v13, %v1608_v41  ;;  %v5303_v13 = vld [vmem:[#allocation7 + $0x86c] ss:$16 sps:$4 sm:$0xff]  }
 0x378   :  { %5564 = vrcp.f32 %v2442_v31  ;;  %v2495_v43 = vmul.f32 1.442695, %v2490_v35  ;;  %v5297_v31 = vld [vmem:[#allocation7 + $0x88c] ss:$16 sps:$4 sm:$0xff]  }
 0x379   :  { %5566 = vpow2.f32 %v2493_v51 }
 0x37a   :  { %5568 = vpow2.f32 %v2495_v43 }
 0x383   :  { %v5563_v42 = vpop.eup %5562 }
 0x384   :  { %v2449_v36 = vmul.f32 1.0614054, %v5563_v42 }
 0x385   :  { %v5565_v37 = vpop.eup %5564 }
 0x386   :  { %v2453_v39 = vadd.f32 -1.4531521, %v2449_v36  ;;  %v2450_v40 = vmul.f32 1.0614054, %v5565_v37  ;;  %v5567_v58 = vpop.eup %5566 }
 0x387   :  { %v5569_v63 = vpop.eup %5568 }
 0x388   :  { %v2457_v44 = vmul.f32 %v5563_v42, %v2453_v39  ;;  %v2454_v45 = vadd.f32 -1.4531521, %v2450_v40  ;;  %v5301_v39 = vld [vmem:[#allocation7 + $0x868] ss:$16 sps:$4 sm:$0xff]  }
 0x38a   :  { %v2461_v32 = vadd.f32 1.4214138, %v2457_v44  ;;  %v2458_v47 = vmul.f32 %v5565_v37, %v2454_v45  ;;  %v5309_v44 = vld [vmem:[#allocation7 + $0x84c] ss:$16 sps:$4 sm:$0xff]  }
 0x38c   :  { %v2465_v48 = vmul.f32 %v5563_v42, %v2461_v32  ;;  %v2462_v52 = vadd.f32 1.4214138, %v2458_v47  ;;  %v5307_v32 = vld [vmem:[#allocation7 + $0x848] ss:$16 sps:$4 sm:$0xff]   ;;  %v5315_v47 = vld [vmem:[#allocation7 + $0x82c] ss:$16 sps:$4 sm:$0xff]  }
 0x38e   :  { %v2469_v54 = vadd.f32 -0.28449672, %v2465_v48  ;;  %v2466_v55 = vmul.f32 %v5565_v37, %v2462_v52  ;;  %v5313_v48 = vld [vmem:[#allocation7 + $0x828] ss:$16 sps:$4 sm:$0xff]  }
 0x390   :  { %v2473_v56 = vmul.f32 %v5563_v42, %v2469_v54  ;;  %v2470_v50 = vadd.f32 -0.28449672, %v2466_v55  ;;  %v5321_v54 = vld [vmem:[#allocation7 + $0x80c] ss:$16 sps:$4 sm:$0xff]  }
 0x392   :  { %v2477_v53 = vadd.f32 0.2548296, %v2473_v56  ;;  %v2474_v57 = vmul.f32 %v5565_v37, %v2470_v50  ;;  %v5319_v56 = vld [vmem:[#allocation7 + $0x808] ss:$16 sps:$4 sm:$0xff]  }
 0x394   :  { %v2481_v24 = vmul.f32 %v5563_v42, %v2477_v53  ;;  %v2478_v59 = vadd.f32 0.2548296, %v2474_v57  ;;  %v5295_v42 = vld [vmem:[#allocation7 + $0x888] ss:$16 sps:$4 sm:$0xff]   ;;  %v5327_v53 = vld [vmem:[#allocation7 + $0x9ec] ss:$16 sps:$4 sm:$0xff]  }
 0x396   :  { %v2501_v60 = vmul.f32 %v5567_v58, %v2481_v24  ;;  %v2482_v61 = vmul.f32 %v5565_v37, %v2478_v59  ;;  %v5325_v58 = vld [vmem:[#allocation7 + $0x9e8] ss:$16 sps:$4 sm:$0xff]  }
 0x398   :  { %v2505_v0 = vsub.f32 1.0, %v2501_v60  ;;  %v2502_v2 = vmul.f32 %v5569_v63, %v2482_v61  ;;  %v5333_v61 = vld [vmem:[#allocation7 + $0x9cc] ss:$16 sps:$4 sm:$0xff]  }
 0x39a   :  { %v2509_v3 = vmul.f32 %v2505_v0, %v2429_v12  ;;  %v2506_v5 = vsub.f32 1.0, %v2502_v2 }
 0x39c   :  { %v2513_v7 = vadd.f32 1.0, %v2509_v3  ;;  %v2510_v9 = vmul.f32 %v2506_v5, %v2430_v6  ;;  %v5331_v3 = vld [vmem:[#allocation7 + $0x9c8] ss:$16 sps:$4 sm:$0xff]  }
 0x39e   :  { %v2514_v11 = vadd.f32 1.0, %v2510_v9  ;;  %v2517_v29 = vmul.f32 %v2513_v7, %v2417_v10  ;;  %v5339_v7 = vld [vmem:[#allocation7 + $0x9ac] ss:$16 sps:$4 sm:$0xff]  }
 0x3a0   :  { %v2518_v14 = vmul.f32 %v2514_v11, %v2418_v22  ;;  %v5998_v20 = vpack.c.bf16 %v2517_v29, %v2517_v29  ;;  %v5337_v22 = vld [vmem:[#allocation7 + $0x9a8] ss:$16 sps:$4 sm:$0xff]   ;;  %v5345_v29 = vld [vmem:[#allocation7 + $0x98c] ss:$16 sps:$4 sm:$0xff]  }
 0x3a2   :  { %v2522_v16 = vpack.c.bf16 %v2518_v14, %v2518_v14 }
 0x3a4   :  { %3349 = vmatprep.mubr.bf16.mxu0 %v2522_v16 }
 0x3a5   :  { %3350 = vmatmul.mubr.bf16.vlgmr.msra.gmra.mxu0 %v5998_v20 }
 0x3a6   :  { %3400 = vmatpush1.bf16.msra.mxu0 %v5277_v18  ;;  %3431 = vmatprep.mubr.bf16.mxu0 %v2522_v16 }
 0x3a7   :  { %3401 = vmatprep.subr.bf16.mxu0 %v5285_v4  ;;  %v5343_v4 = vld [vmem:[#allocation7 + $0x988] ss:$16 sps:$4 sm:$0xff]  }
 0x3aa   :  { %3402 = vmatpush1.bf16.msra.mxu0 %v5283_v23  ;;  %v5351_v23 = vld [vmem:[#allocation7 + $0x96c] ss:$16 sps:$4 sm:$0xff]  }
 0x3ab   :  { %v2410_v28 = vpop.f32.mrf.mxu1  ;;  %3403 = vmatprep.subr.bf16.mxu0 %v5291_v46 }
 0x3ac   :  { %v6007_v30 = vadd.f32 %v2410_v28, %v2370_v26  ;;  %v5349_v28 = vld [vmem:[#allocation7 + $0x968] ss:$16 sps:$4 sm:$0xff]  }
 0x3ad   :  { %v2412_v33 = vpop.f32.mrf.mxu1 }
 0x3ae   :  { %v6010_v34 = vmul.f32 0.70710677, %v6007_v30  ;;  %v6012_v38 = vadd.f32 %v2412_v33, %v2372_v1  ;;  %3404 = vmatpush1.bf16.msra.mxu0 %v5289_v62  ;;  %v5357_v1 = vld [vmem:[#allocation7 + $0x94c] ss:$16 sps:$4 sm:$0xff]  }
 0x3af   :  { %v2414_v8 = vpop.f32.mrf.mxu1  ;;  %3405 = vmatprep.subr.bf16.mxu0 %v5297_v31 }
 0x3b0   :  { %v2435_v25 = vand.u32 2147483647, %v6010_v34  ;;  %v6016_v35 = vmul.f32 0.70710677, %v6012_v38  ;;  %vm2427_vm11 = vcmp.ge.f32.partialorder %v6010_v34, 0.0 }
 0x3b1   :  { %v2415_v36 = vpop.f32.mrf.mxu1 }
 0x3b2   :  { %v2439_v51 = vmul.f32 0.3275911, %v2435_v25  ;;  %v2436_v37 = vand.u32 2147483647, %v6016_v35  ;;  %3406 = vmatpush1.bf16.msra.mxu0 %v5295_v42  ;;  %v2487_v52 = vsub.f32 0.0, %v2435_v25  ;;  %vm2428_vm12 = vcmp.ge.f32.partialorder %v6016_v35, 0.0 }
 0x3b3   :  { %3407 = vmatprep.subr.bf16.mxu0 %v5303_v13  ;;  %v2432_v34 = vsel %vm2428_vm12, 1.0, %v5809_v49 }
 0x3b4   :  { %v2443_v40 = vadd.f32 1.0, %v2439_v51  ;;  %v2440_v43 = vmul.f32 0.3275911, %v2436_v37  ;;  %v2488_v55 = vsub.f32 0.0, %v2436_v37  ;;  %v2491_v50 = vmul.f32 %v2487_v52, %v2435_v25  ;;  %v5355_v25 = vld [vmem:[#allocation7 + $0x948] ss:$16 sps:$4 sm:$0xff]  }
 0x3b5   :  { %v5363_v51 = vld [vmem:[#allocation7 + $0x92c] ss:$16 sps:$4 sm:$0xff]   ;;  %v2420_v52 = vmul.f32 0.5, %v6012_v38 }
 0x3b6   :  { %5570 = vrcp.f32 %v2443_v40  ;;  %v2444_v45 = vadd.f32 1.0, %v2440_v43  ;;  %3408 = vmatpush1.bf16.msra.mxu0 %v5301_v39  ;;  %v2492_v24 = vmul.f32 %v2488_v55, %v2436_v37  ;;  %v2497_v60 = vmul.f32 1.442695, %v2491_v50  ;;  %v5378_v38 = vld [vmem:[#allocation7 + $0xaac] ss:$16 sps:$4 sm:$0xff]  }
 0x3b7   :  { %3409 = vmatprep.subr.bf16.mxu0 %v5309_v44  ;;  %v2431_v37 = vsel %vm2427_vm11, 1.0, %v5809_v49  ;;  %v5361_v44 = vld [vmem:[#allocation7 + $0x928] ss:$16 sps:$4 sm:$0xff]  }
 0x3b8   :  { %5572 = vrcp.f32 %v2444_v45  ;;  %v2499_v2 = vmul.f32 1.442695, %v2492_v24  ;;  %v5375_v24 = vld [vmem:[#allocation7 + $0xacc] ss:$16 sps:$4 sm:$0xff]  }
 0x3b9   :  { %5574 = vpow2.f32 %v2497_v60  ;;  %v5418_v60 = vld [vmem:[#allocation10 + $0x70] ss:$8 sps:$4 sm:$0xff]  }
 0x3ba   :  { %3410 = vmatpush1.bf16.msra.mxu0 %v5307_v32  ;;  %5576 = vpow2.f32 %v2499_v2  ;;  %v5369_v32 = vld [vmem:[#allocation7 + $0x90c] ss:$16 sps:$4 sm:$0xff]  }
 0x3bb   :  { %3411 = vmatprep.subr.bf16.mxu0 %v5315_v47  ;;  %v5384_v2 = vld [vmem:[#allocation7 + $0xa6c] ss:$16 sps:$4 sm:$0xff]  }
 0x3be   :  { %3412 = vmatpush1.bf16.msra.mxu0 %v5313_v48  ;;  %v2419_v48 = vmul.f32 0.5, %v6007_v30  ;;  %v5373_v30 = vld [vmem:[#allocation7 + $0xac8] ss:$16 sps:$4 sm:$0xff]  }
 0x3bf   :  { %3413 = vmatprep.subr.bf16.mxu0 %v5321_v54  ;;  %v5367_v54 = vld [vmem:[#allocation7 + $0x908] ss:$16 sps:$4 sm:$0xff]  }
 0x3c2   :  { %3414 = vmatpush1.bf16.msra.mxu0 %v5319_v56 }
 0x3c3   :  { %v5571_v57 = vpop.eup %5570  ;;  %3415 = vmatprep.subr.bf16.mxu0 %v5327_v53  ;;  %v5370_v53 = vld [vmem:[#allocation7 + $0xae8] ss:$16 sps:$4 sm:$0xff]  }
 0x3c4   :  { %v2451_v59 = vmul.f32 1.0614054, %v5571_v57 }
 0x3c5   :  { %v5573_v63 = vpop.eup %5572 }
 0x3c6   :  { %v2455_v0 = vadd.f32 -1.4531521, %v2451_v59  ;;  %v2452_v12 = vmul.f32 1.0614054, %v5573_v63  ;;  %3416 = vmatpush2.bf16.msra.mxu0 %v5325_v58  ;;  %v5575_v31 = vpop.eup %5574  ;;  %v5376_v58 = vld [vmem:[#allocation7 + $0xaa8] ss:$16 sps:$4 sm:$0xff]  }
 0x3c7   :  { %3417 = vmatprep.subr.bf16.mxu0 %v5333_v61  ;;  %v5577_v13 = vpop.eup %5576  ;;  %v5381_v59 = vld [vmem:[#allocation7 + $0xa8c] ss:$16 sps:$4 sm:$0xff]  }
 0x3c8   :  { %v2459_v5 = vmul.f32 %v5571_v57, %v2455_v0  ;;  %v2456_v6 = vadd.f32 -1.4531521, %v2452_v12  ;;  %v5420_v61 = vld [vmem:[#allocation10 + $0x74] ss:$8 sps:$4 sm:$0xff]   ;;  %v5379_v0 = vld [vmem:[#allocation7 + $0xa88] ss:$16 sps:$4 sm:$0xff]  }
 0x3c9   :  { %v5421_v12 = vld [vmem:[#allocation10 + $0x60] ss:$8 sps:$4 sm:$0xff]  }
 0x3ca   :  { %v2463_v9 = vadd.f32 1.4214138, %v2459_v5  ;;  %v2460_v10 = vmul.f32 %v5573_v63, %v2456_v6  ;;  %3418 = vmatpush2.bf16.msra.mxu0 %v5331_v3  ;;  %v5387_v3 = vld [vmem:[#allocation7 + $0xa4c] ss:$16 sps:$4 sm:$0xff]   ;;  %v5385_v5 = vld [vmem:[#allocation7 + $0xa48] ss:$16 sps:$4 sm:$0xff]  }
 0x3cb   :  { %3419 = vmatprep.subr.bf16.mxu0 %v5339_v7  ;;  %v5390_v7 = vld [vmem:[#allocation7 + $0xa2c] ss:$16 sps:$4 sm:$0xff]   ;;  %v5388_v6 = vld [vmem:[#allocation7 + $0xa28] ss:$16 sps:$4 sm:$0xff]  }
 0x3cc   :  { %v2467_v11 = vmul.f32 %v5571_v57, %v2463_v9  ;;  %v2464_v14 = vadd.f32 1.4214138, %v2460_v10  ;;  %v5393_v9 = vld [vmem:[#allocation7 + $0xa0c] ss:$16 sps:$4 sm:$0xff]   ;;  %v5391_v10 = vld [vmem:[#allocation7 + $0xa08] ss:$16 sps:$4 sm:$0xff]  }
 0x3ce   :  { %v2471_v16 = vadd.f32 -0.28449672, %v2467_v11  ;;  %v2468_v18 = vmul.f32 %v5573_v63, %v2464_v14  ;;  %3420 = vmatpush2.bf16.msra.mxu0 %v5337_v22  ;;  %v5396_v22 = vld [vmem:[#allocation7 + $0xbec] ss:$16 sps:$4 sm:$0xff]   ;;  %v5394_v11 = vld [vmem:[#allocation7 + $0xbe8] ss:$16 sps:$4 sm:$0xff]  }
 0x3cf   :  { %3421 = vmatprep.subr.bf16.mxu0 %v5345_v29  ;;  %v5399_v29 = vld [vmem:[#allocation7 + $0xbcc] ss:$16 sps:$4 sm:$0xff]   ;;  %v5397_v14 = vld [vmem:[#allocation7 + $0xbc8] ss:$16 sps:$4 sm:$0xff]  }
 0x3d0   :  { %v2475_v21 = vmul.f32 %v5571_v57, %v2471_v16  ;;  %v2472_v41 = vadd.f32 -0.28449672, %v2468_v18  ;;  %v5402_v16 = vld [vmem:[#allocation7 + $0xbac] ss:$16 sps:$4 sm:$0xff]   ;;  %v5400_v18 = vld [vmem:[#allocation7 + $0xba8] ss:$16 sps:$4 sm:$0xff]  }
 0x3d2   :  { %v2479_v46 = vadd.f32 0.2548296, %v2475_v21  ;;  %v2476_v26 = vmul.f32 %v5573_v63, %v2472_v41  ;;  %3422 = vmatpush2.bf16.msra.mxu0 %v5343_v4  ;;  %v5405_v4 = vld [vmem:[#allocation7 + $0xb8c] ss:$16 sps:$4 sm:$0xff]   ;;  %v5403_v21 = vld [vmem:[#allocation7 + $0xb88] ss:$16 sps:$4 sm:$0xff]  }
 0x3d3   :  { %3423 = vmatprep.subr.bf16.mxu0 %v5351_v23  ;;  %v5408_v23 = vld [vmem:[#allocation7 + $0xb6c] ss:$16 sps:$4 sm:$0xff]   ;;  %v5406_v41 = vld [vmem:[#allocation7 + $0xb68] ss:$16 sps:$4 sm:$0xff]  }
 0x3d4   :  { %v2483_v62 = vmul.f32 %v5571_v57, %v2479_v46  ;;  %v2480_v33 = vadd.f32 0.2548296, %v2476_v26  ;;  %v5411_v46 = vld [vmem:[#allocation7 + $0xb4c] ss:$16 sps:$4 sm:$0xff]   ;;  %v5409_v26 = vld [vmem:[#allocation7 + $0xb48] ss:$16 sps:$4 sm:$0xff]  }
 0x3d6   :  { %v2503_v8 = vmul.f32 %v5575_v31, %v2483_v62  ;;  %v2484_v42 = vmul.f32 %v5573_v63, %v2480_v33  ;;  %3424 = vmatpush2.bf16.msra.mxu0 %v5349_v28  ;;  %v5423_v63 = vld [vmem:[#allocation10 + $0x64] ss:$8 sps:$4 sm:$0xff]   ;;  %v5412_v62 = vld [vmem:[#allocation7 + $0xb28] ss:$16 sps:$4 sm:$0xff]   ;;  %v5426_v33 = vld [vmem:[#allocation10 + $0x54] ss:$8 sps:$4 sm:$0xff]  }
 0x3d7   :  { %3425 = vmatprep.subr.bf16.mxu0 %v5357_v1  ;;  %v5414_v28 = vld [vmem:[#allocation7 + $0xb2c] ss:$16 sps:$4 sm:$0xff]   ;;  %v5415_v31 = vld [vmem:[#allocation7 + $0xb08] ss:$16 sps:$4 sm:$0xff]  }
 0x3d8   :  { %v2507_v36 = vsub.f32 1.0, %v2503_v8  ;;  %v2504_v39 = vmul.f32 %v5577_v13, %v2484_v42  ;;  %v5417_v1 = vld [vmem:[#allocation7 + $0xb0c] ss:$16 sps:$4 sm:$0xff]   ;;  %v5424_v8 = vld [vmem:[#allocation10 + $0x50] ss:$8 sps:$4 sm:$0xff]  }
 0x3d9   :  { %v5429_v42 = vld [vmem:[#allocation10 + $0x44] ss:$8 sps:$4 sm:$0xff]   ;;  %v5432_v13 = vld [vmem:[#allocation10 + $0x34] ss:$8 sps:$4 sm:$0xff]  }
 0x3da   :  { %v2511_v40 = vmul.f32 %v2507_v36, %v2431_v37  ;;  %v2508_v43 = vsub.f32 1.0, %v2504_v39  ;;  %3426 = vmatpush2.bf16.msra.mxu0 %v5355_v25  ;;  %v5427_v25 = vld [vmem:[#allocation10 + $0x40] ss:$8 sps:$4 sm:$0xff]   ;;  %v5430_v36 = vld [vmem:[#allocation10 + $0x30] ss:$8 sps:$4 sm:$0xff]  }
 0x3db   :  { %3427 = vmatprep.subr.bf16.mxu0 %v5363_v51  ;;  %v5435_v51 = vld [vmem:[#allocation10 + $0x24] ss:$8 sps:$4 sm:$0xff]   ;;  %v5433_v37 = vld [vmem:[#allocation10 + $0x20] ss:$8 sps:$4 sm:$0xff]   ;;  %v5438_v39 = vld [vmem:[#allocation10 + $0x14] ss:$8 sps:$4 sm:$0xff]  }
 0x3dc   :  { %v2515_v45 = vadd.f32 1.0, %v2511_v40  ;;  %v2512_v47 = vmul.f32 %v2508_v43, %v2432_v34  ;;  %v5436_v40 = vld [vmem:[#allocation10 + $0x10] ss:$8 sps:$4 sm:$0xff]   ;;  %v5441_v43 = vld [vmem:[#allocation10 + $0x4] ss:$8 sps:$4 sm:$0xff]  }
 0x3dd   :  { %v5442_v34 = vld [vmem:[#allocation10 + $0xf0] ss:$8 sps:$4 sm:$0xff]  }
 0x3de   :  { %3428 = vmatpush2.bf16.msra.mxu0 %v5361_v44  ;;  %v2516_v55 = vadd.f32 1.0, %v2512_v47  ;;  %v2519_v56 = vmul.f32 %v2515_v45, %v2419_v48  ;;  %v5439_v44 = vld [vmem:[#allocation10] ss:$8 sps:$4 sm:$0xff]   ;;  %v5444_v45 = vld [vmem:[#allocation10 + $0xf4] ss:$8 sps:$4 sm:$0xff]  }
 0x3df   :  { %3429 = vmatprep.subr.bf16.mxu0 %v5369_v32  ;;  %v5447_v32 = vld [vmem:[#allocation10 + $0xe4] ss:$8 sps:$4 sm:$0xff]   ;;  %v5445_v47 = vld [vmem:[#allocation10 + $0xe0] ss:$8 sps:$4 sm:$0xff]   ;;  %v5450_v48 = vld [vmem:[#allocation10 + $0xd4] ss:$8 sps:$4 sm:$0xff]  }
 0x3e0   :  { %v2520_v35 = vmul.f32 %v2516_v55, %v2420_v52  ;;  %v6025_v57 = vpack.c.bf16 %v2519_v56, %v2519_v56  ;;  %v5448_v52 = vld [vmem:[#allocation10 + $0xd0] ss:$8 sps:$4 sm:$0xff]   ;;  %v5451_v55 = vld [vmem:[#allocation10 + $0xc0] ss:$8 sps:$4 sm:$0xff]   ;;  %v5456_v56 = vld [vmem:[#allocation10 + $0xb4] ss:$8 sps:$4 sm:$0xff]  }
 0x3e2   :  { %3430 = vmatpush2.bf16.msra.mxu0 %v5367_v54  ;;  %v2524_v50 = vpack.c.bf16 %v2520_v35, %v2520_v35  ;;  %v5453_v54 = vld [vmem:[#allocation10 + $0xc4] ss:$8 sps:$4 sm:$0xff]   ;;  %v5454_v35 = vld [vmem:[#allocation10 + $0xb0] ss:$8 sps:$4 sm:$0xff]  }
 0x3e3   :  { %3985 = vmatprep.subr.bf16.mxu0 %v5420_v61  ;;  %v5471_v61 = vld [vmem:[#allocation10 + $0x164] ss:$8 sps:$4 sm:$0xff]  }
 0x3e4   :  { %3390 = vmatprep.mubr.bf16.mxu1 %v2524_v50 }
 0x3e5   :  { %3391 = vmatmul.mubr.bf16.vlgmr.msra.gmra.mxu1 %v6025_v57  ;;  %3432 = vmatmul.mubr.bf16.vlgmr.msra.gmra.mxu0 %v5998_v20  ;;  %v5382_v20 = vld [vmem:[#allocation7 + $0xa68] ss:$16 sps:$4 sm:$0xff]  }
 0x3e6   :  { %3441 = vmatpush1.bf16.msra.mxu1 %v5370_v53  ;;  %3472 = vmatprep.mubr.bf16.mxu1 %v2524_v50  ;;  %v5459_v50 = vld [vmem:[#allocation10 + $0xa4] ss:$8 sps:$4 sm:$0xff]   ;;  %v5457_v53 = vld [vmem:[#allocation10 + $0xa0] ss:$8 sps:$4 sm:$0xff]  }
 0x3e7   :  { %3442 = vmatprep.subr.bf16.mxu1 %v5375_v24  ;;  %3986 = vmatpush1.bf16.msra.mxu0 %v5418_v60  ;;  %v5460_v24 = vld [vmem:[#allocation10 + $0x90] ss:$8 sps:$4 sm:$0xff]   ;;  %v5469_v60 = vld [vmem:[#allocation10 + $0x160] ss:$8 sps:$4 sm:$0xff]  }
 0x3e8   :  { %3987 = vmatprep.subr.bf16.mxu0 %v5423_v63 }
 0x3ea   :  { %3443 = vmatpush1.bf16.msra.mxu1 %v5373_v30  ;;  %v5463_v30 = vld [vmem:[#allocation10 + $0x80] ss:$8 sps:$4 sm:$0xff]  }
 0x3eb   :  { %3444 = vmatprep.subr.bf16.mxu1 %v5378_v38  ;;  %3988 = vmatpush1.bf16.msra.mxu0 %v5421_v12  ;;  %v5465_v38 = vld [vmem:[#allocation10 + $0x84] ss:$8 sps:$4 sm:$0xff]  }
 0x3ec   :  { %3989 = vmatprep.subr.bf16.mxu0 %v5426_v33  ;;  %v5505_v33 = vld [vmem:[#allocation10 + $0x1a0] ss:$8 sps:$4 sm:$0xff]  }
 0x3ee   :  { %3445 = vmatpush1.bf16.msra.mxu1 %v5376_v58  ;;  %v5468_v58 = vld [vmem:[#allocation10 + $0x174] ss:$8 sps:$4 sm:$0xff]  }
 0x3ef   :  { %3446 = vmatprep.subr.bf16.mxu1 %v5381_v59  ;;  %3990 = vmatpush1.bf16.msra.mxu0 %v5424_v8  ;;  %v5466_v59 = vld [vmem:[#allocation10 + $0x170] ss:$8 sps:$4 sm:$0xff]   ;;  %v5510_v8 = vld [vmem:[#allocation10 + $0x194] ss:$8 sps:$4 sm:$0xff]  }
 0x3f0   :  { %3991 = vmatprep.subr.bf16.mxu0 %v5429_v42  ;;  %v5508_v42 = vld [vmem:[#allocation10 + $0x190] ss:$8 sps:$4 sm:$0xff]  }
 0x3f2   :  { %3447 = vmatpush1.bf16.msra.mxu1 %v5379_v0  ;;  %v5474_v0 = vld [vmem:[#allocation10 + $0x154] ss:$8 sps:$4 sm:$0xff]  }
 0x3f3   :  { %3448 = vmatprep.subr.bf16.mxu1 %v5384_v2  ;;  %3992 = vmatpush1.bf16.msra.mxu0 %v5427_v25  ;;  %v5472_v2 = vld [vmem:[#allocation10 + $0x150] ss:$8 sps:$4 sm:$0xff]   ;;  %v5511_v25 = vld [vmem:[#allocation10 + $0x180] ss:$8 sps:$4 sm:$0xff]  }
 0x3f4   :  { %3993 = vmatprep.subr.bf16.mxu0 %v5432_v13  ;;  %v5513_v13 = vld [vmem:[#allocation10 + $0x184] ss:$8 sps:$4 sm:$0xff]  }
 0x3f6   :  { %3449 = vmatpush1.bf16.msra.mxu1 %v5382_v20 }
 0x3f7   :  { %3450 = vmatprep.subr.bf16.mxu1 %v5387_v3  ;;  %3994 = vmatpush1.bf16.msra.mxu0 %v5430_v36  ;;  %v5477_v3 = vld [vmem:[#allocation10 + $0x144] ss:$8 sps:$4 sm:$0xff]   ;;  %v6034_v36 = vld [vmem:[#allocation8 + $0x3] ss:$4 sm:$0xf] }
 0x3f8   :  { %3995 = vmatprep.subr.bf16.mxu0 %v5435_v51  ;;  %v2660_v51 = vrot.slane %v6034_v36, %v5886_v15 }
 0x3fa   :  { %3451 = vmatpush1.bf16.msra.mxu1 %v5385_v5 }
 0x3fb   :  { %3452 = vmatprep.subr.bf16.mxu1 %v5390_v7  ;;  %3996 = vmatpush1.bf16.msra.mxu0 %v5433_v37  ;;  %v5475_v7 = vld [vmem:[#allocation10 + $0x140] ss:$8 sps:$4 sm:$0xff]   ;;  %v2664_v37 = vrot.slane %v6034_v36, %v5888_v17 }
 0x3fc   :  { %3997 = vmatprep.subr.bf16.mxu0 %v5438_v39 }
 0x3fe   :  { %3453 = vmatpush1.bf16.msra.mxu1 %v5388_v6  ;;  %v5480_v6 = vld [vmem:[#allocation10 + $0x134] ss:$8 sps:$4 sm:$0xff]  }
 0x3ff   :  { %3454 = vmatprep.subr.bf16.mxu1 %v5393_v9  ;;  %3998 = vmatpush1.bf16.msra.mxu0 %v5436_v40  ;;  %v5478_v9 = vld [vmem:[#allocation10 + $0x130] ss:$8 sps:$4 sm:$0xff]  }
 0x400   :  { %3999 = vmatprep.subr.bf16.mxu0 %v5441_v43 }
 0x402   :  { %3455 = vmatpush1.bf16.msra.mxu1 %v5391_v10  ;;  %v5483_v10 = vld [vmem:[#allocation10 + $0x124] ss:$8 sps:$4 sm:$0xff]  }
 0x403   :  { %3456 = vmatprep.subr.bf16.mxu1 %v5396_v22  ;;  %4000 = vmatpush1.bf16.msra.mxu0 %v5439_v44  ;;  %v5481_v22 = vld [vmem:[#allocation10 + $0x120] ss:$8 sps:$4 sm:$0xff]  }
 0x404   :  { %4001 = vmatprep.subr.bf16.mxu0 %v5444_v45 }
 0x406   :  { %3457 = vmatpush2.bf16.msra.mxu1 %v5394_v11  ;;  %v5486_v11 = vld [vmem:[#allocation10 + $0x114] ss:$8 sps:$4 sm:$0xff]  }
 0x407   :  { %3458 = vmatprep.subr.bf16.mxu1 %v5399_v29  ;;  %4002 = vmatpush2.bf16.msra.mxu0 %v5442_v34  ;;  %v5484_v29 = vld [vmem:[#allocation10 + $0x110] ss:$8 sps:$4 sm:$0xff]  }
 0x408   :  { %4003 = vmatprep.subr.bf16.mxu0 %v5447_v32 }
 0x40a   :  { %3459 = vmatpush2.bf16.msra.mxu1 %v5397_v14  ;;  %v5489_v14 = vld [vmem:[#allocation10 + $0x104] ss:$8 sps:$4 sm:$0xff]  }
 0x40b   :  { %3460 = vmatprep.subr.bf16.mxu1 %v5402_v16  ;;  %4004 = vmatpush2.bf16.msra.mxu0 %v5445_v47  ;;  %v5487_v16 = vld [vmem:[#allocation10 + $0x100] ss:$8 sps:$4 sm:$0xff]  }
 0x40c   :  { %4005 = vmatprep.subr.bf16.mxu0 %v5450_v48 }
 0x40e   :  { %3461 = vmatpush2.bf16.msra.mxu1 %v5400_v18  ;;  %v5492_v18 = vld [vmem:[#allocation10 + $0x1f4] ss:$8 sps:$4 sm:$0xff]  }
 0x40f   :  { %3462 = vmatprep.subr.bf16.mxu1 %v5405_v4  ;;  %4006 = vmatpush2.bf16.msra.mxu0 %v5448_v52  ;;  %v5490_v4 = vld [vmem:[#allocation10 + $0x1f0] ss:$8 sps:$4 sm:$0xff]  }
 0x410   :  { %4007 = vmatprep.subr.bf16.mxu0 %v5453_v54 }
 0x412   :  { %3463 = vmatpush2.bf16.msra.mxu1 %v5403_v21  ;;  %v5495_v21 = vld [vmem:[#allocation10 + $0x1e4] ss:$8 sps:$4 sm:$0xff]  }
 0x413   :  { %3464 = vmatprep.subr.bf16.mxu1 %v5408_v23  ;;  %4008 = vmatpush2.bf16.msra.mxu0 %v5451_v55  ;;  %v5493_v23 = vld [vmem:[#allocation10 + $0x1e0] ss:$8 sps:$4 sm:$0xff]  }
 0x414   :  { %4009 = vmatprep.subr.bf16.mxu0 %v5456_v56 }
 0x416   :  { %3465 = vmatpush2.bf16.msra.mxu1 %v5406_v41  ;;  %v5498_v41 = vld [vmem:[#allocation10 + $0x1d4] ss:$8 sps:$4 sm:$0xff]  }
 0x417   :  { %3466 = vmatprep.subr.bf16.mxu1 %v5411_v46  ;;  %4010 = vmatpush2.bf16.msra.mxu0 %v5454_v35  ;;  %v5496_v46 = vld [vmem:[#allocation10 + $0x1d0] ss:$8 sps:$4 sm:$0xff]  }
 0x418   :  { %4011 = vmatprep.subr.bf16.mxu0 %v5459_v50 }
 0x41a   :  { %3467 = vmatpush2.bf16.msra.mxu1 %v5409_v26  ;;  %v5501_v26 = vld [vmem:[#allocation10 + $0x1c4] ss:$8 sps:$4 sm:$0xff]  }
 0x41b   :  { %3468 = vmatprep.subr.bf16.mxu1 %v5414_v28  ;;  %4012 = vmatpush2.bf16.msra.mxu0 %v5457_v53  ;;  %v5499_v28 = vld [vmem:[#allocation10 + $0x1c0] ss:$8 sps:$4 sm:$0xff]  }
 0x41e   :  { %3469 = vmatpush2.bf16.msra.mxu1 %v5412_v62  ;;  %v5504_v62 = vld [vmem:[#allocation10 + $0x1b4] ss:$8 sps:$4 sm:$0xff]  }
 0x41f   :  { %3470 = vmatprep.subr.bf16.mxu1 %v5417_v1  ;;  %v5502_v1 = vld [vmem:[#allocation10 + $0x1b0] ss:$8 sps:$4 sm:$0xff]  }
 0x422   :  { %3471 = vmatpush2.bf16.msra.mxu1 %v5415_v31  ;;  %v5507_v31 = vld [vmem:[#allocation10 + $0x1a4] ss:$8 sps:$4 sm:$0xff]  }
 0x423   :  { %4026 = vmatprep.subr.bf16.mxu1 %v5468_v58 }
 0x425   :  { %3473 = vmatmul.mubr.bf16.vlgmr.msra.gmra.mxu1 %v6025_v57  ;;  %v5462_v57 = vld [vmem:[#allocation10 + $0x94] ss:$8 sps:$4 sm:$0xff]  }
 0x426   :  { %4013 = vmatprep.subr.bf16.mxu0 %v5462_v57  ;;  %4027 = vmatpush1.bf16.msra.mxu1 %v5466_v59 }
 0x427   :  { %4014 = vmatpush2.bf16.msra.mxu0 %v5460_v24  ;;  %4028 = vmatprep.subr.bf16.mxu1 %v5471_v61 }
 0x428   :  { %4015 = vmatprep.subr.bf16.mxu0 %v5465_v38 }
 0x42a   :  { %4029 = vmatpush1.bf16.msra.mxu1 %v5469_v60 }
 0x42b   :  { %4016 = vmatpush2.bf16.msra.mxu0 %v5463_v30  ;;  %4030 = vmatprep.subr.bf16.mxu1 %v5474_v0 }
 0x42e   :  { %4031 = vmatpush1.bf16.msra.mxu1 %v5472_v2 }
 0x42f   :  { %4032 = vmatprep.subr.bf16.mxu1 %v5477_v3 }
 0x432   :  { %4033 = vmatpush1.bf16.msra.mxu1 %v5475_v7 }
 0x433   :  { %4034 = vmatprep.subr.bf16.mxu1 %v5480_v6 }
 0x436   :  { %4035 = vmatpush1.bf16.msra.mxu1 %v5478_v9 }
 0x437   :  { %4036 = vmatprep.subr.bf16.mxu1 %v5483_v10 }
 0x43a   :  { %4037 = vmatpush1.bf16.msra.mxu1 %v5481_v22 }
 0x43b   :  { %4038 = vmatprep.subr.bf16.mxu1 %v5486_v11 }
 0x43e   :  { %4039 = vmatpush1.bf16.msra.mxu1 %v5484_v29 }
 0x43f   :  { %4040 = vmatprep.subr.bf16.mxu1 %v5489_v14 }
 0x442   :  { %4041 = vmatpush1.bf16.msra.mxu1 %v5487_v16 }
 0x443   :  { %4042 = vmatprep.subr.bf16.mxu1 %v5492_v18 }
 0x446   :  { %4043 = vmatpush2.bf16.msra.mxu1 %v5490_v4 }
 0x447   :  { %4044 = vmatprep.subr.bf16.mxu1 %v5495_v21 }
 0x44a   :  { %4045 = vmatpush2.bf16.msra.mxu1 %v5493_v23 }
 0x44b   :  { %4046 = vmatprep.subr.bf16.mxu1 %v5498_v41 }
 0x44e   :  { %4047 = vmatpush2.bf16.msra.mxu1 %v5496_v46 }
 0x44f   :  { %4048 = vmatprep.subr.bf16.mxu1 %v5501_v26 }
 0x452   :  { %4049 = vmatpush2.bf16.msra.mxu1 %v5499_v28 }
 0x453   :  { %4050 = vmatprep.subr.bf16.mxu1 %v5504_v62 }
 0x456   :  { %4051 = vmatpush2.bf16.msra.mxu1 %v5502_v1 }
 0x457   :  { %4052 = vmatprep.subr.bf16.mxu1 %v5507_v31 }
 0x45a   :  { %4053 = vmatpush2.bf16.msra.mxu1 %v5505_v33 }
 0x45b   :  { %4054 = vmatprep.subr.bf16.mxu1 %v5510_v8 }
 0x45e   :  { %4055 = vmatpush2.bf16.msra.mxu1 %v5508_v42 }
 0x45f   :  { %4056 = vmatprep.subr.bf16.mxu1 %v5513_v13 }
 0x462   :  { %4057 = vmatpush2.bf16.msra.mxu1 %v5511_v25 }
 0x465   :  { %v6030_v63 = vpop.f32.mrf.mxu0 }
 0x466   :  { %v3352_v39 = vadd.f32 %v6030_v63, %v2660_v51 }
 0x467   :  { %v6032_v12 = vpop.f32.mrf.mxu0 }
 0x468   :  { %v3354_v44 = vadd.f32 %v6032_v12, %v2664_v37 }
 0x469   :  { %v3355_v20 = vpop.f32.mrf.mxu0 }
 0x46b   :  { %v3356_v5 = vpop.f32.mrf.mxu0 }
 0x4a5   :  { %v3392_v40 = vpop.f32.mrf.mxu1  ;;  %v6041_v43 = vpop.f32.mrf.mxu0 }
 0x4a6   :  { %v3393_v45 = vadd.f32 %v3392_v40, %v3352_v39 }
 0x4a7   :  { %v3394_v34 = vpop.f32.mrf.mxu1  ;;  %v6044_v32 = vpop.f32.mrf.mxu0 }
 0x4a8   :  { %v3485_v47 = vmul.f32 0.70710677, %v3393_v45  ;;  %v3395_v48 = vadd.f32 %v3394_v34, %v3354_v44  ;;  %v3481_v37 = vmul.f32 0.5, %v3393_v45 }
 0x4a9   :  { %v3396_v52 = vpop.f32.mrf.mxu1  ;;  %v3437_v54 = vpop.f32.mrf.mxu0 }
 0x4aa   :  { %v3497_v55 = vand.u32 2147483647, %v3485_v47  ;;  %v3486_v56 = vmul.f32 0.70710677, %v3395_v48  ;;  %vm3489_vm13 = vcmp.ge.f32.partialorder %v3485_v47, 0.0  ;;  %v3482_v39 = vmul.f32 0.5, %v3395_v48 }
 0x4ab   :  { %v3397_v35 = vpop.f32.mrf.mxu1  ;;  %v3438_v50 = vpop.f32.mrf.mxu0  ;;  %v3493_v31 = vsel %vm3489_vm13, 1.0, %v5809_v49  ;;  %v2668_v54 = vrot.slane %v6034_v36, %v5891_v19 }
 0x4ac   :  { %v3501_v53 = vmul.f32 0.3275911, %v3497_v55  ;;  %v3498_v57 = vand.u32 2147483647, %v3486_v56  ;;  %v3549_v58 = vsub.f32 0.0, %v3497_v55  ;;  %vm3490_vm14 = vcmp.ge.f32.partialorder %v3486_v56, 0.0 }
 0x4ad   :  { %v3494_v13 = vsel %vm3490_vm14, 1.0, %v5809_v49  ;;  %v3434_v56 = vadd.f32 %v6041_v43, %v2668_v54 }
 0x4ae   :  { %v3505_v24 = vadd.f32 1.0, %v3501_v53  ;;  %v3502_v30 = vmul.f32 0.3275911, %v3498_v57  ;;  %v3550_v59 = vsub.f32 0.0, %v3498_v57  ;;  %v3553_v60 = vmul.f32 %v3549_v58, %v3497_v55 }
 0x4af   :  { %v2672_v55 = vrot.slane %v6034_v36, %v5901_v27 }
 0x4b0   :  { %5578 = vrcp.f32 %v3505_v24  ;;  %v3506_v38 = vadd.f32 1.0, %v3502_v30  ;;  %v3554_v63 = vmul.f32 %v3550_v59, %v3498_v57  ;;  %v3557_v12 = vmul.f32 1.442695, %v3553_v60 }
 0x4b1   :  { %v3436_v50 = vadd.f32 %v6044_v32, %v2672_v55  ;;  %v5514_v55 = vld [vmem:[#allocation13 + $0x78] sm:$0xff]  }
 0x4b2   :  { %5580 = vrcp.f32 %v3506_v38  ;;  %v3559_v5 = vmul.f32 1.442695, %v3554_v63  ;;  %4791 = vmatprep.subr.bf16.mxu0 %v5514_v55 }
 0x4b3   :  { %5582 = vpow2.f32 %v3557_v12 }
 0x4b4   :  { %5584 = vpow2.f32 %v3559_v5 }
 0x4bd   :  { %v5579_v61 = vpop.eup %5578 }
 0x4be   :  { %v3513_v0 = vmul.f32 1.0614054, %v5579_v61 }
 0x4bf   :  { %v5581_v2 = vpop.eup %5580 }
 0x4c0   :  { %v3517_v20 = vadd.f32 -1.4531521, %v3513_v0  ;;  %v3514_v3 = vmul.f32 1.0614054, %v5581_v2  ;;  %v5583_v41 = vpop.eup %5582 }
 0x4c1   :  { %v5585_v62 = vpop.eup %5584 }
 0x4c2   :  { %v3521_v7 = vmul.f32 %v5579_v61, %v3517_v20  ;;  %v3518_v6 = vadd.f32 -1.4531521, %v3514_v3 }
 0x4c4   :  { %v3525_v9 = vadd.f32 1.4214138, %v3521_v7  ;;  %v3522_v10 = vmul.f32 %v5581_v2, %v3518_v6 }
 0x4c6   :  { %v3529_v22 = vmul.f32 %v5579_v61, %v3525_v9  ;;  %v3526_v11 = vadd.f32 1.4214138, %v3522_v10 }
 0x4c8   :  { %v3533_v29 = vadd.f32 -0.28449672, %v3529_v22  ;;  %v3530_v14 = vmul.f32 %v5581_v2, %v3526_v11 }
 0x4ca   :  { %v3537_v16 = vmul.f32 %v5579_v61, %v3533_v29  ;;  %v3534_v18 = vadd.f32 -0.28449672, %v3530_v14 }
 0x4cc   :  { %v3541_v4 = vadd.f32 0.2548296, %v3537_v16  ;;  %v3538_v21 = vmul.f32 %v5581_v2, %v3534_v18 }
 0x4ce   :  { %v3545_v23 = vmul.f32 %v5579_v61, %v3541_v4  ;;  %v3542_v46 = vadd.f32 0.2548296, %v3538_v21 }
 0x4d0   :  { %v3565_v26 = vmul.f32 %v5583_v41, %v3545_v23  ;;  %v3546_v28 = vmul.f32 %v5581_v2, %v3542_v46 }
 0x4d2   :  { %v3569_v1 = vsub.f32 1.0, %v3565_v26  ;;  %v3566_v33 = vmul.f32 %v5585_v62, %v3546_v28 }
 0x4d4   :  { %v3573_v8 = vmul.f32 %v3569_v1, %v3493_v31  ;;  %v3570_v42 = vsub.f32 1.0, %v3566_v33 }
 0x4d6   :  { %v3577_v25 = vadd.f32 1.0, %v3573_v8  ;;  %v3574_v51 = vmul.f32 %v3570_v42, %v3494_v13 }
 0x4d8   :  { %v3578_v40 = vadd.f32 1.0, %v3574_v51  ;;  %v3581_v44 = vmul.f32 %v3577_v25, %v3481_v37 }
 0x4da   :  { %v3582_v34 = vmul.f32 %v3578_v40, %v3482_v39  ;;  %v3585_v52 = vpack.c.bf16 %v3581_v44, %v3581_v44 }
 0x4dc   :  { %v3586_v47 = vpack.c.bf16 %v3582_v34, %v3582_v34 }
 0x4de   :  { %4017 = vmatprep.mubr.bf16.mxu0 %v3586_v47 }
 0x4df   :  { %4018 = vmatmul.mubr.bf16.vlgmr.msra.gmra.mxu0 %v3585_v52 }
 0x4e5   :  { %v3474_v35 = vpop.f32.mrf.mxu1 }
 0x4e6   :  { %v3475_v45 = vadd.f32 %v3474_v35, %v3434_v56  ;;  %v5515_v56 = vld [vmem:[#allocation13 + $0x38] sm:$0xff]   ;;  %v5516_v35 = vld [vmem:[#allocation13 + $0x70] sm:$0xff]  }
 0x4e7   :  { %v3476_v48 = vpop.f32.mrf.mxu1  ;;  %4792 = vmatpush3.bf16.msra.mxu0 %v5515_v56 }
 0x4e8   :  { %v3487_v53 = vmul.f32 0.70710677, %v3475_v45  ;;  %v3477_v57 = vadd.f32 %v3476_v48, %v3436_v50  ;;  %v3483_v39 = vmul.f32 0.5, %v3475_v45  ;;  %v5517_v50 = vld [vmem:[#allocation13 + $0x30] sm:$0xff]   ;;  %4793 = vmatprep.subr.bf16.mxu0 %v5516_v35  ;;  %v5518_v48 = vld [vmem:[#allocation13 + $0x68] sm:$0xff]   ;;  %v5520_v45 = vld [vmem:[#allocation13 + $0x60] sm:$0xff]  }
 0x4e9   :  { %v3478_v24 = vpop.f32.mrf.mxu1 }
 0x4ea   :  { %v3499_v30 = vand.u32 2147483647, %v3487_v53  ;;  %v3488_v38 = vmul.f32 0.70710677, %v3477_v57  ;;  %vm3491_vm15 = vcmp.ge.f32.partialorder %v3487_v53, 0.0  ;;  %v3484_v40 = vmul.f32 0.5, %v3477_v57 }
 0x4eb   :  { %v3479_v58 = vpop.f32.mrf.mxu1  ;;  %v3495_v33 = vsel %vm3491_vm15, 1.0, %v5809_v49  ;;  %4794 = vmatpush3.bf16.msra.mxu0 %v5517_v50  ;;  %v5519_v53 = vld [vmem:[#allocation13 + $0x28] sm:$0xff]   ;;  %v5521_v57 = vld [vmem:[#allocation13 + $0x20] sm:$0xff]   ;;  %v5522_v24 = vld [vmem:[#allocation13 + $0x58] sm:$0xff]  }
 0x4ec   :  { %v3503_v59 = vmul.f32 0.3275911, %v3499_v30  ;;  %v3500_v60 = vand.u32 2147483647, %v3488_v38  ;;  %v3551_v27 = vsub.f32 0.0, %v3499_v30  ;;  %vm3492_vm0 = vcmp.ge.f32.partialorder %v3488_v38, 0.0  ;;  %4795 = vmatprep.subr.bf16.mxu0 %v5518_v48 }
 0x4ed   :  { %v3496_v51 = vsel %vm3492_vm0, 1.0, %v5809_v49  ;;  %v5524_v38 = vld [vmem:[#allocation13 + $0x50] sm:$0xff]  }
 0x4ee   :  { %v3507_v19 = vadd.f32 1.0, %v3503_v59  ;;  %v3504_v61 = vmul.f32 0.3275911, %v3500_v60  ;;  %v3552_v36 = vsub.f32 0.0, %v3500_v60  ;;  %v3555_v43 = vmul.f32 %v3551_v27, %v3499_v30  ;;  %v5523_v30 = vld [vmem:[#allocation13 + $0x18] sm:$0xff]   ;;  %v5525_v58 = vld [vmem:[#allocation13 + $0x10] sm:$0xff]  }
 0x4ef   :  { %4796 = vmatpush3.bf16.msra.mxu0 %v5519_v53  ;;  %v5526_v59 = vld [vmem:[#allocation13 + $0x48] sm:$0xff]  }
 0x4f0   :  { %5586 = vrcp.f32 %v3507_v19  ;;  %v3508_v63 = vadd.f32 1.0, %v3504_v61  ;;  %v3556_v32 = vmul.f32 %v3552_v36, %v3500_v60  ;;  %v3561_v2 = vmul.f32 1.442695, %v3555_v43  ;;  %4797 = vmatprep.subr.bf16.mxu0 %v5520_v45  ;;  %v5527_v60 = vld [vmem:[#allocation13 + $0x8] sm:$0xff]   ;;  %v5528_v19 = vld [vmem:[#allocation13 + $0x40] sm:$0xff]  }
 0x4f1   :  { %v5529_v61 = vld [vmem:[#allocation13] sm:$0xff]  }
 0x4f2   :  { %5588 = vrcp.f32 %v3508_v63  ;;  %v3563_v7 = vmul.f32 1.442695, %v3556_v32 }
 0x4f3   :  { %5590 = vpow2.f32 %v3561_v2  ;;  %4798 = vmatpush3.bf16.msra.mxu0 %v5521_v57 }
 0x4f4   :  { %5592 = vpow2.f32 %v3563_v7  ;;  %4799 = vmatprep.subr.bf16.mxu0 %v5522_v24 }
 0x4f7   :  { %4800 = vmatpush3.bf16.msra.mxu0 %v5523_v30 }
 0x4f8   :  { %4801 = vmatprep.subr.bf16.mxu0 %v5524_v38 }
 0x4fb   :  { %4802 = vmatpush3.bf16.msra.mxu0 %v5525_v58 }
 0x4fc   :  { %4803 = vmatprep.subr.bf16.mxu0 %v5526_v59 }
 0x4fd   :  { %v5587_v0 = vpop.eup %5586 }
 0x4fe   :  { %v3515_v12 = vmul.f32 1.0614054, %v5587_v0 }
 0x4ff   :  { %v5589_v20 = vpop.eup %5588  ;;  %4804 = vmatpush3.bf16.msra.mxu0 %v5527_v60 }
 0x500   :  { %v3519_v3 = vadd.f32 -1.4531521, %v3515_v12  ;;  %v3516_v5 = vmul.f32 1.0614054, %v5589_v20  ;;  %v5591_v46 = vpop.eup %5590  ;;  %4805 = vmatprep.subr.bf16.mxu0 %v5528_v19 }
 0x501   :  { %v5593_v1 = vpop.eup %5592 }
 0x502   :  { %v3523_v6 = vmul.f32 %v5587_v0, %v3519_v3  ;;  %v3520_v9 = vadd.f32 -1.4531521, %v3516_v5 }
 0x503   :  { %4806 = vmatpush3.bf16.msra.mxu0 %v5529_v61 }
 0x504   :  { %v3527_v10 = vadd.f32 1.4214138, %v3523_v6  ;;  %v3524_v22 = vmul.f32 %v5589_v20, %v3520_v9 }
 0x506   :  { %v3531_v11 = vmul.f32 %v5587_v0, %v3527_v10  ;;  %v3528_v29 = vadd.f32 1.4214138, %v3524_v22 }
 0x508   :  { %v3535_v14 = vadd.f32 -0.28449672, %v3531_v11  ;;  %v3532_v16 = vmul.f32 %v5589_v20, %v3528_v29 }
 0x50a   :  { %v3539_v18 = vmul.f32 %v5587_v0, %v3535_v14  ;;  %v3536_v4 = vadd.f32 -0.28449672, %v3532_v16 }
 0x50c   :  { %v3543_v21 = vadd.f32 0.2548296, %v3539_v18  ;;  %v3540_v23 = vmul.f32 %v5589_v20, %v3536_v4 }
 0x50e   :  { %v3547_v41 = vmul.f32 %v5587_v0, %v3543_v21  ;;  %v3544_v26 = vadd.f32 0.2548296, %v3540_v23  ;;  %v3653_v0 = vld [vmem:[#allocation11] sm:$0x3] }
 0x50f   :  { %v3658_v32 = vrot.slane %v3653_v0, %v5886_v15  ;;  %v3662_v12 = vrot.slane %v3653_v0, %v5888_v17 }
 0x510   :  { %v3567_v28 = vmul.f32 %v5591_v46, %v3547_v41  ;;  %v3548_v62 = vmul.f32 %v5589_v20, %v3544_v26 }
 0x512   :  { %v3571_v31 = vsub.f32 1.0, %v3567_v28  ;;  %v3568_v8 = vmul.f32 %v5593_v1, %v3548_v62 }
 0x514   :  { %v3575_v42 = vmul.f32 %v3571_v31, %v3495_v33  ;;  %v3572_v25 = vsub.f32 1.0, %v3568_v8 }
 0x516   :  { %v3579_v13 = vadd.f32 1.0, %v3575_v42  ;;  %v3576_v37 = vmul.f32 %v3572_v25, %v3496_v51 }
 0x518   :  { %v3580_v44 = vadd.f32 1.0, %v3576_v37  ;;  %v3583_v34 = vmul.f32 %v3579_v13, %v3483_v39 }
 0x51a   :  { %v3584_v47 = vmul.f32 %v3580_v44, %v3484_v40  ;;  %v3587_v54 = vpack.c.bf16 %v3583_v34, %v3583_v34 }
 0x51c   :  { %v3588_v52 = vpack.c.bf16 %v3584_v47, %v3584_v47 }
 0x51e   :  { %4058 = vmatprep.mubr.bf16.mxu1 %v3588_v52 }
 0x51f   :  { %4059 = vmatmul.mubr.bf16.vlgmr.msra.gmra.mxu1 %v3587_v54 }
 0x59f   :  { %v4019_v63 = vpop.f32.mrf.mxu0 }
 0x5a0   :  { %v4020_v2 = vadd.f32 %v4019_v63, %v3658_v32  ;;  %v4774_v32 = vld [vmem:[#allocation14] ss:$0 sm:$0xff] }
 0x5a1   :  { %v4021_v27 = vpop.f32.mrf.mxu0 }
 0x5a2   :  { %v4022_v3 = vadd.f32 %v4021_v27, %v3662_v12 }
 0x5a3   :  { %v4023_v36 = vpop.f32.mrf.mxu0 }
 0x5a5   :  { %v4024_v43 = vpop.f32.mrf.mxu0 }
 0x5df   :  { %v4060_v20 = vpop.f32.mrf.mxu1 }
 0x5e0   :  { %v4061_v5 = vadd.f32 %v4060_v20, %v4020_v2 }
 0x5e1   :  { %v4062_v7 = vpop.f32.mrf.mxu1 }
 0x5e2   :  { %v4069_v6 = vmul.f32 0.70710677, %v4061_v5  ;;  %v4063_v9 = vadd.f32 %v4062_v7, %v4022_v3  ;;  %v4067_v60 = vmul.f32 0.5, %v4061_v5 }
 0x5e3   :  { %v4064_v10 = vpop.f32.mrf.mxu1 }
 0x5e4   :  { %v4075_v22 = vand.u32 2147483647, %v4069_v6  ;;  %v4070_v11 = vmul.f32 0.70710677, %v4063_v9  ;;  %vm4071_vm1 = vcmp.ge.f32.partialorder %v4069_v6, 0.0  ;;  %v4068_v19 = vmul.f32 0.5, %v4063_v9 }
 0x5e5   :  { %v4065_v29 = vpop.f32.mrf.mxu1  ;;  %v4073_v45 = vsel %vm4071_vm1, 1.0, %v5809_v49 }
 0x5e6   :  { %v4077_v14 = vmul.f32 0.3275911, %v4075_v22  ;;  %v4076_v16 = vand.u32 2147483647, %v4070_v11  ;;  %v4101_v15 = vsub.f32 0.0, %v4075_v22  ;;  %vm4072_vm2 = vcmp.ge.f32.partialorder %v4070_v11, 0.0 }
 0x5e7   :  { %v4074_v58 = vsel %vm4072_vm2, 1.0, %v5809_v49 }
 0x5e8   :  { %v4079_v18 = vadd.f32 1.0, %v4077_v14  ;;  %v4078_v4 = vmul.f32 0.3275911, %v4076_v16  ;;  %v4102_v17 = vsub.f32 0.0, %v4076_v16  ;;  %v4103_v23 = vmul.f32 %v4101_v15, %v4075_v22 }
 0x5ea   :  { %5594 = vrcp.f32 %v4079_v18  ;;  %v4080_v21 = vadd.f32 1.0, %v4078_v4  ;;  %v4104_v46 = vmul.f32 %v4102_v17, %v4076_v16  ;;  %v4105_v28 = vmul.f32 1.442695, %v4103_v23 }
 0x5ec   :  { %5596 = vrcp.f32 %v4080_v21  ;;  %v4107_v33 = vmul.f32 1.442695, %v4104_v46 }
 0x5ed   :  { %5598 = vpow2.f32 %v4105_v28 }
 0x5ee   :  { %5600 = vpow2.f32 %v4107_v33 }
 0x5f7   :  { %v5595_v41 = vpop.eup %5594 }
 0x5f8   :  { %v4083_v26 = vmul.f32 1.0614054, %v5595_v41 }
 0x5f9   :  { %v5597_v62 = vpop.eup %5596 }
 0x5fa   :  { %v4085_v1 = vadd.f32 -1.4531521, %v4083_v26  ;;  %v4084_v31 = vmul.f32 1.0614054, %v5597_v62  ;;  %v5599_v55 = vpop.eup %5598 }
 0x5fb   :  { %v5601_v48 = vpop.eup %5600 }
 0x5fc   :  { %v4087_v8 = vmul.f32 %v5595_v41, %v4085_v1  ;;  %v4086_v42 = vadd.f32 -1.4531521, %v4084_v31 }
 0x5fe   :  { %v4089_v25 = vadd.f32 1.4214138, %v4087_v8  ;;  %v4088_v13 = vmul.f32 %v5597_v62, %v4086_v42 }
 0x600   :  { %v4091_v51 = vmul.f32 %v5595_v41, %v4089_v25  ;;  %v4090_v37 = vadd.f32 1.4214138, %v4088_v13 }
 0x602   :  { %v4093_v39 = vadd.f32 -0.28449672, %v4091_v51  ;;  %v4092_v40 = vmul.f32 %v5597_v62, %v4090_v37 }
 0x604   :  { %v4095_v44 = vmul.f32 %v5595_v41, %v4093_v39  ;;  %v4094_v34 = vadd.f32 -0.28449672, %v4092_v40 }
 0x606   :  { %v4097_v47 = vadd.f32 0.2548296, %v4095_v44  ;;  %v4096_v52 = vmul.f32 %v5597_v62, %v4094_v34 }
 0x608   :  { %v4099_v54 = vmul.f32 %v5595_v41, %v4097_v47  ;;  %v4098_v56 = vadd.f32 0.2548296, %v4096_v52 }
 0x60a   :  { %v4109_v35 = vmul.f32 %v5599_v55, %v4099_v54  ;;  %v4100_v50 = vmul.f32 %v5597_v62, %v4098_v56 }
 0x60c   :  { %v4111_v53 = vsub.f32 1.0, %v4109_v35  ;;  %v4110_v57 = vmul.f32 %v5601_v48, %v4100_v50 }
 0x60e   :  { %v4113_v24 = vmul.f32 %v4111_v53, %v4073_v45  ;;  %v4112_v30 = vsub.f32 1.0, %v4110_v57 }
 0x610   :  { %v4115_v38 = vadd.f32 1.0, %v4113_v24  ;;  %v4114_v59 = vmul.f32 %v4112_v30, %v4074_v58 }
 0x612   :  { %v4116_v61 = vadd.f32 1.0, %v4114_v59  ;;  %v4117_v63 = vmul.f32 %v4115_v38, %v4067_v60 }
 0x614   :  { %v4118_v27 = vmul.f32 %v4116_v61, %v4068_v19  ;;  %v4119_v43 = vpack.c.bf16 %v4117_v63, %v4117_v63 }
 0x616   :  { %v4120_v36 = vpack.c.bf16 %v4118_v27, %v4118_v27 }
 0x618   :  { %4288 = vmatprep.mubr.bf16.mxu0 %v4120_v36 }
 0x619   :  { %4289 = vmatmul.mubr.bf16.vlgmr.msra.gmra.mxu0 %v4119_v43 }
 0x6d9   :  { %v4807_v0 = vpop.f32.mrf.mxu0 }
 0x6db   :  { %v4808_v12 = vpop.f32.mrf.mxu0 }
 0x6dc   :  { %v4809_v2 = vadd.f32 %v4808_v12, %v4807_v0 }
 0x6dd   :  { %v4810_v20 = vpop.f32.mrf.mxu0 }
 0x6de   :  { %v4291_v3 = vadd.f32 %v4809_v2, %v4774_v32 }
 0x6df   :  { %v4811_v49 = vpop.f32.mrf.mxu0 }
 0x6e0   :  { %4296 = vst [vmem:[#allocation16] sm:$0xff] %v4291_v3 }
 0x6e1   :  { %5773 = shalt.err (!%p5770_p2)
}
 0x6e2   :  { %4306 = dma.vmem_to_hbm [thread:$0]  %s4304_s7, 128, %s6071_s8, [#allocation4]  }
 0x6e3   :  { %5792 = dma.done.wait [#allocation4], 128  }
 0x6e4   :  { %5793 = vsyncadd [#allocation4], 4294967168 }
 0x6e5   :  { %4310 = vsyncpa [#allocation3], 1 }
 0x6e6   :  { %4311 = vsyncpa [#allocation6], 1 }
 0x6e7   :  { %4312 = vsyncpa [#allocation9], 1 }
 0x6e8   :  { %4313 = vsyncpa [#allocation12], 1 }
 0x6e9   :  { %4314 = vsyncpa [#allocation15], 1 }
 0x6ea   :  { %4315 = vsyncpa [#allocation4], 1 }

</bundles_post_ra>
